<compile_context>
chip_gen: v7x
topology: tpu7x:2x2x1
jax: 0.10.0
libtpu: 0.0.40
codegen_flags: <defaults>
</compile_context>

<pallas_src>
import functools

import jax
import jax.numpy as jnp
from jax.experimental import pallas as pl
from jax.experimental.pallas import tpu as pltpu

# dtype of the conv-matmul operands (input frame, padded-H scratch, banded
# weights).  bf16 is the MXU fast path on v5e/v6e/v7x; set to jnp.float32 to
# recover exact f32 conv arithmetic.  Recurrent cell state, peephole weights
# and all gate math are always f32.
_CONV_DTYPE = jnp.bfloat16


# ----------------------------------------------------------------------------
# Kernel: one ConvLSTM time step per grid point (direction, t).
# ----------------------------------------------------------------------------
def _conv_blstm_step_kernel(x_ref, wxb_ref, whb_ref, b_ref,
                            wci_ref, wcf_ref, wco_ref,
                            out_ref, hpad_scr, c_scr,
                            *, K, pad, W, Cout, activation):
    """One peephole ConvLSTM step.

    x_ref   : (B, Hp, Wp*Cin)        spatially pre-padded input frame (bf16)
    wxb_ref : (K, Wp*Cin,  4*W*Cout) banded conv weights for X (bf16)
    whb_ref : (K, Wp*Cout, 4*W*Cout) banded conv weights for H (bf16)
    b_ref   : (1, 4*W*Cout)          bias pre-broadcast to the gate lane layout (f32)
    wci/wcf/wco_ref: (B*H, W*Cout)   peephole weights, lane-dense (f32)
    out_ref : (B*H, W*Cout)          hidden state for this time step (f32)
    hpad_scr: (B, Hp, Wp*Cout)       zero-bordered padded H state (persistent, bf16)
    c_scr   : (B*H, W*Cout)          cell state (persistent, f32)
    """
    B, Hp, _ = x_ref.shape
    H = Hp - 2 * pad
    BH = B * H
    WC = W * Cout

    act = jnp.tanh if activation == "tanh" else (lambda v: jnp.maximum(v, 0.0))

    t = pl.program_id(1)

    # H_0 = C_0 = 0; the border of hpad_scr stays zero for the whole sequence.
    @pl.when(t == 0)
    def _init():
        hpad_scr[...] = jnp.zeros_like(hpad_scr)
        c_scr[...] = jnp.zeros_like(c_scr)

    # conv(cat([X, H_prev])) as K banded MXU matmuls per operand.
    # acc lanes are laid out as (gate, w, cout); bias already in that layout.
    acc = b_ref[...].astype(jnp.float32)                     # (1, 4*W*Cout)
    for dy in range(K):
        x_slab = x_ref[:, dy:dy + H, :].reshape(BH, -1)      # (B*H, Wp*Cin)
        h_slab = hpad_scr[:, dy:dy + H, :].reshape(BH, -1)   # (B*H, Wp*Cout)
        acc = acc + jnp.dot(x_slab, wxb_ref[dy],
                            preferred_element_type=jnp.float32)
        acc = acc + jnp.dot(h_slab, whb_ref[dy],
                            preferred_element_type=jnp.float32)
    # acc: (B*H, 4*W*Cout) f32

    def gate(g):  # 128-aligned contiguous 256-lane slice, already (B*H, W*Cout)
        return acc[:, g * WC:(g + 1) * WC]

    # gate order matches torch.chunk(conv_out, 4, dim=channel): i, f, g, o
    c_prev = c_scr[...]
    i_gate = jax.nn.sigmoid(gate(0) + wci_ref[...] * c_prev)
    f_gate = jax.nn.sigmoid(gate(1) + wcf_ref[...] * c_prev)
    c_new = f_gate * c_prev + i_gate * act(gate(2))
    o_gate = jax.nn.sigmoid(gate(3) + wco_ref[...] * c_new)
    h_new = o_gate * act(c_new)

    c_scr[...] = c_new
    out_ref[...] = h_new.astype(out_ref.dtype)               # 256-lane dense store
    # Write H back into the interior of the zero-bordered padded state.
    hpad_scr[:, pad:pad + H, pad * Cout:(pad + W) * Cout] = (
        h_new.reshape(B, H, WC).astype(hpad_scr.dtype))


# ----------------------------------------------------------------------------
# Parameter preparation (wrapper-side layout plumbing, done once).
# ----------------------------------------------------------------------------
def _band_weights(w, C, K, W, Cout, pad, dtype):
    """(K, K, C, 4*Cout) conv weights -> (K, Wp*C, 4*W*Cout) banded matmul weights.

    Row index    = wp*C + cin                (wp over the padded width)
    Column index = gate*(W*Cout) + x*Cout + cout
    Band[dy][wp*C+cin, (g,x,co)] = w[dy, wp-x, cin, g*Cout+co] if 0 <= wp-x < K else 0
    """
    Wp = W + 2 * pad
    wr = w.reshape(K, K, C, 4, Cout)
    # S[dx, x, wp] = 1 iff wp == x + dx
    S = (jnp.arange(Wp)[None, None, :]
         == jnp.arange(W)[None, :, None] + jnp.arange(K)[:, None, None]
         ).astype(w.dtype)
    band = jnp.einsum('dap,ydcgo->ypcgao', S, wr)   # (K, Wp, C, 4, W, Cout)
    return band.reshape(K, Wp * C, 4 * W * Cout).astype(dtype)


def _prep_direction(params, B, H, W, Cin, pad):
    """Flatten one direction's parameters into the kernel layouts."""
    wx, wh, b, wci, wcf, wco = params
    K = wx.shape[0]
    Cout = wh.shape[2]

    wxb = _band_weights(wx.astype(jnp.float32), Cin, K, W, Cout, pad, _CONV_DTYPE)
    whb = _band_weights(wh.astype(jnp.float32), Cout, K, W, Cout, pad, _CONV_DTYPE)
    # bias broadcast to the (gate, w, cout) lane layout of the accumulator.
    bias = jnp.broadcast_to(b.reshape(4, 1, Cout),
                            (4, W, Cout)).reshape(1, 4 * W * Cout).astype(jnp.float32)

    def tile_peephole(w):  # (H, W, Cout) -> (B*H, W*Cout), lane-dense
        return jnp.broadcast_to(
            w[None], (B, H, W, Cout)).reshape(B * H, W * Cout).astype(jnp.float32)

    return (wxb, whb, bias, tile_peephole(wci), tile_peephole(wcf),
            tile_peephole(wco), K, Cout)


# ----------------------------------------------------------------------------
# Public wrapper (PyTorch layout in / out).
# ----------------------------------------------------------------------------
def conv_blstm(x_btchw, fwd_params, bwd_params, *, return_sequence=False,
               padding=1, activation="tanh"):
    """ConvBLSTM.forward.  x_btchw: (B, T, Cin, H, W) as in PyTorch."""
    B, T, Cin, H, W = x_btchw.shape
    K = fwd_params[0].shape[0]
    assert 2 * padding == K - 1, "ConvLSTM recurrence needs 'same' padding"
    Hp, Wp = H + 2 * padding, W + 2 * padding

    # (T, B, Hp, Wp*Cin), spatially pre-padded, bf16 for the matmul path.
    x = jnp.transpose(x_btchw, (1, 0, 3, 4, 2)).astype(jnp.float32)
    xpad = jnp.pad(x, ((0, 0), (0, 0), (padding, padding),
                       (padding, padding), (0, 0)))
    xpad = xpad.reshape(T, B, Hp, Wp * Cin).astype(_CONV_DTYPE)

    (wxb_f, whb_f, b_f, wci_f, wcf_f, wco_f, K, Cout) = _prep_direction(
        fwd_params, B, H, W, Cin, padding)
    (wxb_b, whb_b, b_b, wci_b, wcf_b, wco_b, _, _) = _prep_direction(
        bwd_params, B, H, W, Cin, padding)

    wxb = jnp.stack([wxb_f, wxb_b])   # (2, K, Wp*Cin,  4*W*Cout)
    whb = jnp.stack([whb_f, whb_b])   # (2, K, Wp*Cout, 4*W*Cout)
    bias = jnp.stack([b_f, b_b])      # (2, 1, 4*W*Cout)
    wci = jnp.stack([wci_f, wci_b])   # (2, B*H, W*Cout)
    wcf = jnp.stack([wcf_f, wcf_b])
    wco = jnp.stack([wco_f, wco_b])

    BH, WC, G = B * H, W * Cout, 4 * W * Cout
    WpCin, WpCo = Wp * Cin, Wp * Cout

    # Backward direction (d=1) reads time T-1-t and writes back to the
    # original time slot -> no HBM-level sequence reversal anywhere.
    def t_eff(d, t):
        return t + d * (T - 1 - 2 * t)

    kernel = functools.partial(_conv_blstm_step_kernel, K=K, pad=padding,
                               W=W, Cout=Cout, activation=activation)

    out = pl.pallas_call(
        kernel,
        out_shape=jax.ShapeDtypeStruct((2, T, BH, WC), jnp.float32),
        grid_spec=pltpu.PrefetchScalarGridSpec(
            num_scalar_prefetch=0,
            grid=(2, T),
            in_specs=[
                pl.BlockSpec((None, B, Hp, WpCin),
                             lambda d, t: (t_eff(d, t), 0, 0, 0)),
                pl.BlockSpec((None, K, WpCin, G), lambda d, t: (d, 0, 0, 0)),
                pl.BlockSpec((None, K, WpCo, G), lambda d, t: (d, 0, 0, 0)),
                pl.BlockSpec((None, 1, G), lambda d, t: (d, 0, 0)),
                pl.BlockSpec((None, BH, WC), lambda d, t: (d, 0, 0)),
                pl.BlockSpec((None, BH, WC), lambda d, t: (d, 0, 0)),
                pl.BlockSpec((None, BH, WC), lambda d, t: (d, 0, 0)),
            ],
            out_specs=pl.BlockSpec((None, None, BH, WC),
                                   lambda d, t: (d, t_eff(d, t), 0, 0)),
            scratch_shapes=[
                pltpu.VMEM((B, Hp, WpCo), _CONV_DTYPE),   # padded H state
                pltpu.VMEM((BH, WC), jnp.float32),        # cell state C
            ]),
        compiler_params=pltpu.CompilerParams(
            dimension_semantics=("parallel", "arbitrary"),
            vmem_limit_bytes=32 * 1024 * 1024),
    )(xpad, wxb, whb, bias, wci, wcf, wco)

    # (2, T, B*H, W*Cout) -> PyTorch layout.
    y = out.reshape(2, T, B, H, W, Cout)
    y = jnp.concatenate([y[0], y[1]], axis=-1)        # (T, B, H, W, 2*Cout)
    y = jnp.transpose(y, (1, 0, 4, 2, 3))             # (B, T, C, H, W)
    if not return_sequence:
        # torch.squeeze(output[:, -1, ...], dim=1) is a no-op for C > 1
        y = y[:, -1]                                  # (B, C, H, W)
    return y


# ----------------------------------------------------------------------------
# Pure-JAX reference (f32) for validation.
# ----------------------------------------------------------------------------
def _conv_lstm_ref(x_tbhwc, params, activation, padding):
    wx, wh, b, wci, wcf, wco = params
    T, B, H, W, Cin = x_tbhwc.shape
    Cout = wh.shape[2]
    act = jnp.tanh if activation == "tanh" else jax.nn.relu
    wcat = jnp.concatenate([wx, wh], axis=2)          # (K, K, Cin+Cout, 4*Cout)
    h = jnp.zeros((B, H, W, Cout), jnp.float32)
    c = jnp.zeros((B, H, W, Cout), jnp.float32)
    ys = []
    for t in range(T):
        inp = jnp.concatenate([x_tbhwc[t], h], axis=-1)
        conv = jax.lax.conv_general_dilated(
            inp, wcat, window_strides=(1, 1),
            padding=[(padding, padding), (padding, padding)],
            dimension_numbers=("NHWC", "HWIO", "NHWC")) + b
        i_c, f_c, g_c, o_c = jnp.split(conv, 4, axis=-1)
        i_g = jax.nn.sigmoid(i_c + wci[None] * c)
        f_g = jax.nn.sigmoid(f_c + wcf[None] * c)
        c = f_g * c + i_g * act(g_c)
        o_g = jax.nn.sigmoid(o_c + wco[None] * c)
        h = o_g * act(c)
        ys.append(h)
    return jnp.stack(ys)                               # (T, B, H, W, Cout)


def conv_blstm_reference(x_btchw, fwd_params, bwd_params, *, padding, activation):
    x = jnp.transpose(x_btchw, (1, 0, 3, 4, 2)).astype(jnp.float32)
    y_f = _conv_lstm_ref(x, fwd_params, activation, padding)
    y_b = _conv_lstm_ref(x[::-1], bwd_params, activation, padding)[::-1]
    y = jnp.concatenate([y_f, y_b], axis=-1)           # (T, B, H, W, 2*Cout)
    return jnp.transpose(y, (1, 0, 4, 2, 3))           # (B, T, C, H, W)


# ----------------------------------------------------------------------------
# Synthetic parameters (shapes consistent with the nn.Module).
# ----------------------------------------------------------------------------
def init_convlstm_params(key, in_channels, out_channels, kernel_size, frame_size):
    kx, kh, kb, k1, k2, k3 = jax.random.split(key, 6)
    K = kernel_size
    fan_in = (in_channels + out_channels) * K * K
    bound = 1.0 / (fan_in ** 0.5)
    wx = jax.random.uniform(kx, (K, K, in_channels, 4 * out_channels),
                            jnp.float32, -bound, bound)
    wh = jax.random.uniform(kh, (K, K, out_channels, 4 * out_channels),
                            jnp.float32, -bound, bound)
    b = jax.random.uniform(kb, (4 * out_channels,), jnp.float32, -bound, bound)
    Hh, Ww = frame_size
    wci = 0.1 * jax.random.normal(k1, (Hh, Ww, out_channels), jnp.float32)
    wcf = 0.1 * jax.random.normal(k2, (Hh, Ww, out_channels), jnp.float32)
    wco = 0.1 * jax.random.normal(k3, (Hh, Ww, out_channels), jnp.float32)
    return (wx, wh, b, wci, wcf, wco)


if __name__ == "__main__":
    key = jax.random.PRNGKey(0)
    k_x, k_f, k_b = jax.random.split(key, 3)

    # ConvBLSTM(in_channels=4, out_channels=32, kernel_size=3, padding=1,
    #           activation='tanh', frame_size=(16, 16), return_sequence=False)
    B, T, Cin, H, W = 2, 8, 4, 16, 16
    out_channels = 32
    half = out_channels // 2
    frame_size = (H, W)

    x = jax.random.normal(k_x, (B, T, Cin, H, W), jnp.float32)
    fwd_params = init_convlstm_params(k_f, Cin, half, 3, frame_size)
    bwd_params = init_convlstm_params(k_b, Cin, half, 3, frame_size)

    # Full-sequence run (validates both directions and the time alignment).
    y_seq = conv_blstm(x, fwd_params, bwd_params, return_sequence=True,
                       padding=1, activation="tanh")
    y_seq = jax.block_until_ready(y_seq)
    assert y_seq.shape == (B, T, out_channels, H, W), y_seq.shape

    y_ref = conv_blstm_reference(x, fwd_params, bwd_params,
                                 padding=1, activation="tanh")
    max_err = float(jnp.max(jnp.abs(y_seq - y_ref)))
    assert max_err < 0.1, f"kernel / reference mismatch: max abs err {max_err}"

    # Module default: return_sequence=False -> last time step only.
    y = conv_blstm(x, fwd_params, bwd_params, return_sequence=False,
                   padding=1, activation="tanh")
    y = jax.block_until_ready(y)
    assert y.shape == (B, out_channels, H, W), y.shape
    assert bool(jnp.all(jnp.isfinite(y)))
    print("KERNEL_OK")
</pallas_src>

<mosaic_0001>
module attributes {stable_mosaic.version = 11 : i64} {
  func.func @_conv_blstm_step_kernel(%arg0: i32, %arg1: i32, %arg2: memref<1x2x18x72xbf16, #tpu.memory_space<vmem>>, %arg3: memref<1x3x72x1024xbf16, #tpu.memory_space<vmem>>, %arg4: memref<1x3x288x1024xbf16, #tpu.memory_space<vmem>>, %arg5: memref<1x1x1024xf32, #tpu.memory_space<vmem>>, %arg6: memref<1x32x256xf32, #tpu.memory_space<vmem>>, %arg7: memref<1x32x256xf32, #tpu.memory_space<vmem>>, %arg8: memref<1x32x256xf32, #tpu.memory_space<vmem>>, %arg9: memref<1x1x32x256xf32, #tpu.memory_space<vmem>>, %arg10: memref<2x18x288xbf16, #tpu.memory_space<vmem>>, %arg11: memref<32x256xf32, #tpu.memory_space<vmem>>) attributes {dimension_semantics = [#tpu.dimension_semantics<parallel>, #tpu.dimension_semantics<arbitrary>], iteration_bounds = array<i64: 2, 8>, scalar_prefetch = 0 : i64, scratch_operands = 2 : i64, tpu.core_type = #tpu.core_type<tc>, window_params = [{transform_indices = @transform_0, window_bounds = array<i64: 1, 2, 18, 72>}, {transform_indices = @transform_1, window_bounds = array<i64: 1, 3, 72, 1024>}, {transform_indices = @transform_2, window_bounds = array<i64: 1, 3, 288, 1024>}, {transform_indices = @transform_3, window_bounds = array<i64: 1, 1, 1024>}, {transform_indices = @transform_4, window_bounds = array<i64: 1, 32, 256>}, {transform_indices = @transform_5, window_bounds = array<i64: 1, 32, 256>}, {transform_indices = @transform_6, window_bounds = array<i64: 1, 32, 256>}, {transform_indices = @transform_7, window_bounds = array<i64: 1, 1, 32, 256>}]} {
    %c0_i32 = arith.constant 0 : i32
    %0 = arith.cmpi eq, %arg1, %c0_i32 : i32
    %1 = arith.extui %0 : i1 to i32
    %c0_i32_0 = arith.constant 0 : i32
    %2 = arith.cmpi ne, %1, %c0_i32_0 : i32
    scf.if %2 {
      %cst_73 = arith.constant 0.000000e+00 : bf16
      %90 = vector.broadcast %cst_73 : bf16 to vector<2x18x288xbf16>
      %c0_74 = arith.constant 0 : index
      %c0_75 = arith.constant 0 : index
      %c0_76 = arith.constant 0 : index
      %91 = vector.load %arg10[%c0_74, %c0_75, %c0_76] : memref<2x18x288xbf16, #tpu.memory_space<vmem>>, vector<2x18x288xbf16>
      tpu.vector_store %arg10[%c0_74, %c0_75, %c0_76], %90 {strides = array<i32>} : memref<2x18x288xbf16, #tpu.memory_space<vmem>>, vector<2x18x288xbf16>,
      %cst_77 = arith.constant 0.000000e+00 : f32
      %92 = vector.broadcast %cst_77 : f32 to vector<32x256xf32>
      %c0_78 = arith.constant 0 : index
      %c0_79 = arith.constant 0 : index
      %93 = vector.load %arg11[%c0_78, %c0_79] : memref<32x256xf32, #tpu.memory_space<vmem>>, vector<32x256xf32>
      tpu.vector_store %arg11[%c0_78, %c0_79], %92 {strides = array<i32>} : memref<32x256xf32, #tpu.memory_space<vmem>>, vector<32x256xf32>,
    } else {
    }
    %c0 = arith.constant 0 : index
    %c0_1 = arith.constant 0 : index
    %c0_2 = arith.constant 0 : index
    %3 = vector.load %arg5[%c0, %c0_1, %c0_2] : memref<1x1x1024xf32, #tpu.memory_space<vmem>>, vector<1x1x1024xf32>
    %4 = vector.shape_cast %3 : vector<1x1x1024xf32> to vector<1x1024xf32>
    %c0_3 = arith.constant 0 : index
    %c0_4 = arith.constant 0 : index
    %c0_5 = arith.constant 0 : index
    %c0_6 = arith.constant 0 : index
    %5 = vector.load %arg2[%c0_3, %c0_4, %c0_5, %c0_6] : memref<1x2x18x72xbf16, #tpu.memory_space<vmem>>, vector<1x2x16x72xbf16>
    %6 = vector.shape_cast %5 : vector<1x2x16x72xbf16> to vector<2x16x72xbf16>
    %7 = vector.shape_cast %6 : vector<2x16x72xbf16> to vector<32x72xbf16>
    %c0_7 = arith.constant 0 : index
    %c0_8 = arith.constant 0 : index
    %c0_9 = arith.constant 0 : index
    %8 = vector.load %arg10[%c0_7, %c0_8, %c0_9] : memref<2x18x288xbf16, #tpu.memory_space<vmem>>, vector<2x16x288xbf16>
    %9 = vector.shape_cast %8 : vector<2x16x288xbf16> to vector<32x288xbf16>
    %c0_10 = arith.constant 0 : index
    %c0_11 = arith.constant 0 : index
    %c0_12 = arith.constant 0 : index
    %c0_13 = arith.constant 0 : index
    %10 = vector.load %arg3[%c0_10, %c0_11, %c0_12, %c0_13] : memref<1x3x72x1024xbf16, #tpu.memory_space<vmem>>, vector<1x1x72x1024xbf16>
    %11 = vector.shape_cast %10 : vector<1x1x72x1024xbf16> to vector<72x1024xbf16>
    %cst = arith.constant dense<0.000000e+00> : vector<32x1024xf32>
    %12 = tpu.matmul %7, %11, %cst {dimension_numbers = #tpu.dot_dimension_numbers<[1], [0], [0], [1], [0, 0, 1, 1], [], []>} : vector<32x72xbf16>, vector<72x1024xbf16>, vector<32x1024xf32> -> vector<32x1024xf32>
    %13 = vector.broadcast %4 : vector<1x1024xf32> to vector<32x1024xf32>
    %14 = arith.addf %13, %12 : vector<32x1024xf32>
    %c0_14 = arith.constant 0 : index
    %c0_15 = arith.constant 0 : index
    %c0_16 = arith.constant 0 : index
    %c0_17 = arith.constant 0 : index
    %15 = vector.load %arg4[%c0_14, %c0_15, %c0_16, %c0_17] : memref<1x3x288x1024xbf16, #tpu.memory_space<vmem>>, vector<1x1x288x1024xbf16>
    %16 = vector.shape_cast %15 : vector<1x1x288x1024xbf16> to vector<288x1024xbf16>
    %cst_18 = arith.constant dense<0.000000e+00> : vector<32x1024xf32>
    %17 = tpu.matmul %9, %16, %cst_18 {dimension_numbers = #tpu.dot_dimension_numbers<[1], [0], [0], [1], [0, 0, 1, 1], [], []>} : vector<32x288xbf16>, vector<288x1024xbf16>, vector<32x1024xf32> -> vector<32x1024xf32>
    %18 = arith.addf %14, %17 : vector<32x1024xf32>
    %c0_19 = arith.constant 0 : index
    %c0_20 = arith.constant 0 : index
    %c1 = arith.constant 1 : index
    %c0_21 = arith.constant 0 : index
    %19 = vector.load %arg2[%c0_19, %c0_20, %c1, %c0_21] : memref<1x2x18x72xbf16, #tpu.memory_space<vmem>>, vector<1x2x16x72xbf16>
    %20 = vector.shape_cast %19 : vector<1x2x16x72xbf16> to vector<2x16x72xbf16>
    %21 = vector.shape_cast %20 : vector<2x16x72xbf16> to vector<32x72xbf16>
    %c0_22 = arith.constant 0 : index
    %c1_23 = arith.constant 1 : index
    %c0_24 = arith.constant 0 : index
    %22 = vector.load %arg10[%c0_22, %c1_23, %c0_24] : memref<2x18x288xbf16, #tpu.memory_space<vmem>>, vector<2x16x288xbf16>
    %23 = vector.shape_cast %22 : vector<2x16x288xbf16> to vector<32x288xbf16>
    %c0_25 = arith.constant 0 : index
    %c1_26 = arith.constant 1 : index
    %c0_27 = arith.constant 0 : index
    %c0_28 = arith.constant 0 : index
    %24 = vector.load %arg3[%c0_25, %c1_26, %c0_27, %c0_28] : memref<1x3x72x1024xbf16, #tpu.memory_space<vmem>>, vector<1x1x72x1024xbf16>
    %25 = vector.shape_cast %24 : vector<1x1x72x1024xbf16> to vector<72x1024xbf16>
    %cst_29 = arith.constant dense<0.000000e+00> : vector<32x1024xf32>
    %26 = tpu.matmul %21, %25, %cst_29 {dimension_numbers = #tpu.dot_dimension_numbers<[1], [0], [0], [1], [0, 0, 1, 1], [], []>} : vector<32x72xbf16>, vector<72x1024xbf16>, vector<32x1024xf32> -> vector<32x1024xf32>
    %27 = arith.addf %18, %26 : vector<32x1024xf32>
    %c0_30 = arith.constant 0 : index
    %c1_31 = arith.constant 1 : index
    %c0_32 = arith.constant 0 : index
    %c0_33 = arith.constant 0 : index
    %28 = vector.load %arg4[%c0_30, %c1_31, %c0_32, %c0_33] : memref<1x3x288x1024xbf16, #tpu.memory_space<vmem>>, vector<1x1x288x1024xbf16>
    %29 = vector.shape_cast %28 : vector<1x1x288x1024xbf16> to vector<288x1024xbf16>
    %cst_34 = arith.constant dense<0.000000e+00> : vector<32x1024xf32>
    %30 = tpu.matmul %23, %29, %cst_34 {dimension_numbers = #tpu.dot_dimension_numbers<[1], [0], [0], [1], [0, 0, 1, 1], [], []>} : vector<32x288xbf16>, vector<288x1024xbf16>, vector<32x1024xf32> -> vector<32x1024xf32>
    %31 = arith.addf %27, %30 : vector<32x1024xf32>
    %c0_35 = arith.constant 0 : index
    %c0_36 = arith.constant 0 : index
    %c2 = arith.constant 2 : index
    %c0_37 = arith.constant 0 : index
    %32 = vector.load %arg2[%c0_35, %c0_36, %c2, %c0_37] : memref<1x2x18x72xbf16, #tpu.memory_space<vmem>>, vector<1x2x16x72xbf16>
    %33 = vector.shape_cast %32 : vector<1x2x16x72xbf16> to vector<2x16x72xbf16>
    %34 = vector.shape_cast %33 : vector<2x16x72xbf16> to vector<32x72xbf16>
    %c0_38 = arith.constant 0 : index
    %c2_39 = arith.constant 2 : index
    %c0_40 = arith.constant 0 : index
    %35 = vector.load %arg10[%c0_38, %c2_39, %c0_40] : memref<2x18x288xbf16, #tpu.memory_space<vmem>>, vector<2x16x288xbf16>
    %36 = vector.shape_cast %35 : vector<2x16x288xbf16> to vector<32x288xbf16>
    %c0_41 = arith.constant 0 : index
    %c2_42 = arith.constant 2 : index
    %c0_43 = arith.constant 0 : index
    %c0_44 = arith.constant 0 : index
    %37 = vector.load %arg3[%c0_41, %c2_42, %c0_43, %c0_44] : memref<1x3x72x1024xbf16, #tpu.memory_space<vmem>>, vector<1x1x72x1024xbf16>
    %38 = vector.shape_cast %37 : vector<1x1x72x1024xbf16> to vector<72x1024xbf16>
    %cst_45 = arith.constant dense<0.000000e+00> : vector<32x1024xf32>
    %39 = tpu.matmul %34, %38, %cst_45 {dimension_numbers = #tpu.dot_dimension_numbers<[1], [0], [0], [1], [0, 0, 1, 1], [], []>} : vector<32x72xbf16>, vector<72x1024xbf16>, vector<32x1024xf32> -> vector<32x1024xf32>
    %40 = arith.addf %31, %39 : vector<32x1024xf32>
    %c0_46 = arith.constant 0 : index
    %c2_47 = arith.constant 2 : index
    %c0_48 = arith.constant 0 : index
    %c0_49 = arith.constant 0 : index
    %41 = vector.load %arg4[%c0_46, %c2_47, %c0_48, %c0_49] : memref<1x3x288x1024xbf16, #tpu.memory_space<vmem>>, vector<1x1x288x1024xbf16>
    %42 = vector.shape_cast %41 : vector<1x1x288x1024xbf16> to vector<288x1024xbf16>
    %cst_50 = arith.constant dense<0.000000e+00> : vector<32x1024xf32>
    %43 = tpu.matmul %36, %42, %cst_50 {dimension_numbers = #tpu.dot_dimension_numbers<[1], [0], [0], [1], [0, 0, 1, 1], [], []>} : vector<32x288xbf16>, vector<288x1024xbf16>, vector<32x1024xf32> -> vector<32x1024xf32>
    %44 = arith.addf %40, %43 : vector<32x1024xf32>
    %c0_51 = arith.constant 0 : index
    %c0_52 = arith.constant 0 : index
    %45 = vector.load %arg11[%c0_51, %c0_52] : memref<32x256xf32, #tpu.memory_space<vmem>>, vector<32x256xf32>
    %46 = vector.extract_strided_slice %44 {offsets = [0, 0], sizes = [32, 256], strides = [1, 1]} : vector<32x1024xf32> to vector<32x256xf32>
    %c0_53 = arith.constant 0 : index
    %c0_54 = arith.constant 0 : index
    %c0_55 = arith.constant 0 : index
    %47 = vector.load %arg6[%c0_53, %c0_54, %c0_55] : memref<1x32x256xf32, #tpu.memory_space<vmem>>, vector<1x32x256xf32>
    %48 = vector.shape_cast %47 : vector<1x32x256xf32> to vector<32x256xf32>
    %49 = arith.mulf %48, %45 : vector<32x256xf32>
    %50 = arith.addf %46, %49 : vector<32x256xf32>
    %51 = arith.negf %50 : vector<32x256xf32>
    %52 = math.exp %51 : vector<32x256xf32>
    %cst_56 = arith.constant 1.000000e+00 : f32
    %53 = vector.broadcast %cst_56 : f32 to vector<32x256xf32>
    %54 = arith.addf %53, %52 : vector<32x256xf32>
    %55 = arith.divf %53, %54 : vector<32x256xf32>
    %56 = vector.extract_strided_slice %44 {offsets = [0, 256], sizes = [32, 256], strides = [1, 1]} : vector<32x1024xf32> to vector<32x256xf32>
    %c0_57 = arith.constant 0 : index
    %c0_58 = arith.constant 0 : index
    %c0_59 = arith.constant 0 : index
    %57 = vector.load %arg7[%c0_57, %c0_58, %c0_59] : memref<1x32x256xf32, #tpu.memory_space<vmem>>, vector<1x32x256xf32>
    %58 = vector.shape_cast %57 : vector<1x32x256xf32> to vector<32x256xf32>
    %59 = arith.mulf %58, %45 : vector<32x256xf32>
    %60 = arith.addf %56, %59 : vector<32x256xf32>
    %61 = arith.negf %60 : vector<32x256xf32>
    %62 = math.exp %61 : vector<32x256xf32>
    %cst_60 = arith.constant 1.000000e+00 : f32
    %63 = vector.broadcast %cst_60 : f32 to vector<32x256xf32>
    %64 = arith.addf %63, %62 : vector<32x256xf32>
    %65 = arith.divf %63, %64 : vector<32x256xf32>
    %66 = arith.mulf %65, %45 : vector<32x256xf32>
    %67 = vector.extract_strided_slice %44 {offsets = [0, 512], sizes = [32, 256], strides = [1, 1]} : vector<32x1024xf32> to vector<32x256xf32>
    %68 = math.tanh %67 : vector<32x256xf32>
    %69 = arith.mulf %55, %68 : vector<32x256xf32>
    %70 = arith.addf %66, %69 : vector<32x256xf32>
    %71 = vector.extract_strided_slice %44 {offsets = [0, 768], sizes = [32, 256], strides = [1, 1]} : vector<32x1024xf32> to vector<32x256xf32>
    %c0_61 = arith.constant 0 : index
    %c0_62 = arith.constant 0 : index
    %c0_63 = arith.constant 0 : index
    %72 = vector.load %arg8[%c0_61, %c0_62, %c0_63] : memref<1x32x256xf32, #tpu.memory_space<vmem>>, vector<1x32x256xf32>
    %73 = vector.shape_cast %72 : vector<1x32x256xf32> to vector<32x256xf32>
    %74 = arith.mulf %73, %70 : vector<32x256xf32>
    %75 = arith.addf %71, %74 : vector<32x256xf32>
    %76 = arith.negf %75 : vector<32x256xf32>
    %77 = math.exp %76 : vector<32x256xf32>
    %cst_64 = arith.constant 1.000000e+00 : f32
    %78 = vector.broadcast %cst_64 : f32 to vector<32x256xf32>
    %79 = arith.addf %78, %77 : vector<32x256xf32>
    %80 = arith.divf %78, %79 : vector<32x256xf32>
    %81 = math.tanh %70 : vector<32x256xf32>
    %82 = arith.mulf %80, %81 : vector<32x256xf32>
    %c0_65 = arith.constant 0 : index
    %c0_66 = arith.constant 0 : index
    %83 = vector.load %arg11[%c0_65, %c0_66] : memref<32x256xf32, #tpu.memory_space<vmem>>, vector<32x256xf32>
    tpu.vector_store %arg11[%c0_65, %c0_66], %70 {strides = array<i32>} : memref<32x256xf32, #tpu.memory_space<vmem>>, vector<32x256xf32>,
    %c0_67 = arith.constant 0 : index
    %c0_68 = arith.constant 0 : index
    %c0_69 = arith.constant 0 : index
    %c0_70 = arith.constant 0 : index
    %84 = vector.load %arg9[%c0_67, %c0_68, %c0_69, %c0_70] : memref<1x1x32x256xf32, #tpu.memory_space<vmem>>, vector<1x1x32x256xf32>
    %85 = vector.shape_cast %84 : vector<1x1x32x256xf32> to vector<32x256xf32>
    %86 = vector.shape_cast %82 : vector<32x256xf32> to vector<1x1x32x256xf32>
    tpu.vector_store %arg9[%c0_67, %c0_68, %c0_69, %c0_70], %86 {strides = array<i32>} : memref<1x1x32x256xf32, #tpu.memory_space<vmem>>, vector<1x1x32x256xf32>,
    %87 = vector.shape_cast %82 : vector<32x256xf32> to vector<2x16x256xf32>
    %88 = arith.truncf %87 : vector<2x16x256xf32> to vector<2x16x256xbf16>
    %c0_71 = arith.constant 0 : index
    %c1_72 = arith.constant 1 : index
    %c16 = arith.constant 16 : index
    %89 = vector.load %arg10[%c0_71, %c1_72, %c16] : memref<2x18x288xbf16, #tpu.memory_space<vmem>>, vector<2x16x256xbf16>
    tpu.vector_store %arg10[%c0_71, %c1_72, %c16], %88 {strides = array<i32>} : memref<2x18x288xbf16, #tpu.memory_space<vmem>>, vector<2x16x256xbf16>,
    return
  }
  func.func @transform_0(%arg0: i32, %arg1: i32) -> (i32, i32, i32, i32) {
    %c2_i32 = arith.constant 2 : i32
    %0 = arith.muli %c2_i32, %arg1 : i32
    %c7_i32 = arith.constant 7 : i32
    %1 = arith.subi %c7_i32, %0 : i32
    %2 = arith.muli %arg0, %1 : i32
    %3 = arith.addi %arg1, %2 : i32
    %c0_i32 = arith.constant 0 : i32
    %c0_i32_0 = arith.constant 0 : i32
    %c0_i32_1 = arith.constant 0 : i32
    %c0_i32_2 = arith.constant 0 : i32
    return %3, %c0_i32, %c0_i32_0, %c0_i32_1 : i32, i32, i32, i32
  }
  func.func @transform_1(%arg0: i32, %arg1: i32) -> (i32, i32, i32, i32) {
    %c0_i32 = arith.constant 0 : i32
    %c0_i32_0 = arith.constant 0 : i32
    %c0_i32_1 = arith.constant 0 : i32
    %c0_i32_2 = arith.constant 0 : i32
    return %arg0, %c0_i32, %c0_i32_0, %c0_i32_1 : i32, i32, i32, i32
  }
  func.func @transform_2(%arg0: i32, %arg1: i32) -> (i32, i32, i32, i32) {
    %c0_i32 = arith.constant 0 : i32
    %c0_i32_0 = arith.constant 0 : i32
    %c0_i32_1 = arith.constant 0 : i32
    %c0_i32_2 = arith.constant 0 : i32
    return %arg0, %c0_i32, %c0_i32_0, %c0_i32_1 : i32, i32, i32, i32
  }
  func.func @transform_3(%arg0: i32, %arg1: i32) -> (i32, i32, i32) {
    %c0_i32 = arith.constant 0 : i32
    %c0_i32_0 = arith.constant 0 : i32
    %c0_i32_1 = arith.constant 0 : i32
    return %arg0, %c0_i32, %c0_i32_0 : i32, i32, i32
  }
  func.func @transform_4(%arg0: i32, %arg1: i32) -> (i32, i32, i32) {
    %c0_i32 = arith.constant 0 : i32
    %c0_i32_0 = arith.constant 0 : i32
    %c0_i32_1 = arith.constant 0 : i32
    return %arg0, %c0_i32, %c0_i32_0 : i32, i32, i32
  }
  func.func @transform_5(%arg0: i32, %arg1: i32) -> (i32, i32, i32) {
    %c0_i32 = arith.constant 0 : i32
    %c0_i32_0 = arith.constant 0 : i32
    %c0_i32_1 = arith.constant 0 : i32
    return %arg0, %c0_i32, %c0_i32_0 : i32, i32, i32
  }
  func.func @transform_6(%arg0: i32, %arg1: i32) -> (i32, i32, i32) {
    %c0_i32 = arith.constant 0 : i32
    %c0_i32_0 = arith.constant 0 : i32
    %c0_i32_1 = arith.constant 0 : i32
    return %arg0, %c0_i32, %c0_i32_0 : i32, i32, i32
  }
  func.func @transform_7(%arg0: i32, %arg1: i32) -> (i32, i32, i32, i32) {
    %c2_i32 = arith.constant 2 : i32
    %0 = arith.muli %c2_i32, %arg1 : i32
    %c7_i32 = arith.constant 7 : i32
    %1 = arith.subi %c7_i32, %0 : i32
    %2 = arith.muli %arg0, %1 : i32
    %3 = arith.addi %arg1, %2 : i32
    %c0_i32 = arith.constant 0 : i32
    %c0_i32_0 = arith.constant 0 : i32
    %c0_i32_1 = arith.constant 0 : i32
    return %arg0, %3, %c0_i32, %c0_i32_0 : i32, i32, i32, i32
  }
}

</mosaic_0001>

<bundles_post_ra>
// kernel: tpu_custom_call.1
= control target key start
LH: loop header
LB: loop body
LE: loop exit
PB: predicated region body
PF: predicated region fallthrough
CT: control target
= control target key end

     0   :  { %s10830_s0 = inlined_call_operand.vmem [shape: bf16[8,2,18,72], index: 0, kind: input, shape index: {}]   ;;  %s10831_s1 = inlined_call_operand.hbm [shape: bf16[2,3,72,1024], index: 1, kind: input, shape index: {}]   ;;  %s10832_s2 = inlined_call_operand.hbm [shape: bf16[2,3,288,1024], index: 2, kind: input, shape index: {}]   ;;  %s10833_s3 = inlined_call_operand.hbm [shape: f32[2,1,1024], index: 3, kind: input, shape index: {}]   ;;  %s10834_s4 = inlined_call_operand.hbm [shape: f32[2,32,256], index: 4, kind: input, shape index: {}]   ;;  %s10835_s5 = inlined_call_operand.hbm [shape: f32[2,32,256], index: 5, kind: input, shape index: {}]   ;;  %s10836_s6 = inlined_call_operand.hbm [shape: f32[2,32,256], index: 6, kind: input, shape index: {}]   ;;  %s10837_s7 = inlined_call_operand.hbm [shape: f32[2,8,32,256], index: 7, kind: output, shape index: {}]  }
   0x1   :  { %10860 = sst [smem:[#allocation35_spill]] %s10830_s0 }
   0x2   :  { %10861 = sst [smem:[#allocation36_spill]] %s10832_s2 }
   0x3   :  { %10862 = sst [smem:[#allocation37_spill]] %s10834_s4 }
   0x4   :  { %10863 = sst [smem:[#allocation38_spill]] %s10837_s7 }
   0x5   :  { %12 = vsyncpa [#allocation5], 0 }
   0x6   :  { %14 = vsyncpa [#allocation5 + $0x1], 0 }
   0x7   :  { %15 = vsyncpa [#allocation8], 0 }
   0x8   :  { %17 = vsyncpa [#allocation8 + $0x1], 0 }
   0x9   :  { %18 = vsyncpa [#allocation11], 0 }
   0xa   :  { %20 = vsyncpa [#allocation11 + $0x1], 0 }
   0xb   :  { %21 = vsyncpa [#allocation14], 0 }
   0xc   :  { %23 = vsyncpa [#allocation14 + $0x1], 0 }
   0xd   :  { %24 = vsyncpa [#allocation6], 0 }
   0xe   :  { %26 = vsyncpa [#allocation6 + $0x1], 0  ;;  %s9142_s24 = smov 0   ;;  %s9144_s25 = smov 0  }
   0xf   :  { %s9146_s26 = smov 0   ;;  %s9148_s27 = smov 0  }
  0x10   :  { %s9150_s28 = smov 0   ;;  %s9152_s29 = smov 0  }
  0x11   :  { %s9154_s30 = smov 0   ;;  %s9156_s8 = smov 0  }
  0x12   :  { %s9158_s9 = smov 0   ;;  %s9160_s10 = smov 0  }
  0x13   :  { %s9162_s11 = smov 0  }
  0x14 LB: > { %10864 = sst [smem:[#allocation21_spill]] %s9044_s24  ;;  %s9196_s12 = sadd.s32 4294967295, %s9084_s11   ;;  %s9084_s11 = sphi %s9162_s11, %s32_s11   ;;  %s9080_s10 = sphi %s9160_s10, %s10940_s10   ;;  %s9076_s9 = sphi %s9158_s9, %s10933_s9   ;;  %s9072_s8 = sphi %s9156_s8, %s10939_s8   ;;  %s9068_s30 = sphi %s9154_s30, %s10932_s30   ;;  %s9064_s29 = sphi %s9152_s29, %s10931_s29   ;;  %s9060_s28 = sphi %s9150_s28, %s10938_s28   ;;  %s9056_s27 = sphi %s9148_s27, %s10937_s27   ;;  %s9052_s26 = sphi %s9146_s26, %s10929_s26   ;;  %s9048_s25 = sphi %s9144_s25, %s10936_s25   ;;  %s9044_s24 = sphi %s9142_s24, %s10935_s24  }
  0x15   : > { %10865 = sst [smem:[#allocation22_spill]] %s9052_s26  ;;  %s41_s14 = sadd.s32 1, %s9076_s9 }
  0x16   : > { %10866 = sst [smem:[#allocation23_spill]] %s9064_s29  ;;  %s44_s15 = sadd.s32 1, %s9080_s10 }
  0x17   : > { %10867 = sst [smem:[#allocation24_spill]] %s9068_s30  ;;  %p42_p0 = scmp.ge.s32.totalorder %s41_s14, 8 }
  0x18   : > { %10868 = sst [smem:[#allocation25_spill]] %s9072_s8  ;;  %s85_s16 = sadd.s32 1, %s9064_s29 }
  0x19   : > { %10869 = sst [smem:[#allocation26_spill]] %s9076_s9  ;;  %p92_p1 = scmp.ne.s32.totalorder %s9064_s29, %s9060_s28 }
  0x1a   : > { %10870 = sst [smem:[#allocation27_spill]] %s9084_s11  ;;  %p93_p2 = scmp.eq.s32.totalorder %s9084_s11, 0 }
  0x1b   : > { %s10942_s14 = smov (%p42_p0, %s41_s14), 0  ;;  %s10944_s15 = smov (!%p42_p0, %s44_s15), %s9080_s10 }
  0x1c   : > { %10871 = sst [smem:[#allocation28_spill]] %s10942_s14  ;;  %p9208_p3 = por %p93_p2, %p92_p1 }
  0x1d   : > { %p98_p4 = scmp.ne.s32.totalorder %s9060_s28, %s9056_s27  ;;  %p46_p5 = scmp.ge.s32.totalorder %s10944_s15, 2 }
  0x1e   : > { %p99_p6 = scmp.eq.s32.totalorder %s9196_s12, 0  ;;  %s7093_s18 = sshll.u32 %s9076_s9, 1 }
  0x1f   : > { %s7094_s19 = sshll.u32 %s10942_s14, 1  ;;  %s10946_s15 = smov (%p46_p5, %s10944_s15), 0 }
  0x20   : > { %10873 = sst [smem:[#allocation29_spill]] %s10946_s15  ;;  %p9218_p7 = por %p99_p6, %p98_p4 }
  0x21   : > { %s239_s21 = ssub.s32 7, %s7093_s18  ;;  %s82_s22 = ssub.s32 %s9080_s10, %s10946_s15 }
  0x22   : > { %s10874_s20 = scalar_select %p9218_p7, 1, 0 }
  0x23   : > { %s240_s23 = smul.u32 %s9080_s10, %s239_s21  ;;  %p83_p8 = scmp.eq.s32.totalorder %s82_s22, 0 }
  0x24   : > { %10875 = sst [smem:[#allocation30_spill]] %s10874_s20  ;;  %s243_s27 = ssub.s32 7, %s7094_s19 }
  0x25   : > { %s241_s13 = sadd.s32 %s9076_s9, %s240_s23  ;;  %s244_s7 = smul.u32 %s243_s27, %s10946_s15 }
  0x26   : > { %s9228_s0 = scalar_select %p83_p8, %s9064_s29, %s85_s16  }
  0x27   : > { %s245_s8 = sadd.s32 %s244_s7, %s10942_s14  ;;  %s251_s30 = sadd.s32 1, %s9052_s26 }
  0x28   : > { %10876 = sst [smem:[#allocation31_spill]] %s9228_s0  ;;  %s247_s20 = ssub.s32 %s241_s13, %s245_s8 }
  0x29   : > { %p261_p9 = scmp.ne.s32.totalorder %s9052_s26, %s9048_s25  ;;  %s248_s18 = sor.u32 %s247_s20, %s82_s22 }
  0x2a   : > { %p262_p10 = scmp.eq.s32.totalorder %s9196_s12, 15  ;;  %p249_p11 = scmp.eq.s32.totalorder %s248_s18, 0 }
  0x2b   : > { %p267_p12 = scmp.ne.s32.totalorder %s9048_s25, %s9044_s24  ;;  %s10879_s21 = sadd.s32 4294967294, %s9084_s11  }
  0x2c   : > { %p9237_p13 = por %p262_p10, %p261_p9  ;;  %p268_p0 = scmp.eq.s32.totalorder %s10879_s21, 15 }
  0x2d   : > { %s9244_s16 = scalar_select %p249_p11, %s9052_s26, %s251_s30  }
  0x2e   : > { %s10877_s19 = scalar_select %p9237_p13, 1, 0 }
  0x2f   : > { %10880 = sst [smem:[#allocation33_spill]] %s9244_s16  ;;  %p9246_p1 = por %p268_p0, %p267_p12 }
  0x30   : > { %10878 = sst [smem:[#allocation32_spill]] %s10877_s19  ;;  %p8497_p2 = scmp.lt.s32.totalorder %s9084_s11, 16 }
  0x31   : > { %s10881_s7 = scalar_select %p9246_p1, 1, 0 }
  0x32   : > { %s9252_s8 = sand.u32 1, %s9064_s29   ;;  %p9256_p4 = pnand %p8497_p2, %p9208_p3 }
  0x33   : > { %10882 = sst [smem:[#allocation34_spill]] %s10881_s7  ;;  %s10845_s20 = sand.u32 1, %s9084_s11  }
  0x34   : > { %s10883_s13 = scalar_select %p9256_p4, 1, 0 }
  0x35   : > { %s8455_s22 = smul.u32 3456, %s9252_s8  ;;  %s10884_s2 = sld [smem:[#allocation36_spill]] }
  0x36   : > { %s8456_s23 = smul.u32 55296, %s9080_s10  ;;  %s9274_s15 = scalar_lea.sflag [#allocation8], %s10845_s20 }
  0x37   : > { %s329_s17 = scalar_lea.vmem [#allocation7], %s8455_s22  ;;  %p9280_p8 = pneg %p9256_p4 }
  0x38   : > { %s336_s21 = sshll.u32 %s329_s17, 4  ;;  %s9269_s21 = int_to_ptr.vmem [resolvable:$true] %s336_s21 }
  0x3b   : > { %s9267_s18 = scalar_lea.hbm %s10884_s2, %s8456_s23  ;;  %s8775_s30 = scalar_lea.hbm %s10884_s2, 110592 }
  0x3c   : > { %s8770_s14 = scalar_lea.hbm %s9267_s18, 55296  ;;  %p8776_p11 = scmp.lt.u32.totalorder %s9267_s18, %s10884_s2 }
  0x3d   : > { %p8771_p6 = scmp.ne.s32.totalorder %s9267_s18, %s8770_s14  ;;  %p8777_p12 = scmp.lt.u32.totalorder %s8775_s30, %s8770_s14 }
  0x3e   : > { %p8779_p2 = scmp.lt.u32.totalorder %s8770_s14, %s9267_s18 }
  0x3f   : > { %p8773_p9 = pnand %p9280_p8, %p8771_p6  ;;  %p8778_p0 = por %p8777_p12, %p8776_p11 }
  0x41   : > { %p8774_p10 = pneg %p8773_p9  ;;  %p8780_p5 = por %p8779_p2, %p8778_p0 }
  0x43   : > { %p8781_p3 = pnand %p8780_p5, %p8774_p10 }
  0x45   : > { %8784 = shalt.err (!%p8781_p3)
}
  0x46   : > { %s8785_s20 = scalar_lea.vmem %s9269_s21, 55296  ;;  %s9086_s23 = smov [#allocation7]  }
  0x47   : > { %p8786_p6 = scmp.ne.s32.totalorder %s9269_s21, %s8785_s20  ;;  %s8790_s22 = sshll.u32 %s9086_s23, 4  ;;  %s8791_s22 = int_to_ptr.vmem [resolvable:$false] %s8790_s22 }
  0x48   : > { %s8792_s27 = scalar_lea.vmem %s8791_s22, 110592  ;;  %p8793_p13 = scmp.lt.s32.totalorder %s9269_s21, %s8791_s22 }
  0x49   : > { %p8788_p9 = pnand %p8786_p6, %p9280_p8  ;;  %p8794_p7 = scmp.lt.s32.totalorder %s8792_s27, %s8785_s20 }
  0x4b   : > { %p8789_p1 = pneg %p8788_p9  ;;  %p8795_p11 = por %p8794_p7, %p8793_p13 }
  0x4d   : > { %p8796_p12 = pnand %p8795_p11, %p8789_p1 }
  0x4f   : > { %8799 = shalt.err (!%p8796_p12)
}
  0x50   : > { %s10848_s14 = smov 512   ;;  %s10849_s30 = smov 32  }
  0x51   : > { %8480 = dma.hbm_to_vmem [thread:$0]  (!%p9256_p4), %s9267_s18, 55296, %s9269_s21, %s9274_s15, %s10848_s14, %s10848_s14, %s10849_s30  }
  0x52   : > { %p10886_p7 = scmp.lt.s32.totalorder %s9084_s11, 17  ;;  %p10887_p13 = scmp.ge.s32.totalorder %s9084_s11, 1 }
  0x53   : > { %s9316_s17 = sshll.u32 %s9252_s8, 6  ;;  %s9319_s23 = sshll.u32 %s9080_s10, 10 }
  0x54   : > { %p9311_p1 = pnand %p10887_p13, %p10886_p7  ;;  %s10889_s4 = sld [smem:[#allocation37_spill]] }
  0x55   : > { %s369_s18 = scalar_lea.vmem [#allocation10], %s9316_s17  ;;  %s10890_s14 = sand.u32 1, %s9084_s11  }
  0x56   : > { %s10888_s20 = scalar_select %p9311_p1, 1, 0 }
  0x57   : > { %s376_s21 = sshll.u32 %s369_s18, 4  ;;  %s9332_s30 = scalar_lea.sflag [#allocation11], %s10890_s14  ;;  %s9328_s21 = int_to_ptr.vmem [resolvable:$true] %s376_s21 }
  0x5a   : > { %s9325_s2 = scalar_lea.hbm %s10889_s4, %s9319_s23  ;;  %s8805_s27 = scalar_lea.hbm %s10889_s4, 2048 }
  0x5b   : > { %s8800_s0 = scalar_lea.hbm %s9325_s2, 1024  ;;  %p8806_p0 = scmp.lt.u32.totalorder %s9325_s2, %s10889_s4 }
  0x5c   : > { %p8801_p5 = scmp.ne.s32.totalorder %s9325_s2, %s8800_s0  ;;  %p8807_p2 = scmp.lt.u32.totalorder %s8805_s27, %s8800_s0 }
  0x5d   : > { %p8809_p9 = scmp.lt.u32.totalorder %s8800_s0, %s9325_s2 }
  0x5e   : > { %p8803_p3 = pnand %p8801_p5, %p9280_p8  ;;  %p8808_p6 = por %p8807_p2, %p8806_p0 }
  0x60   : > { %p8804_p10 = pneg %p8803_p3  ;;  %p8810_p11 = por %p8809_p9, %p8808_p6 }
  0x62   : > { %p8811_p12 = pnand %p8810_p11, %p8804_p10 }
  0x64   : > { %8814 = shalt.err (!%p8811_p12)
}
  0x65   : > { %s8815_s14 = scalar_lea.vmem %s9328_s21, 1024  ;;  %s9089_s29 = smov [#allocation10]  }
  0x66   : > { %p8816_p7 = scmp.ne.s32.totalorder %s9328_s21, %s8815_s14  ;;  %s8820_s18 = sshll.u32 %s9089_s29, 4  ;;  %s8821_s18 = int_to_ptr.vmem [resolvable:$false] %s8820_s18 }
  0x67   : > { %s8822_s26 = scalar_lea.vmem %s8821_s18, 2048  ;;  %p8823_p3 = scmp.lt.s32.totalorder %s9328_s21, %s8821_s18 }
  0x68   : > { %p8818_p13 = pnand %p8816_p7, %p9280_p8  ;;  %p8824_p1 = scmp.lt.s32.totalorder %s8822_s26, %s8815_s14 }
  0x6a   : > { %p8819_p5 = pneg %p8818_p13  ;;  %p8825_p0 = por %p8824_p1, %p8823_p3 }
  0x6c   : > { %p8826_p2 = pnand %p8825_p0, %p8819_p5 }
  0x6e   : > { %8829 = shalt.err (!%p8826_p2)
}
  0x6f   : > { %s9090_s0 = smov 256   ;;  %s9091_s16 = smov 16  }
  0x70   : > { %8486 = dma.hbm_to_vmem [thread:$0]  (!%p9256_p4), %s9325_s2, 1024, %s9328_s21, %s9332_s30, %s9090_s0, %s9090_s0, %s9091_s16  }
  0x71   : > { %s8453_s22 = smul.u32 864, %s9252_s8  ;;  %s7099_s14 = sshll.u32 %s9252_s8, 3 }
  0x72   : > { %s8454_s27 = smul.u32 13824, %s9080_s10  ;;  %s8157_s24 = sshll.u32 %s9080_s10, 7 }
  0x73   : > { %s308_s4 = scalar_lea.vmem [#allocation4], %s8453_s22  ;;  %s305_s11 = scalar_lea.sflag [#allocation5], %s9252_s8 }
  0x74   : > { %s9365_s26 = scalar_lea.hbm %s10831_s1, %s8454_s27  ;;  %s315_s7 = sshll.u32 %s308_s4, 4  ;;  %s9367_s7 = int_to_ptr.vmem [resolvable:$true] %s315_s7 }
  0x75   : > { %s8830_s19 = scalar_lea.hbm %s9365_s26, 13824  ;;  %s8835_s27 = scalar_lea.hbm %s10831_s1, 27648 }
  0x76   : > { %p8831_p1 = scmp.ne.s32.totalorder %s9365_s26, %s8830_s19  ;;  %p8836_p9 = scmp.lt.u32.totalorder %s9365_s26, %s10831_s1 }
  0x77   : > { %p8837_p11 = scmp.lt.u32.totalorder %s8835_s27, %s8830_s19  ;;  %p8839_p7 = scmp.lt.u32.totalorder %s8830_s19, %s9365_s26 }
  0x78   : > { %p8833_p10 = pnand %p8831_p1, %p9280_p8 }
  0x79   : > { %p8838_p12 = por %p8837_p11, %p8836_p9 }
  0x7a   : > { %p8834_p6 = pneg %p8833_p10 }
  0x7b   : > { %p8840_p13 = por %p8839_p7, %p8838_p12 }
  0x7d   : > { %p8841_p5 = pnand %p8840_p13, %p8834_p6 }
  0x7f   : > { %8844 = shalt.err (!%p8841_p5)
}
  0x80   : > { %s8845_s4 = scalar_lea.vmem %s9367_s7, 13824  ;;  %s9092_s22 = smov [#allocation4]  }
  0x81   : > { %p8846_p3 = scmp.ne.s32.totalorder %s9367_s7, %s8845_s4  ;;  %s8850_s2 = sshll.u32 %s9092_s22, 4  ;;  %s8851_s2 = int_to_ptr.vmem [resolvable:$false] %s8850_s2 }
  0x82   : > { %s8852_s21 = scalar_lea.vmem %s8851_s2, 27648  ;;  %p8853_p1 = scmp.lt.s32.totalorder %s9367_s7, %s8851_s2 }
  0x83   : > { %p8848_p0 = pnand %p8846_p3, %p9280_p8  ;;  %p8854_p10 = scmp.lt.s32.totalorder %s8852_s21, %s8845_s4 }
  0x85   : > { %p8849_p2 = pneg %p8848_p0  ;;  %p8855_p9 = por %p8854_p10, %p8853_p1 }
  0x87   : > { %p8856_p11 = pnand %p8855_p9, %p8849_p2 }
  0x89   : > { %8859 = shalt.err (!%p8856_p11)
}
  0x8a   : > { %s10891_s19 = smov 32   ;;  %s10892_s27 = smov 512  }
  0x8b   : > { %8477 = dma.hbm_to_vmem [thread:$0]  (!%p9256_p4), %s9365_s26, 13824, %s9367_s7, %s305_s11, %s10892_s27, %s10892_s27, %s10891_s19  }
  0x8c   : > { %s9402_s4 = scalar_lea.hbm %s10833_s3, %s8157_s24  ;;  %s350_s22 = scalar_lea.vmem [#allocation9], %s7099_s14 }
  0x8d   : > { %s358_s2 = sshll.u32 %s350_s22, 4  ;;  %s8860_s21 = scalar_lea.hbm %s9402_s4, 128  ;;  %s359_s2 = int_to_ptr.vmem [resolvable:$true] %s358_s2 }
  0x8e   : > { %p8861_p6 = scmp.ne.s32.totalorder %s9402_s4, %s8860_s21  ;;  %s8865_s26 = scalar_lea.hbm %s10833_s3, 256 }
  0x8f   : > { %p8866_p13 = scmp.lt.u32.totalorder %s9402_s4, %s10833_s3  ;;  %p8867_p5 = scmp.lt.u32.totalorder %s8865_s26, %s8860_s21 }
  0x90   : > { %p8863_p12 = pnand %p8861_p6, %p9280_p8  ;;  %p8869_p0 = scmp.lt.u32.totalorder %s8860_s21, %s9402_s4 }
  0x91   : > { %p8868_p3 = por %p8867_p5, %p8866_p13 }
  0x92   : > { %p8864_p7 = pneg %p8863_p12 }
  0x93   : > { %p8870_p2 = por %p8869_p0, %p8868_p3 }
  0x95   : > { %p8871_p1 = pnand %p8870_p2, %p8864_p7 }
  0x97   : > { %8874 = shalt.err (!%p8871_p1)
}
  0x98   : > { %s8875_s14 = scalar_lea.vmem %s359_s2, 128  ;;  %s9093_s27 = smov [#allocation9]  }
  0x99   : > { %p8876_p10 = scmp.ne.s32.totalorder %s359_s2, %s8875_s14  ;;  %s8880_s29 = sshll.u32 %s9093_s27, 4  ;;  %s8881_s29 = int_to_ptr.vmem [resolvable:$false] %s8880_s29 }
  0x9a   : > { %s8882_s18 = scalar_lea.vmem %s8881_s29, 256  ;;  %p8883_p6 = scmp.lt.s32.totalorder %s359_s2, %s8881_s29 }
  0x9b   : > { %p8878_p9 = pnand %p8876_p10, %p9280_p8  ;;  %p8884_p12 = scmp.lt.s32.totalorder %s8882_s18, %s8875_s14 }
  0x9d   : > { %p8879_p11 = pneg %p8878_p9  ;;  %p8885_p4 = por %p8884_p12, %p8883_p6 }
  0x9f   : > { %p8886_p5 = pnand %p8885_p4, %p8879_p11 }
  0xa1   : > { %8889 = shalt.err (!%p8886_p5)
}
  0xa2   : > { %p10893_p13 = scmp.ne.s32.totalorder %s10883_s13, 0  ;;  %s9428_s11 = scalar_lea.hbm %s10835_s5, %s9319_s23 }
  0xa3   : > { %s390_s7 = scalar_lea.vmem [#allocation12], %s9316_s17  ;;  %s8890_s19 = scalar_lea.hbm %s9428_s11, 1024 }
  0xa4   : > { %8483 = dma.hbm_to_vmem [thread:$0]  (!%p10893_p13), %s9402_s4, 128, %s359_s2, %s9274_s15  }
  0xa5   : > { %s397_s26 = sshll.u32 %s390_s7, 4  ;;  %p8891_p4 = scmp.ne.s32.totalorder %s9428_s11, %s8890_s19  ;;  %s9431_s26 = int_to_ptr.vmem [resolvable:$true] %s397_s26 }
  0xa6   : > { %s8895_s4 = scalar_lea.hbm %s10835_s5, 2048  ;;  %p8896_p0 = scmp.lt.u32.totalorder %s9428_s11, %s10835_s5 }
  0xa7   : > { %p8893_p7 = pnand %p8891_p4, %p9280_p8  ;;  %p8897_p2 = scmp.lt.u32.totalorder %s8895_s4, %s8890_s19 }
  0xa8   : > { %p8899_p10 = scmp.lt.u32.totalorder %s8890_s19, %s9428_s11 }
  0xa9   : > { %p8894_p3 = pneg %p8893_p7  ;;  %p8898_p1 = por %p8897_p2, %p8896_p0 }
  0xab   : > { %p8900_p9 = por %p8899_p10, %p8898_p1 }
  0xad   : > { %p8901_p11 = pnand %p8900_p9, %p8894_p3 }
  0xaf   : > { %8904 = shalt.err (!%p8901_p11)
}
  0xb0   : > { %s8905_s27 = scalar_lea.vmem %s9431_s26, 1024  ;;  %s9094_s29 = smov [#allocation12]  }
  0xb1   : > { %p8906_p6 = scmp.ne.s32.totalorder %s9431_s26, %s8905_s27  ;;  %s8910_s18 = sshll.u32 %s9094_s29, 4  ;;  %s8911_s18 = int_to_ptr.vmem [resolvable:$false] %s8910_s18 }
  0xb2   : > { %s8912_s22 = scalar_lea.vmem %s8911_s18, 2048  ;;  %p8913_p4 = scmp.lt.s32.totalorder %s9431_s26, %s8911_s18 }
  0xb3   : > { %p8908_p12 = pnand %p8906_p6, %p9280_p8  ;;  %p8914_p7 = scmp.lt.s32.totalorder %s8912_s22, %s8905_s27 }
  0xb5   : > { %p8909_p5 = pneg %p8908_p12  ;;  %p8915_p0 = por %p8914_p7, %p8913_p4 }
  0xb7   : > { %p8916_p2 = pnand %p8915_p0, %p8909_p5 }
  0xb9   : > { %8919 = shalt.err (!%p8916_p2)
}
  0xba   : > { %8489 = dma.hbm_to_vmem [thread:$0]  (!%p10893_p13), %s9428_s11, 1024, %s9431_s26, %s9332_s30, %s9090_s0, %s9090_s0, %s9091_s16  }
  0xbb   : > { %s9462_s19 = scalar_lea.hbm %s10836_s6, %s9319_s23  ;;  %s411_s24 = scalar_lea.vmem [#allocation13], %s9316_s17 }
  0xbc   : > { %s418_s15 = sshll.u32 %s411_s24, 4  ;;  %s408_s4 = scalar_lea.sflag [#allocation14], %s9252_s8  ;;  %s9465_s15 = int_to_ptr.vmem [resolvable:$true] %s418_s15 }
  0xbd   : > { %s8920_s2 = scalar_lea.hbm %s9462_s19, 1024  ;;  %s8925_s26 = scalar_lea.hbm %s10836_s6, 2048 }
  0xbe   : > { %p8921_p3 = scmp.ne.s32.totalorder %s9462_s19, %s8920_s2  ;;  %p8926_p9 = scmp.lt.u32.totalorder %s9462_s19, %s10836_s6 }
  0xbf   : > { %p8927_p11 = scmp.lt.u32.totalorder %s8925_s26, %s8920_s2  ;;  %p8929_p12 = scmp.lt.u32.totalorder %s8920_s2, %s9462_s19 }
  0xc0   : > { %p8923_p1 = pnand %p8921_p3, %p9280_p8 }
  0xc1   : > { %p8928_p6 = por %p8927_p11, %p8926_p9 }
  0xc2   : > { %p8924_p10 = pneg %p8923_p1 }
  0xc3   : > { %p8930_p5 = por %p8929_p12, %p8928_p6 }
  0xc5   : > { %p8931_p4 = pnand %p8930_p5, %p8924_p10 }
  0xc7   : > { %8934 = shalt.err (!%p8931_p4)
}
  0xc8   : > { %s8935_s17 = scalar_lea.vmem %s9465_s15, 1024  ;;  %s9095_s27 = smov [#allocation13]  }
  0xc9   : > { %p8936_p7 = scmp.ne.s32.totalorder %s9465_s15, %s8935_s17  ;;  %s8940_s29 = sshll.u32 %s9095_s27, 4  ;;  %s8941_s29 = int_to_ptr.vmem [resolvable:$false] %s8940_s29 }
  0xca   : > { %s8942_s18 = scalar_lea.vmem %s8941_s29, 2048  ;;  %p8943_p3 = scmp.lt.s32.totalorder %s9465_s15, %s8941_s29 }
  0xcb   : > { %p8938_p0 = pnand %p8936_p7, %p9280_p8  ;;  %p8944_p1 = scmp.lt.s32.totalorder %s8942_s18, %s8935_s17 }
  0xcd   : > { %p8939_p2 = pneg %p8938_p0  ;;  %p8945_p9 = por %p8944_p1, %p8943_p3 }
  0xcf   : > { %p8946_p11 = pnand %p8945_p9, %p8939_p2 }
  0xd1   : > { %8949 = shalt.err (!%p8946_p11)
}
  0xd2   : > { %8492 = dma.hbm_to_vmem [thread:$0]  (!%p10893_p13), %s9462_s19, 1024, %s9465_s15, %s408_s4, %s9090_s0, %s9090_s0, %s9091_s16  }
  0xd3   : > { %p10894_p8 = scmp.ne.s32.totalorder %s10888_s20, 0 }
  0xd4   : > { %s10895_s9 = sld [smem:[#allocation30_spill]] (!%p10894_p8)  ;;  %s432_s22 = sand.u32 (!%p10894_p8), 1, %s9060_s28  }
  0xd5   : > { %430 = sbr.rel (%p10894_p8) target bundleno = 1271 (0x4f7), region = 48  ;;  %s433_s7 = scalar_lea.sflag (!%p10894_p8), [#allocation5], %s432_s22 }
  0xd6   : > { %s8457_s21 = smul.u32 (!%p10894_p8), 864, %s432_s22 }
  0xd8   : > { %s9497_s24 = scalar_lea.vmem (!%p10894_p8), [#allocation4], %s8457_s21 }
  0xda   : > { %p10896_p10 = scmp.ne.s32.totalorder (!%p10894_p8), %s10895_s9, 0 }
  0xdc   : > { %9023 = dma.done.wait (%p10896_p10), %s433_s7, 13824  }
  0xdd   : > { %9025 = vsyncadd (%p10896_p10), %s433_s7, 4294953472  ;;  %s441_s8 = sand.u32 1, %s9196_s12   ;;  %s8458_s13 = smul.u32 3456, %s432_s22 }
  0xde   : > { %s442_s0 = scalar_lea.sflag [#allocation8], %s441_s8 }
  0xdf   : > { %s9504_s16 = scalar_lea.vmem [#allocation7], %s8458_s13 }
  0xe0   : > { %9027 = dma.done.wait (%p10896_p10), %s442_s0, 55424  }
  0xe1   : > { %9029 = vsyncadd (%p10896_p10), %s442_s0, 4294911872  ;;  %s7112_s20 = sshll.u32 %s432_s22, 3  ;;  %s7113_s19 = sshll.u32 %s432_s22, 6 }
  0xe2   : > { %s9510_s15 = scalar_lea.vmem [#allocation9], %s7112_s20  ;;  %s460_s4 = scalar_lea.sflag [#allocation11], %s441_s8 }
  0xe3   : > { %s9512_s2 = scalar_lea.vmem [#allocation10], %s7113_s19 }
  0xe4   : > { %9031 = dma.done.wait (%p10896_p10), %s460_s4, 2048  }
  0xe5   : > { %9033 = vsyncadd (%p10896_p10), %s460_s4, 4294965248  ;;  %s9518_s12 = scalar_lea.vmem [#allocation12], %s7113_s19  ;;  %s478_s30 = scalar_lea.sflag [#allocation14], %s432_s22 }
  0xe6   : > { %s9520_s11 = scalar_lea.vmem [#allocation13], %s7113_s19 }
  0xe7   : > { %9035 = dma.done.wait (%p10896_p10), %s478_s30, 1024  }
  0xe8   : > { %9037 = vsyncadd (%p10896_p10), %s478_s30, 4294966272  ;;  %s10897_s26 = sld [smem:[#allocation24_spill]]  ;;  %s10898_s23 = sld [smem:[#allocation25_spill]] }
  0xe9   : > { %s543_s14 = sand.u32 1, %s9048_s25   ;;  %s10899_s13 = sld [smem:[#allocation35_spill]] }
  0xea   : > { %s7116_s27 = sshll.u32 %s543_s14, 6 }
  0xeb   : > { %s9541_s20 = scalar_lea.vmem [#allocation15], %s7116_s27 }
  0xee   : > { %s7117_s17 = sshll.u32 %s10897_s26, 1  ;;  %p7119_p6 = scmp.ne.s32.totalorder %s10897_s26, 0 }
  0xef   : > { %s547_s29 = ssub.s32 7, %s7117_s17  ;;  %vm569_vm0 = vcmask (!%p7119_p6), 257024   ;;  %vm574_vm1 = vcmask (!%p7119_p6), 253952   ;;  %v9096_v0 = vmov (!%p7119_p6), 0   ;;  %v9097_v1 = vmov (!%p7119_p6), 0.0  }
  0xf0   : > { %s548_s18 = smul.u32 %s10898_s23, %s547_s29  ;;  %568 = vst [vmem:[#allocation2] sm:$0xff] (!%p7119_p6), %v9096_v0  ;;  %571 = vst [vmem:[#allocation2 + $0xc] sm:$0xff] (!%p7119_p6), %v9096_v0 }
  0xf1   : > { %573 = vst [vmem:[#allocation2 + $0x18] sm:$0x11] (!%p7119_p6), %v9096_v0  ;;  %576 = vst [vmem:[#allocation2 + $0x24] sm:$0xff] (!%p7119_p6), %v9096_v0 }
  0xf2   : > { %s9532_s21 = sadd.s32 %s10897_s26, %s548_s18  ;;  %578 = vst [vmem:[#allocation2 + $0x30] sm:$0xff] (!%p7119_p6), %v9096_v0  ;;  %580 = vst [vmem:[#allocation2 + $0x3c] sm:$0x11] (!%p7119_p6), %v9096_v0 }
  0xf3   : > { %p550_p13 = scmp.lt.s32.totalorder %s9532_s21, 7  ;;  %567 = sbr.rel (%p7119_p6) target bundleno = 251 (0xfb), region = 76  ;;  %570 = vst.msk [vmem:[#allocation2 + $0x8] sm:$0xf] (!%p7119_p6), %vm569_vm0, %v9096_v0  ;;  %572 = vst.msk [vmem:[#allocation2 + $0x14] sm:$0xf] (!%p7119_p6), %vm569_vm0, %v9096_v0 }
  0xf4   : > { %577 = vst.msk [vmem:[#allocation2 + $0x2c] sm:$0xf] (!%p7119_p6), %vm569_vm0, %v9096_v0  ;;  %579 = vst.msk [vmem:[#allocation2 + $0x38] sm:$0xf] (!%p7119_p6), %vm569_vm0, %v9096_v0 }
  0xf5   : > { %s551_s22 = scalar_select %p550_p13, %s9532_s21, 7 }
  0xf6   : > { %575 = vst.msk [vmem:[#allocation2 + $0x20] sm:$0x1] (!%p7119_p6), %vm574_vm1, %v9096_v0  ;;  %581 = vst.msk [vmem:[#allocation2 + $0x44] sm:$0x1] (!%p7119_p6), %vm574_vm1, %v9096_v0 }
  0xf7   : > { %s8459_s7 = smul.u32 24, %s551_s22  ;;  %582 = vst [vmem:[#allocation3] sm:$0xff] (!%p7119_p6), %v9097_v1  ;;  %583 = vst [vmem:[#allocation3 + $0x8] sm:$0xff] (!%p7119_p6), %v9097_v1 }
  0xf8   : > { %584 = vst [vmem:[#allocation3 + $0x10] sm:$0xff] (!%p7119_p6), %v9097_v1  ;;  %585 = vst [vmem:[#allocation3 + $0x18] sm:$0xff] (!%p7119_p6), %v9097_v1 }
  0xf9   : > { %s9539_s0 = scalar_lea.vmem %s10899_s13, %s8459_s7  ;;  %586 = vst [vmem:[#allocation3 + $0x20] sm:$0xff] (!%p7119_p6), %v9097_v1  ;;  %587 = vst [vmem:[#allocation3 + $0x28] sm:$0xff] (!%p7119_p6), %v9097_v1 }
  0xfa   : > { %588 = vst [vmem:[#allocation3 + $0x30] sm:$0xff] %v9097_v1  ;;  %589 = vst [vmem:[#allocation3 + $0x38] sm:$0xff] %v9097_v1 }
  0xfb PF: > { %v603_v2 = vld [vmem:[%s9497_s24] sm:$0xff]  ;;  %v604_v4 = vld [vmem:[%s9497_s24 + $0x8] sm:$0xff]  ;;  %v9098_v10 = vmov 0   ;;  %vm836_vm2 = vcmask 1043456   ;;  %v605_v41 = vld [vmem:[%s9497_s24 + $0x10] sm:$0xff]  ;;  %vm829_vm3 = vcmask 588800  }
  0xfc   : > { %v607_v3 = vld [vmem:[%s9497_s24 + $0x20] sm:$0xff]  ;;  %v608_v6 = vld [vmem:[%s9497_s24 + $0x28] sm:$0xff]  ;;  %893 = vmatprep.mubr.bf16.mxu0 %v9098_v10  ;;  %946 = vmatprep.mubr.bf16.mxu1 %v9098_v10  ;;  %v609_v42 = vld [vmem:[%s9497_s24 + $0x30] sm:$0xff]  ;;  %vm2040_vm4 = vcmask 261120   ;;  %vm2509_vm5 = vsmask.f32 3328 }
  0xfd   : > { %v7123_v5 = vcombine.high %v603_v2, %v607_v3  ;;  %v7122_v7 = vcombine.low %v603_v2, %v607_v3  ;;  %v611_v8 = vld [vmem:[%s9497_s24 + $0x40] sm:$0xff]  ;;  %v7125_v11 = vcombine.high %v604_v4, %v608_v6  ;;  %v7124_v12 = vcombine.low %v604_v4, %v608_v6  ;;  %v612_v14 = vld [vmem:[%s9497_s24 + $0x48] sm:$0xff]  ;;  %v606_v43 = vld [vmem:[%s9497_s24 + $0x18] sm:$0xff]  ;;  %s8152_s19 = sshll.u32 %s9532_s21, 3  ;;  %s10908_s23 = sld [smem:[#allocation38_spill]] }
  0xfe   : > { %v615_v9 = vld [vmem:[%s9497_s24 + $0x60] sm:$0xff]  ;;  %v616_v15 = vld [vmem:[%s9497_s24 + $0x68] sm:$0xff]  ;;  %v610_v44 = vld [vmem:[%s9497_s24 + $0x38] sm:$0xff]  ;;  %v7127_v46 = vcombine.high %v605_v41, %v609_v42  ;;  %v7126_v54 = vcombine.low %v605_v41, %v609_v42  ;;  %vm2510_vm6 = vsmask.f32 7440  ;;  %vm4522_vm8 = vcmask 1042432  }
  0xff   : > { %v7131_v13 = vcombine.high %v611_v8, %v615_v9  ;;  %v619_v16 = vld [vmem:[%s9497_s24 + $0x80] sm:$0xff]  ;;  %861 = vmatprep.subr.bf16.mxu0 %v7123_v5  ;;  %v7133_v17 = vcombine.high %v612_v14, %v616_v15  ;;  %v620_v19 = vld [vmem:[%s9497_s24 + $0x88] sm:$0xff]  ;;  %914 = vmatprep.subr.bf16.mxu1 %v7125_v11  ;;  %v7130_v21 = vcombine.low %v611_v8, %v615_v9  ;;  %v613_v49 = vld [vmem:[%s9497_s24 + $0x50] sm:$0xff]  ;;  %vm4523_vm9 = vcmask 1046532   ;;  %s10683_s27 = scalar_lea.sflag [#allocation6], %s543_s14  ;;  %s9100_s18 = smov [#allocation15]  }
 0x100   : > { %v623_v18 = vld [vmem:[%s9497_s24 + $0xa0] sm:$0xff]  ;;  %v624_v20 = vld [vmem:[%s9497_s24 + $0xa8] sm:$0xff]  ;;  %862 = vmatpush1.bf16.msra.mxu0 %v7122_v7  ;;  %915 = vmatpush1.bf16.msra.mxu1 %v7124_v12  ;;  %v7132_v22 = vcombine.low %v612_v14, %v616_v15  ;;  %v7129_v48 = vcombine.high %v606_v43, %v610_v44  ;;  %v617_v50 = vld [vmem:[%s9497_s24 + $0x70] sm:$0xff]  ;;  %v7128_v55 = vcombine.low %v606_v43, %v610_v44  ;;  %vm6737_vm11 = vsmask.f32 256  ;;  %s8954_s21 = sshll.u32 %s9100_s18, 4  ;;  %s8955_s21 = int_to_ptr.vmem [resolvable:$false] %s8954_s21 }
 0x101   : > { %863 = vmatprep.subr.bf16.mxu0 %v7131_v13  ;;  %v7139_v23 = vcombine.high %v619_v16, %v623_v18  ;;  %916 = vmatprep.subr.bf16.mxu1 %v7133_v17  ;;  %v7141_v24 = vcombine.high %v620_v19, %v624_v20  ;;  %v627_v25 = vld [vmem:[%s9497_s24 + $0xc0] sm:$0xff]  ;;  %v628_v27 = vld [vmem:[%s9497_s24 + $0xc8] sm:$0xff]  ;;  %v7138_v29 = vcombine.low %v619_v16, %v623_v18  ;;  %v9575_v51 = vld [vmem:[%s9539_s0] sm:$0xff]   ;;  %vm6738_vm12 = vsmask.f32 4368  ;;  %s8956_s22 = scalar_lea.vmem %s8955_s21, 2048 }
 0x102   : > { %v631_v26 = vld [vmem:[%s9497_s24 + $0xe0] sm:$0xff]  ;;  %v632_v28 = vld [vmem:[%s9497_s24 + $0xe8] sm:$0xff]  ;;  %v7140_v30 = vcombine.low %v620_v19, %v624_v20  ;;  %v614_v52 = vld [vmem:[%s9497_s24 + $0x58] sm:$0xff]  ;;  %v7135_v56 = vcombine.high %v613_v49, %v617_v50  ;;  %v7134_v62 = vcombine.low %v613_v49, %v617_v50 }
 0x103   : > { %v7147_v31 = vcombine.high %v627_v25, %v631_v26  ;;  %v7149_v32 = vcombine.high %v628_v27, %v632_v28  ;;  %v635_v33 = vld [vmem:[%s9497_s24 + $0x100] sm:$0xff]  ;;  %v636_v34 = vld [vmem:[%s9497_s24 + $0x108] sm:$0xff]  ;;  %v7146_v35 = vcombine.low %v627_v25, %v631_v26  ;;  %v7148_v36 = vcombine.low %v628_v27, %v632_v28  ;;  %v618_v53 = vld [vmem:[%s9497_s24 + $0x78] sm:$0xff] }
 0x104   : > { %864 = vmatpush1.bf16.msra.mxu0 %v7130_v21  ;;  %917 = vmatpush1.bf16.msra.mxu1 %v7132_v22  ;;  %v7155_v37 = vcombine.high %v635_v33, %v635_v33  ;;  %v7154_v38 = vcombine.low %v635_v33, %v635_v33  ;;  %v7157_v39 = vcombine.high %v636_v34, %v636_v34  ;;  %v621_v58 = vld [vmem:[%s9497_s24 + $0x90] sm:$0xff]  ;;  %v622_v60 = vld [vmem:[%s9497_s24 + $0x98] sm:$0xff]  ;;  %v9594_v6 = vld [vmem:[%s9539_s0 + $0xc] sm:$0xff]  }
 0x105   : > { %865 = vmatprep.subr.bf16.mxu0 %v7139_v23  ;;  %918 = vmatprep.subr.bf16.mxu1 %v7141_v24  ;;  %v7156_v40 = vcombine.low %v636_v34, %v636_v34  ;;  %v7137_v57 = vcombine.high %v614_v52, %v618_v53  ;;  %v625_v59 = vld [vmem:[%s9497_s24 + $0xb0] sm:$0xff]  ;;  %v626_v61 = vld [vmem:[%s9497_s24 + $0xb8] sm:$0xff]  ;;  %v7136_v63 = vcombine.low %v614_v52, %v618_v53  ;;  %v1146_v20 = vld [vmem:[%s9504_s16] sm:$0xff] }
 0x106   : > { %v838_v45 = vsel %vm836_vm2, %v7154_v38, 0  ;;  %v7143_v0 = vcombine.high %v621_v58, %v625_v59  ;;  %v7145_v1 = vcombine.high %v622_v60, %v626_v61  ;;  %v629_v2 = vld [vmem:[%s9497_s24 + $0xd0] sm:$0xff]  ;;  %v630_v4 = vld [vmem:[%s9497_s24 + $0xd8] sm:$0xff]  ;;  %v7142_v7 = vcombine.low %v621_v58, %v625_v59  ;;  %v1150_v21 = vld [vmem:[%s9504_s16 + $0x20] sm:$0xff] }
 0x107   : > { %v844_v47 = vsel %vm836_vm2, %v7156_v40, 0  ;;  %v633_v3 = vld [vmem:[%s9497_s24 + $0xf0] sm:$0xff]  ;;  %v634_v5 = vld [vmem:[%s9497_s24 + $0xf8] sm:$0xff]  ;;  %v7144_v8 = vcombine.low %v622_v60, %v626_v61  ;;  %v1147_v22 = vld [vmem:[%s9504_s16 + $0x8] sm:$0xff]  ;;  %v7181_v25 = vcombine.high %v1146_v20, %v1150_v21 }
 0x108   : > { %866 = vmatpush1.bf16.msra.mxu0 %v7138_v29  ;;  %919 = vmatpush1.bf16.msra.mxu1 %v7140_v30  ;;  %v7151_v9 = vcombine.high %v629_v2, %v633_v3  ;;  %v7153_v11 = vcombine.high %v630_v4, %v634_v5  ;;  %v637_v12 = vld [vmem:[%s9497_s24 + $0x110] sm:$0xff]  ;;  %v638_v13 = vld [vmem:[%s9497_s24 + $0x118] sm:$0xff]  ;;  %v7150_v14 = vcombine.low %v629_v2, %v633_v3  ;;  %v1151_v23 = vld [vmem:[%s9504_s16 + $0x28] sm:$0xff] }
 0x109   : > { %867 = vmatprep.subr.bf16.mxu0 %v7147_v31  ;;  %920 = vmatprep.subr.bf16.mxu1 %v7149_v32  ;;  %v7152_v15 = vcombine.low %v630_v4, %v634_v5  ;;  %v7159_v16 = vcombine.high %v637_v12, %v637_v12  ;;  %v7158_v17 = vcombine.low %v637_v12, %v637_v12  ;;  %v1154_v28 = vld [vmem:[%s9504_s16 + $0x40] sm:$0xff]  ;;  %v1155_v30 = vld [vmem:[%s9504_s16 + $0x48] sm:$0xff]  ;;  %vm9840_vm7 = vmor %vm2509_vm5, %vm2510_vm6 }
 0x10a   : > { %v7161_v18 = vcombine.high %v638_v13, %v638_v13  ;;  %v7160_v19 = vcombine.low %v638_v13, %v638_v13  ;;  %v7183_v27 = vcombine.high %v1147_v22, %v1151_v23  ;;  %v1158_v29 = vld [vmem:[%s9504_s16 + $0x60] sm:$0xff]  ;;  %v1159_v31 = vld [vmem:[%s9504_s16 + $0x68] sm:$0xff]  ;;  %v7180_v32 = vcombine.low %v1146_v20, %v1150_v21  ;;  %vm10163_vm10 = vmor %vm4522_vm8, %vm4523_vm9 }
 0x10b   : > { %v850_v24 = vsel %vm836_vm2, %v7158_v17, 0  ;;  %v7182_v33 = vcombine.low %v1147_v22, %v1151_v23  ;;  %v7189_v34 = vcombine.high %v1154_v28, %v1158_v29  ;;  %v1163_v38 = vld [vmem:[%s9504_s16 + $0x88] sm:$0xff]  ;;  %v7188_v40 = vcombine.low %v1154_v28, %v1158_v29  ;;  %v1170_v44 = vld [vmem:[%s9504_s16 + $0xc0] sm:$0xff]  ;;  %vm10656_vm13 = vmor %vm6737_vm11, %vm6738_vm12 }
 0x10c   : > { %868 = vmatpush1.bf16.msra.mxu0 %v7146_v35  ;;  %921 = vmatpush1.bf16.msra.mxu1 %v7148_v36  ;;  %v856_v26 = vsel %vm836_vm2, %v7160_v19, 0  ;;  %v1162_v35 = vld [vmem:[%s9504_s16 + $0x80] sm:$0xff]  ;;  %v7191_v36 = vcombine.high %v1155_v30, %v1159_v31  ;;  %v7190_v41 = vcombine.low %v1155_v30, %v1159_v31  ;;  %v1207_v17 = vld [vmem:[%s9504_s16 + $0x1e8] sm:$0xff] }
 0x10d   : > { %7162 = vmatprep.subr.msk.bf16.mxu0 %vm836_vm2, %v7155_v37  ;;  %7165 = vmatprep.subr.msk.bf16.mxu1 %vm836_vm2, %v7157_v39  ;;  %v1166_v37 = vld [vmem:[%s9504_s16 + $0xa0] sm:$0xff]  ;;  %v1167_v39 = vld [vmem:[%s9504_s16 + $0xa8] sm:$0xff] }
 0x10e   : > { %v7197_v42 = vcombine.high %v1162_v35, %v1166_v37  ;;  %v7199_v43 = vcombine.high %v1163_v38, %v1167_v39  ;;  %v7198_v49 = vcombine.low %v1163_v38, %v1167_v39  ;;  %v1178_v52 = vld [vmem:[%s9504_s16 + $0x100] sm:$0xff] }
 0x10f   : > { %v1182_v53 = vld [vmem:[%s9504_s16 + $0x120] sm:$0xff] }
 0x110   : > { %870 = vmatpush1.bf16.msra.mxu0 %v838_v45  ;;  %923 = vmatpush1.bf16.msra.mxu1 %v844_v47  ;;  %v1174_v45 = vld [vmem:[%s9504_s16 + $0xe0] sm:$0xff]  ;;  %v1175_v47 = vld [vmem:[%s9504_s16 + $0xe8] sm:$0xff]  ;;  %v7213_v59 = vcombine.high %v1178_v52, %v1182_v53 }
 0x111   : > { %967 = vmatprep.subr.bf16.mxu0 %v7127_v46  ;;  %1020 = vmatprep.subr.bf16.mxu1 %v7129_v48  ;;  %v1171_v46 = vld [vmem:[%s9504_s16 + $0xc8] sm:$0xff]  ;;  %v7196_v48 = vcombine.low %v1162_v35, %v1166_v37  ;;  %v7205_v50 = vcombine.high %v1170_v44, %v1174_v45  ;;  %v1186_v61 = vld [vmem:[%s9504_s16 + $0x140] sm:$0xff] }
 0x112   : > { %v7206_v58 = vcombine.low %v1171_v46, %v1175_v47  ;;  %v1194_v5 = vld [vmem:[%s9504_s16 + $0x180] sm:$0xff] }
 0x113   : > { %7163 = vmatmul.mubr.msk.bf16.vlgmr.msra.gmra.mrb[0].mxu0 %vm829_vm3, %v9575_v51  ;;  %7166 = vmatmul.mubr.msk.bf16.vlgmr.msra.gmra.mrb[0].mxu1 %vm829_vm3, %v9575_v51  ;;  %v1210_v22 = vld [vmem:[%s9504_s16 + $0x200] sm:$0xff] }
 0x114   : > { %968 = vmatpush1.bf16.msra.mxu0 %v7126_v54  ;;  %1021 = vmatpush1.bf16.msra.mxu1 %v7128_v55  ;;  %v9632_v54 = vld [vmem:[#allocation2 + $0x4] ss:$12 sps:$4 sm:$0xff]   ;;  %v1214_v23 = vld [vmem:[%s9504_s16 + $0x220] sm:$0xff] }
 0x115   : > { %969 = vmatprep.subr.bf16.mxu0 %v7135_v56  ;;  %1022 = vmatprep.subr.bf16.mxu1 %v7137_v57  ;;  %v1179_v55 = vld [vmem:[%s9504_s16 + $0x108] sm:$0xff]  ;;  %v7204_v57 = vcombine.low %v1170_v44, %v1174_v45  ;;  %v7245_v28 = vcombine.high %v1210_v22, %v1214_v23  ;;  %v1218_v30 = vld [vmem:[%s9504_s16 + $0x240] sm:$0xff] }
 0x116   : > { %903 = vmatprep.mubr.bf16.mxu0 %v9098_v10  ;;  %956 = vmatprep.mubr.bf16.mxu1 %v9098_v10  ;;  %v1183_v56 = vld [vmem:[%s9504_s16 + $0x128] sm:$0xff]  ;;  %v1222_v31 = vld [vmem:[%s9504_s16 + $0x260] sm:$0xff] }
 0x117   : > { %v7215_v60 = vcombine.high %v1179_v55, %v1183_v56  ;;  %v7214_v2 = vcombine.low %v1179_v55, %v1183_v56  ;;  %v1226_v38 = vld [vmem:[%s9504_s16 + $0x280] sm:$0xff] }
 0x118   : > { %970 = vmatpush1.bf16.msra.mxu0 %v7134_v62  ;;  %1023 = vmatpush1.bf16.msra.mxu1 %v7136_v63  ;;  %v1190_v62 = vld [vmem:[%s9504_s16 + $0x160] sm:$0xff]  ;;  %v1187_v63 = vld [vmem:[%s9504_s16 + $0x148] sm:$0xff] }
 0x119   : > { %971 = vmatprep.subr.bf16.mxu0 %v7143_v0  ;;  %1024 = vmatprep.subr.bf16.mxu1 %v7145_v1  ;;  %v1191_v0 = vld [vmem:[%s9504_s16 + $0x168] sm:$0xff]  ;;  %v7212_v1 = vcombine.low %v1178_v52, %v1182_v53  ;;  %v7221_v3 = vcombine.high %v1186_v61, %v1190_v62  ;;  %v1230_v39 = vld [vmem:[%s9504_s16 + $0x2a0] sm:$0xff] }
 0x11a   : > { %v7223_v4 = vcombine.high %v1187_v63, %v1191_v0  ;;  %v7261_v44 = vcombine.high %v1226_v38, %v1230_v39  ;;  %v1242_v55 = vld [vmem:[%s9504_s16 + $0x300] sm:$0xff] }
 0x11b   : > { %7164 = vmatmul.mubr.msk.bf16.gmra.mrb[4].mxu0 %vm829_vm3, %v9594_v6  ;;  %7167 = vmatmul.mubr.msk.bf16.gmra.mrb[4].mxu1 %vm829_vm3, %v9594_v6  ;;  %v1246_v56 = vld [vmem:[%s9504_s16 + $0x320] sm:$0xff] }
 0x11c   : > { %972 = vmatpush1.bf16.msra.mxu0 %v7142_v7  ;;  %1025 = vmatpush1.bf16.msra.mxu1 %v7144_v8  ;;  %v1195_v7 = vld [vmem:[%s9504_s16 + $0x188] sm:$0xff] }
 0x11d   : > { %973 = vmatprep.subr.bf16.mxu0 %v7151_v9  ;;  %1026 = vmatprep.subr.bf16.mxu1 %v7153_v11  ;;  %v1199_v8 = vld [vmem:[%s9504_s16 + $0x1a8] sm:$0xff]  ;;  %v7220_v9 = vcombine.low %v1186_v61, %v1190_v62  ;;  %v7222_v11 = vcombine.low %v1187_v63, %v1191_v0  ;;  %v7277_v61 = vcombine.high %v1242_v55, %v1246_v56  ;;  %v1250_v63 = vld [vmem:[%s9504_s16 + $0x340] sm:$0xff] }
 0x11e   : > { %999 = vmatprep.mubr.bf16.mxu0 %v9098_v10  ;;  %1052 = vmatprep.mubr.bf16.mxu1 %v9098_v10  ;;  %v7231_v13 = vcombine.high %v1195_v7, %v1199_v8  ;;  %v7230_v19 = vcombine.low %v1195_v7, %v1199_v8  ;;  %v1254_v0 = vld [vmem:[%s9504_s16 + $0x360] sm:$0xff] }
 0x11f   : > { %v1258_v7 = vld [vmem:[%s9504_s16 + $0x380] sm:$0xff] }
 0x120   : > { %974 = vmatpush1.bf16.msra.mxu0 %v7150_v14  ;;  %1027 = vmatpush1.bf16.msra.mxu1 %v7152_v15  ;;  %v1202_v14 = vld [vmem:[%s9504_s16 + $0x1c0] sm:$0xff] }
 0x121   : > { %7168 = vmatprep.subr.msk.bf16.mxu0 %vm836_vm2, %v7159_v16  ;;  %7171 = vmatprep.subr.msk.bf16.mxu1 %vm836_vm2, %v7161_v18  ;;  %v1206_v15 = vld [vmem:[%s9504_s16 + $0x1e0] sm:$0xff]  ;;  %v1203_v16 = vld [vmem:[%s9504_s16 + $0x1c8] sm:$0xff] }
 0x122   : > { %v7237_v20 = vcombine.high %v1202_v14, %v1206_v15  ;;  %v7239_v21 = vcombine.high %v1203_v16, %v1207_v17  ;;  %v1262_v8 = vld [vmem:[%s9504_s16 + $0x3a0] sm:$0xff] }
 0x124   : > { %976 = vmatpush1.bf16.msra.mxu0 %v850_v24  ;;  %1029 = vmatpush1.bf16.msra.mxu1 %v856_v26  ;;  %v1211_v24 = vld [vmem:[%s9504_s16 + $0x208] sm:$0xff]  ;;  %v7236_v26 = vcombine.low %v1202_v14, %v1206_v15  ;;  %v7293_v14 = vcombine.high %v1258_v7, %v1262_v8 }
 0x125   : > { %2047 = vmatprep.subr.bf16.mxu0 %v7181_v25  ;;  %2153 = vmatprep.subr.bf16.mxu1 %v7183_v27  ;;  %v1215_v25 = vld [vmem:[%s9504_s16 + $0x228] sm:$0xff]  ;;  %v7238_v27 = vcombine.low %v1203_v16, %v1207_v17  ;;  %v1266_v16 = vld [vmem:[%s9504_s16 + $0x3c0] sm:$0xff] }
 0x126   : > { %v7247_v29 = vcombine.high %v1211_v24, %v1215_v25  ;;  %v7246_v35 = vcombine.low %v1211_v24, %v1215_v25  ;;  %v1270_v17 = vld [vmem:[%s9504_s16 + $0x3e0] sm:$0xff] }
 0x127   : > { %7169 = vmatmul.mubr.msk.bf16.vlgmr.msra.gmra.mrb[8].mxu0 %vm829_vm3, %v9575_v51  ;;  %7172 = vmatmul.mubr.msk.bf16.vlgmr.msra.gmra.mrb[8].mxu1 %vm829_vm3, %v9575_v51  ;;  %v7207_v51 = vcombine.high %v1171_v46, %v1175_v47  ;;  %v1234_v46 = vld [vmem:[%s9504_s16 + $0x2c0] sm:$0xff] }
 0x128   : > { %2048 = vmatpush1.bf16.msra.mxu0 %v7180_v32  ;;  %2154 = vmatpush1.bf16.msra.mxu1 %v7182_v33  ;;  %v1219_v32 = vld [vmem:[%s9504_s16 + $0x248] sm:$0xff]  ;;  %v1238_v47 = vld [vmem:[%s9504_s16 + $0x2e0] sm:$0xff] }
 0x129   : > { %2049 = vmatprep.subr.bf16.mxu0 %v7189_v34  ;;  %2155 = vmatprep.subr.bf16.mxu1 %v7191_v36  ;;  %v1223_v33 = vld [vmem:[%s9504_s16 + $0x268] sm:$0xff]  ;;  %v7244_v34 = vcombine.low %v1210_v22, %v1214_v23  ;;  %v7253_v36 = vcombine.high %v1218_v30, %v1222_v31  ;;  %v7269_v52 = vcombine.high %v1234_v46, %v1238_v47  ;;  %v1274_v24 = vld [vmem:[%s9504_s16 + $0x400] sm:$0xff] }
 0x12a   : > { %1009 = vmatprep.mubr.bf16.mxu0 %v9098_v10  ;;  %1062 = vmatprep.mubr.bf16.mxu1 %v9098_v10  ;;  %v7255_v37 = vcombine.high %v1219_v32, %v1223_v33  ;;  %v7301_v22 = vcombine.high %v1266_v16, %v1270_v17  ;;  %v1278_v25 = vld [vmem:[%s9504_s16 + $0x420] sm:$0xff] }
 0x12c   : > { %2050 = vmatpush1.bf16.msra.mxu0 %v7188_v40  ;;  %2156 = vmatpush1.bf16.msra.mxu1 %v7190_v41  ;;  %v1227_v40 = vld [vmem:[%s9504_s16 + $0x288] sm:$0xff] }
 0x12d   : > { %2051 = vmatprep.subr.bf16.mxu0 %v7197_v42  ;;  %2157 = vmatprep.subr.bf16.mxu1 %v7199_v43  ;;  %v1231_v41 = vld [vmem:[%s9504_s16 + $0x2a8] sm:$0xff]  ;;  %v7252_v42 = vcombine.low %v1218_v30, %v1222_v31  ;;  %v7254_v43 = vcombine.low %v1219_v32, %v1223_v33  ;;  %v7309_v30 = vcombine.high %v1274_v24, %v1278_v25  ;;  %v9690_v32 = vld [vmem:[#allocation2] ss:$12 sps:$4 sm:$0xff]  }
 0x12e   : > { %v7263_v45 = vcombine.high %v1227_v40, %v1231_v41  ;;  %v1282_v33 = vld [vmem:[%s9504_s16 + $0x440] sm:$0xff] }
 0x12f   : > { %7170 = vmatmul.mubr.msk.bf16.gmra.mrb[12].mxu0 %vm829_vm3, %v9594_v6  ;;  %7173 = vmatmul.mubr.msk.bf16.gmra.mrb[12].mxu1 %vm829_vm3, %v9594_v6  ;;  %v1198_v6 = vld [vmem:[%s9504_s16 + $0x1a0] sm:$0xff] }
 0x130   : > { %2052 = vmatpush1.bf16.msra.mxu0 %v7196_v48  ;;  %2158 = vmatpush1.bf16.msra.mxu1 %v7198_v49  ;;  %v7229_v12 = vcombine.high %v1194_v5, %v1198_v6  ;;  %v7228_v18 = vcombine.low %v1194_v5, %v1198_v6  ;;  %v1235_v48 = vld [vmem:[%s9504_s16 + $0x2c8] sm:$0xff]  ;;  %v7285_v5 = vcombine.high %v1250_v63, %v1254_v0 }
 0x131   : > { %2053 = vmatprep.subr.bf16.mxu0 %v7205_v50  ;;  %2159 = vmatprep.subr.bf16.mxu1 %v7207_v51  ;;  %v1239_v49 = vld [vmem:[%s9504_s16 + $0x2e8] sm:$0xff]  ;;  %v7260_v50 = vcombine.low %v1226_v38, %v1230_v39  ;;  %v7262_v51 = vcombine.low %v1227_v40, %v1231_v41  ;;  %v1148_v41 = vld [vmem:[%s9504_s16 + $0x10] sm:$0xff] }
 0x132   : > { %2079 = vmatprep.mubr.bf16.mxu0 %v9632_v54  ;;  %2185 = vmatprep.mubr.bf16.mxu1 %v9632_v54  ;;  %v7271_v53 = vcombine.high %v1235_v48, %v1239_v49  ;;  %v9696_v38 = vld [vmem:[#allocation2 + $0x28] ss:$12 sps:$4 sm:$0xff]  }
 0x134   : > { %2054 = vmatpush1.bf16.msra.mxu0 %v7204_v57  ;;  %2160 = vmatpush1.bf16.msra.mxu1 %v7206_v58  ;;  %v1243_v57 = vld [vmem:[%s9504_s16 + $0x308] sm:$0xff] }
 0x135   : > { %2055 = vmatprep.subr.bf16.mxu0 %v7213_v59  ;;  %2161 = vmatprep.subr.bf16.mxu1 %v7215_v60  ;;  %v1247_v58 = vld [vmem:[%s9504_s16 + $0x328] sm:$0xff]  ;;  %v7268_v59 = vcombine.low %v1234_v46, %v1238_v47  ;;  %v7270_v60 = vcombine.low %v1235_v48, %v1239_v49  ;;  %v1153_v46 = vld [vmem:[%s9504_s16 + $0x38] sm:$0xff] }
 0x136   : > { %v7279_v62 = vcombine.high %v1243_v57, %v1247_v58  ;;  %v9706_v49 = vld [vmem:[#allocation2 + $0x24] ss:$12 sps:$4 sm:$0xff]  }
 0x138   : > { %2056 = vmatpush1.bf16.msra.mxu0 %v7212_v1  ;;  %2162 = vmatpush1.bf16.msra.mxu1 %v7214_v2  ;;  %v1251_v1 = vld [vmem:[%s9504_s16 + $0x348] sm:$0xff] }
 0x139   : > { %2057 = vmatprep.subr.bf16.mxu0 %v7221_v3  ;;  %2163 = vmatprep.subr.bf16.mxu1 %v7223_v4  ;;  %v1255_v2 = vld [vmem:[%s9504_s16 + $0x368] sm:$0xff]  ;;  %v7276_v3 = vcombine.low %v1242_v55, %v1246_v56  ;;  %v7278_v4 = vcombine.low %v1243_v57, %v1247_v58  ;;  %v1157_v55 = vld [vmem:[%s9504_s16 + $0x58] sm:$0xff] }
 0x13a   : > { %v7287_v6 = vcombine.high %v1251_v1, %v1255_v2  ;;  %v1161_v56 = vld [vmem:[%s9504_s16 + $0x78] sm:$0xff] }
 0x13c   : > { %2058 = vmatpush1.bf16.msra.mxu0 %v7220_v9  ;;  %2164 = vmatpush1.bf16.msra.mxu1 %v7222_v11  ;;  %v1259_v9 = vld [vmem:[%s9504_s16 + $0x388] sm:$0xff] }
 0x13d   : > { %2059 = vmatprep.subr.bf16.mxu0 %v7229_v12  ;;  %2165 = vmatprep.subr.bf16.mxu1 %v7231_v13  ;;  %v1263_v11 = vld [vmem:[%s9504_s16 + $0x3a8] sm:$0xff]  ;;  %v7284_v12 = vcombine.low %v1250_v63, %v1254_v0  ;;  %v7286_v13 = vcombine.low %v1251_v1, %v1255_v2  ;;  %v1165_v63 = vld [vmem:[%s9504_s16 + $0x98] sm:$0xff]  ;;  %v7194_v2 = vcombine.low %v1157_v55, %v1161_v56 }
 0x13e   : > { %v7295_v15 = vcombine.high %v1259_v9, %v1263_v11  ;;  %v1169_v0 = vld [vmem:[%s9504_s16 + $0xb8] sm:$0xff] }
 0x140   : > { %2060 = vmatpush1.bf16.msra.mxu0 %v7228_v18  ;;  %2166 = vmatpush1.bf16.msra.mxu1 %v7230_v19  ;;  %v1267_v18 = vld [vmem:[%s9504_s16 + $0x3c8] sm:$0xff] }
 0x141   : > { %2061 = vmatprep.subr.bf16.mxu0 %v7237_v20  ;;  %2167 = vmatprep.subr.bf16.mxu1 %v7239_v21  ;;  %v1271_v19 = vld [vmem:[%s9504_s16 + $0x3e8] sm:$0xff]  ;;  %v7292_v20 = vcombine.low %v1258_v7, %v1262_v8  ;;  %v7294_v21 = vcombine.low %v1259_v9, %v1263_v11  ;;  %v1173_v7 = vld [vmem:[%s9504_s16 + $0xd8] sm:$0xff]  ;;  %v9732_v9 = vld [vmem:[#allocation2 + $0x2c] ss:$12 sps:$4 sm:$0xff]  }
 0x142   : > { %v7303_v23 = vcombine.high %v1267_v18, %v1271_v19  ;;  %v1177_v8 = vld [vmem:[%s9504_s16 + $0xf8] sm:$0xff] }
 0x144   : > { %2062 = vmatpush1.bf16.msra.mxu0 %v7236_v26  ;;  %2168 = vmatpush1.bf16.msra.mxu1 %v7238_v27  ;;  %v1275_v26 = vld [vmem:[%s9504_s16 + $0x408] sm:$0xff] }
 0x145   : > { %2063 = vmatprep.subr.bf16.mxu0 %v7245_v28  ;;  %2169 = vmatprep.subr.bf16.mxu1 %v7247_v29  ;;  %v1279_v27 = vld [vmem:[%s9504_s16 + $0x428] sm:$0xff]  ;;  %v7300_v28 = vcombine.low %v1266_v16, %v1270_v17  ;;  %v7302_v29 = vcombine.low %v1267_v18, %v1271_v19  ;;  %v1184_v16 = vld [vmem:[%s9504_s16 + $0x130] sm:$0xff]  ;;  %v1181_v17 = vld [vmem:[%s9504_s16 + $0x118] sm:$0xff] }
 0x146   : > { %v7311_v31 = vcombine.high %v1275_v26, %v1279_v27  ;;  %v7310_v39 = vcombine.low %v1275_v26, %v1279_v27  ;;  %v1185_v18 = vld [vmem:[%s9504_s16 + $0x138] sm:$0xff] }
 0x147   : > { %v1193_v26 = vld [vmem:[%s9504_s16 + $0x178] sm:$0xff] }
 0x148   : > { %2064 = vmatpush1.bf16.msra.mxu0 %v7244_v34  ;;  %2170 = vmatpush1.bf16.msra.mxu1 %v7246_v35  ;;  %v1286_v34 = vld [vmem:[%s9504_s16 + $0x460] sm:$0xff]  ;;  %v7308_v35 = vcombine.low %v1274_v24, %v1278_v25  ;;  %v1192_v24 = vld [vmem:[%s9504_s16 + $0x170] sm:$0xff]  ;;  %v1189_v25 = vld [vmem:[%s9504_s16 + $0x158] sm:$0xff] }
 0x149   : > { %2065 = vmatprep.subr.bf16.mxu0 %v7253_v36  ;;  %2171 = vmatprep.subr.bf16.mxu1 %v7255_v37  ;;  %v1283_v36 = vld [vmem:[%s9504_s16 + $0x448] sm:$0xff]  ;;  %v7317_v40 = vcombine.high %v1282_v33, %v1286_v34 }
 0x14a   : > { %v1287_v37 = vld [vmem:[%s9504_s16 + $0x468] sm:$0xff] }
 0x14b   : > { %v7318_v48 = vcombine.low %v1283_v36, %v1287_v37 }
 0x14c   : > { %2066 = vmatpush1.bf16.msra.mxu0 %v7252_v42  ;;  %2172 = vmatpush1.bf16.msra.mxu1 %v7254_v43  ;;  %v1152_v42 = vld [vmem:[%s9504_s16 + $0x30] sm:$0xff]  ;;  %v7319_v43 = vcombine.high %v1283_v36, %v1287_v37 }
 0x14d   : > { %2067 = vmatprep.subr.bf16.mxu0 %v7261_v44  ;;  %2173 = vmatprep.subr.bf16.mxu1 %v7263_v45  ;;  %v7316_v44 = vcombine.low %v1282_v33, %v1286_v34  ;;  %v1149_v45 = vld [vmem:[%s9504_s16 + $0x18] sm:$0xff]  ;;  %v7185_v47 = vcombine.high %v1148_v41, %v1152_v42  ;;  %v7184_v57 = vcombine.low %v1148_v41, %v1152_v42  ;;  %v1200_v33 = vld [vmem:[%s9504_s16 + $0x1b0] sm:$0xff] }
 0x14e   : > { %v7186_v58 = vcombine.low %v1149_v45, %v1153_v46  ;;  %v1197_v34 = vld [vmem:[%s9504_s16 + $0x198] sm:$0xff]  ;;  %v1208_v41 = vld [vmem:[%s9504_s16 + $0x1f0] sm:$0xff] }
 0x14f   : > { %v1205_v42 = vld [vmem:[%s9504_s16 + $0x1d8] sm:$0xff] }
 0x150   : > { %2068 = vmatpush1.bf16.msra.mxu0 %v7260_v50  ;;  %2174 = vmatpush1.bf16.msra.mxu1 %v7262_v51  ;;  %v7187_v50 = vcombine.high %v1149_v45, %v1153_v46  ;;  %v1156_v51 = vld [vmem:[%s9504_s16 + $0x50] sm:$0xff] }
 0x151   : > { %2069 = vmatprep.subr.bf16.mxu0 %v7269_v52  ;;  %2175 = vmatprep.subr.bf16.mxu1 %v7271_v53  ;;  %v1160_v52 = vld [vmem:[%s9504_s16 + $0x70] sm:$0xff]  ;;  %v9714_v53 = vld [vmem:[#allocation2 + $0x8] ss:$12 sps:$4 sm:$0xff]  }
 0x152   : > { %v7192_v1 = vcombine.low %v1156_v51, %v1160_v52 }
 0x154   : > { %2070 = vmatpush1.bf16.msra.mxu0 %v7268_v59  ;;  %2176 = vmatpush1.bf16.msra.mxu1 %v7270_v60  ;;  %v7193_v59 = vcombine.high %v1156_v51, %v1160_v52  ;;  %v7195_v60 = vcombine.high %v1157_v55, %v1161_v56  ;;  %v1213_v51 = vld [vmem:[%s9504_s16 + $0x218] sm:$0xff] }
 0x155   : > { %2071 = vmatprep.subr.bf16.mxu0 %v7277_v61  ;;  %2177 = vmatprep.subr.bf16.mxu1 %v7279_v62  ;;  %v1164_v61 = vld [vmem:[%s9504_s16 + $0x90] sm:$0xff]  ;;  %v1217_v52 = vld [vmem:[%s9504_s16 + $0x238] sm:$0xff] }
 0x156   : > { %v1168_v62 = vld [vmem:[%s9504_s16 + $0xb0] sm:$0xff] }
 0x157   : > { %v7200_v11 = vcombine.low %v1164_v61, %v1168_v62 }
 0x158   : > { %2072 = vmatpush1.bf16.msra.mxu0 %v7276_v3  ;;  %2178 = vmatpush1.bf16.msra.mxu1 %v7278_v4  ;;  %v7201_v3 = vcombine.high %v1164_v61, %v1168_v62  ;;  %v7203_v4 = vcombine.high %v1165_v63, %v1169_v0  ;;  %v1221_v61 = vld [vmem:[%s9504_s16 + $0x258] sm:$0xff] }
 0x159   : > { %2073 = vmatprep.subr.bf16.mxu0 %v7285_v5  ;;  %2179 = vmatprep.subr.bf16.mxu1 %v7287_v6  ;;  %v1172_v5 = vld [vmem:[%s9504_s16 + $0xd0] sm:$0xff]  ;;  %v1225_v62 = vld [vmem:[%s9504_s16 + $0x278] sm:$0xff] }
 0x15a   : > { %v1176_v6 = vld [vmem:[%s9504_s16 + $0xf0] sm:$0xff] }
 0x15b   : > { %v7208_v19 = vcombine.low %v1172_v5, %v1176_v6 }
 0x15c   : > { %2074 = vmatpush1.bf16.msra.mxu0 %v7284_v12  ;;  %2180 = vmatpush1.bf16.msra.mxu1 %v7286_v13  ;;  %v7202_v12 = vcombine.low %v1165_v63, %v1169_v0  ;;  %v7209_v13 = vcombine.high %v1172_v5, %v1176_v6  ;;  %v7250_v0 = vcombine.low %v1213_v51, %v1217_v52  ;;  %v1229_v5 = vld [vmem:[%s9504_s16 + $0x298] sm:$0xff] }
 0x15d   : > { %2075 = vmatprep.subr.bf16.mxu0 %v7293_v14  ;;  %2181 = vmatprep.subr.bf16.mxu1 %v7295_v15  ;;  %v7211_v14 = vcombine.high %v1173_v7, %v1177_v8  ;;  %v1180_v15 = vld [vmem:[%s9504_s16 + $0x110] sm:$0xff]  ;;  %v1233_v6 = vld [vmem:[%s9504_s16 + $0x2b8] sm:$0xff] }
 0x15e   : > { %v7216_v27 = vcombine.low %v1180_v15, %v1184_v16 }
 0x160   : > { %2076 = vmatpush1.bf16.msra.mxu0 %v7292_v20  ;;  %2182 = vmatpush1.bf16.msra.mxu1 %v7294_v21  ;;  %v7210_v20 = vcombine.low %v1173_v7, %v1177_v8  ;;  %v7217_v21 = vcombine.high %v1180_v15, %v1184_v16  ;;  %v7258_v8 = vcombine.low %v1221_v61, %v1225_v62  ;;  %v1237_v15 = vld [vmem:[%s9504_s16 + $0x2d8] sm:$0xff] }
 0x161   : > { %2077 = vmatprep.subr.bf16.mxu0 %v7301_v22  ;;  %2183 = vmatprep.subr.bf16.mxu1 %v7303_v23  ;;  %v7219_v22 = vcombine.high %v1181_v17, %v1185_v18  ;;  %v1188_v23 = vld [vmem:[%s9504_s16 + $0x150] sm:$0xff]  ;;  %v1241_v16 = vld [vmem:[%s9504_s16 + $0x2f8] sm:$0xff] }
 0x162   : > { %v7224_v36 = vcombine.low %v1188_v23, %v1192_v24 }
 0x164   : > { %2078 = vmatpush1.bf16.msra.mxu0 %v7300_v28  ;;  %2184 = vmatpush1.bf16.msra.mxu1 %v7302_v29  ;;  %v7218_v28 = vcombine.low %v1181_v17, %v1185_v18  ;;  %v7225_v29 = vcombine.high %v1188_v23, %v1192_v24  ;;  %v7266_v18 = vcombine.low %v1229_v5, %v1233_v6  ;;  %v1245_v23 = vld [vmem:[%s9504_s16 + $0x318] sm:$0xff] }
 0x165   : > { %2100 = vmatprep.subr.bf16.mxu0 %v7309_v30  ;;  %2206 = vmatprep.subr.bf16.mxu1 %v7311_v31  ;;  %v7227_v30 = vcombine.high %v1189_v25, %v1193_v26  ;;  %v1196_v31 = vld [vmem:[%s9504_s16 + $0x190] sm:$0xff]  ;;  %v1249_v24 = vld [vmem:[%s9504_s16 + $0x338] sm:$0xff] }
 0x166   : > { %v7233_v37 = vcombine.high %v1196_v31, %v1200_v33 }
 0x167   : > { %2080 = vmatmul.mubr.bf16.vlgmr.msra.gmra.mrb[0].mxu0 %v9690_v32  ;;  %2186 = vmatmul.mubr.bf16.vlgmr.msra.gmra.mrb[0].mxu1 %v9690_v32 }
 0x168   : > { %2101 = vmatpush1.bf16.msra.mxu0 %v7308_v35  ;;  %2089 = vmatprep.mubr.bf16.mxu0 %v9696_v38  ;;  %v1201_v35 = vld [vmem:[%s9504_s16 + $0x1b8] sm:$0xff] }
 0x169   : > { %2195 = vmatprep.mubr.bf16.mxu1 %v9696_v38  ;;  %2102 = vmatprep.subr.bf16.mxu0 %v7317_v40  ;;  %v1204_v40 = vld [vmem:[%s9504_s16 + $0x1d0] sm:$0xff]  ;;  %v7234_v45 = vcombine.low %v1197_v34, %v1201_v35 }
 0x16a   : > { %2207 = vmatpush1.bf16.msra.mxu1 %v7310_v39  ;;  %v7235_v39 = vcombine.high %v1197_v34, %v1201_v35  ;;  %v7241_v46 = vcombine.high %v1204_v40, %v1208_v41  ;;  %v7240_v55 = vcombine.low %v1204_v40, %v1208_v41  ;;  %v7282_v35 = vcombine.low %v1245_v23, %v1249_v24  ;;  %v1261_v40 = vld [vmem:[%s9504_s16 + $0x398] sm:$0xff] }
 0x16b   : > { %2208 = vmatprep.subr.bf16.mxu1 %v7319_v43  ;;  %v1209_v43 = vld [vmem:[%s9504_s16 + $0x1f8] sm:$0xff] }
 0x16c   : > { %2103 = vmatpush1.bf16.msra.mxu0 %v7316_v44  ;;  %v7232_v44 = vcombine.low %v1196_v31, %v1200_v33  ;;  %v7242_v56 = vcombine.low %v1205_v42, %v1209_v43  ;;  %v1253_v31 = vld [vmem:[%s9504_s16 + $0x358] sm:$0xff] }
 0x16d   : > { %2259 = vmatprep.subr.bf16.mxu0 %v7185_v47  ;;  %v7243_v47 = vcombine.high %v1205_v42, %v1209_v43  ;;  %v1257_v33 = vld [vmem:[%s9504_s16 + $0x378] sm:$0xff] }
 0x16e   : > { %2209 = vmatpush1.bf16.msra.mxu1 %v7318_v48  ;;  %v1212_v48 = vld [vmem:[%s9504_s16 + $0x210] sm:$0xff]  ;;  %v1265_v41 = vld [vmem:[%s9504_s16 + $0x3b8] sm:$0xff]  ;;  %v7290_v43 = vcombine.low %v1253_v31, %v1257_v33 }
 0x16f   : > { %2090 = vmatmul.mubr.bf16.gmra.mrb[4].mxu0 %v9706_v49  ;;  %2365 = vmatprep.subr.bf16.mxu1 %v7187_v50  ;;  %v1216_v50 = vld [vmem:[%s9504_s16 + $0x230] sm:$0xff] }
 0x170   : > { %2196 = vmatmul.mubr.bf16.gmra.mrb[4].mxu1 %v9706_v49  ;;  %2132 = vmatprep.mubr.bf16.mxu0 %v9098_v10  ;;  %v7248_v63 = vcombine.low %v1212_v48, %v1216_v50 }
 0x171   : > { %2238 = vmatprep.mubr.bf16.mxu1 %v9098_v10 }
 0x177   : > { %7324 = vmatmul.mubr.msk.bf16.vlgmr.msra.gmra.mrb[0].mxu0 %vm2040_vm4, %v9714_v53 }
 0x178   : > { %7326 = vmatmul.mubr.msk.bf16.vlgmr.msra.gmra.mrb[0].mxu1 %vm2040_vm4, %v9714_v53  ;;  %2260 = vmatpush1.bf16.msra.mxu0 %v7184_v57  ;;  %v7249_v57 = vcombine.high %v1212_v48, %v1216_v50  ;;  %v1269_v48 = vld [vmem:[%s9504_s16 + $0x3d8] sm:$0xff] }
 0x179   : > { %2366 = vmatpush1.bf16.msra.mxu1 %v7186_v58  ;;  %2261 = vmatprep.subr.bf16.mxu0 %v7193_v59  ;;  %v7251_v58 = vcombine.high %v1213_v51, %v1217_v52  ;;  %v1220_v59 = vld [vmem:[%s9504_s16 + $0x250] sm:$0xff]  ;;  %v1273_v50 = vld [vmem:[%s9504_s16 + $0x3f8] sm:$0xff]  ;;  %v7298_v52 = vcombine.low %v1261_v40, %v1265_v41 }
 0x17a   : > { %2367 = vmatprep.subr.bf16.mxu1 %v7195_v60  ;;  %2142 = vmatprep.mubr.bf16.mxu0 %v9098_v10  ;;  %v1224_v60 = vld [vmem:[%s9504_s16 + $0x270] sm:$0xff] }
 0x17b   : > { %2248 = vmatprep.mubr.bf16.mxu1 %v9098_v10  ;;  %v7256_v7 = vcombine.low %v1220_v59, %v1224_v60 }
 0x17c   : > { %2262 = vmatpush1.bf16.msra.mxu0 %v7192_v1  ;;  %v7257_v1 = vcombine.high %v1220_v59, %v1224_v60  ;;  %v1277_v59 = vld [vmem:[%s9504_s16 + $0x418] sm:$0xff] }
 0x17d   : > { %2368 = vmatpush1.bf16.msra.mxu1 %v7194_v2  ;;  %2263 = vmatprep.subr.bf16.mxu0 %v7201_v3  ;;  %v7259_v2 = vcombine.high %v1221_v61, %v1225_v62  ;;  %v1228_v3 = vld [vmem:[%s9504_s16 + $0x290] sm:$0xff]  ;;  %v1281_v60 = vld [vmem:[%s9504_s16 + $0x438] sm:$0xff]  ;;  %v7306_v62 = vcombine.low %v1269_v48, %v1273_v50 }
 0x17e   : > { %2369 = vmatprep.subr.bf16.mxu1 %v7203_v4  ;;  %v1232_v4 = vld [vmem:[%s9504_s16 + $0x2b0] sm:$0xff] }
 0x17f   : > { %7325 = vmatmul.mubr.msk.bf16.gmra.mrb[4].mxu0 %vm2040_vm4, %v9732_v9  ;;  %v7264_v17 = vcombine.low %v1228_v3, %v1232_v4 }
 0x180   : > { %2264 = vmatpush1.bf16.msra.mxu0 %v7200_v11  ;;  %7327 = vmatmul.mubr.msk.bf16.gmra.mrb[4].mxu1 %vm2040_vm4, %v9732_v9  ;;  %v7265_v11 = vcombine.high %v1228_v3, %v1232_v4  ;;  %v1285_v4 = vld [vmem:[%s9504_s16 + $0x458] sm:$0xff] }
 0x181   : > { %2370 = vmatpush1.bf16.msra.mxu1 %v7202_v12  ;;  %2265 = vmatprep.subr.bf16.mxu0 %v7209_v13  ;;  %v7267_v12 = vcombine.high %v1229_v5, %v1233_v6  ;;  %v1236_v13 = vld [vmem:[%s9504_s16 + $0x2d0] sm:$0xff]  ;;  %v1289_v5 = vld [vmem:[%s9504_s16 + $0x478] sm:$0xff]  ;;  %v7314_v6 = vcombine.low %v1277_v59, %v1281_v60 }
 0x182   : > { %2371 = vmatprep.subr.bf16.mxu1 %v7211_v14  ;;  %2291 = vmatprep.mubr.bf16.mxu0 %v9632_v54  ;;  %v1240_v14 = vld [vmem:[%s9504_s16 + $0x2f0] sm:$0xff] }
 0x183   : > { %2397 = vmatprep.mubr.bf16.mxu1 %v9632_v54  ;;  %v7226_v54 = vcombine.low %v1189_v25, %v1193_v26  ;;  %v7272_v25 = vcombine.low %v1236_v13, %v1240_v14  ;;  %v7274_v26 = vcombine.low %v1237_v15, %v1241_v16 }
 0x184   : > { %2266 = vmatpush1.bf16.msra.mxu0 %v7208_v19  ;;  %v7273_v19 = vcombine.high %v1236_v13, %v1240_v14  ;;  %v7333_v14 = vld [vmem:[%s9497_s24 + $0x128] sm:$0xff] }
 0x185   : > { %2372 = vmatpush1.bf16.msra.mxu1 %v7210_v20  ;;  %2267 = vmatprep.subr.bf16.mxu0 %v7217_v21  ;;  %v7275_v20 = vcombine.high %v1237_v15, %v1241_v16  ;;  %v1244_v21 = vld [vmem:[%s9504_s16 + $0x310] sm:$0xff]  ;;  %v7337_v15 = vld [vmem:[%s9497_s24 + $0x148] sm:$0xff] }
 0x186   : > { %2373 = vmatprep.subr.bf16.mxu1 %v7219_v22  ;;  %v1248_v22 = vld [vmem:[%s9504_s16 + $0x330] sm:$0xff] }
 0x187   : > { %v7280_v34 = vcombine.low %v1244_v21, %v1248_v22 }
 0x188   : > { %2268 = vmatpush1.bf16.msra.mxu0 %v7216_v27  ;;  %v7281_v27 = vcombine.high %v1244_v21, %v1248_v22  ;;  %v7341_v21 = vld [vmem:[%s9497_s24 + $0x168] sm:$0xff] }
 0x189   : > { %2374 = vmatpush1.bf16.msra.mxu1 %v7218_v28  ;;  %2269 = vmatprep.subr.bf16.mxu0 %v7225_v29  ;;  %v7283_v28 = vcombine.high %v1245_v23, %v1249_v24  ;;  %v1252_v29 = vld [vmem:[%s9504_s16 + $0x350] sm:$0xff]  ;;  %v7345_v22 = vld [vmem:[%s9497_s24 + $0x188] sm:$0xff] }
 0x18a   : > { %2375 = vmatprep.subr.bf16.mxu1 %v7227_v30  ;;  %v1256_v30 = vld [vmem:[%s9504_s16 + $0x370] sm:$0xff] }
 0x18b   : > { %v7288_v42 = vcombine.low %v1252_v29, %v1256_v30 }
 0x18c   : > { %2270 = vmatpush1.bf16.msra.mxu0 %v7224_v36  ;;  %v7289_v36 = vcombine.high %v1252_v29, %v1256_v30  ;;  %v7381_v29 = vcombine.high %v7341_v21, %v7345_v22  ;;  %v7348_v30 = vld [vmem:[%s9497_s24 + $0x1a0] sm:$0xff] }
 0x18d   : > { %2376 = vmatpush1.bf16.msra.mxu1 %v7226_v54  ;;  %2271 = vmatprep.subr.bf16.mxu0 %v7233_v37  ;;  %v7291_v54 = vcombine.high %v1253_v31, %v1257_v33  ;;  %v1260_v37 = vld [vmem:[%s9504_s16 + $0x390] sm:$0xff]  ;;  %v7352_v31 = vld [vmem:[%s9497_s24 + $0x1c0] sm:$0xff]  ;;  %v7349_v33 = vld [vmem:[%s9497_s24 + $0x1a8] sm:$0xff] }
 0x18e   : > { %2377 = vmatprep.subr.bf16.mxu1 %v7235_v39  ;;  %v1264_v39 = vld [vmem:[%s9504_s16 + $0x3b0] sm:$0xff] }
 0x18f   : > { %v7296_v51 = vcombine.low %v1260_v37, %v1264_v39 }
 0x190   : > { %2272 = vmatpush1.bf16.msra.mxu0 %v7232_v44  ;;  %v7297_v44 = vcombine.high %v1260_v37, %v1264_v39 }
 0x191   : > { %2378 = vmatpush1.bf16.msra.mxu1 %v7234_v45  ;;  %2273 = vmatprep.subr.bf16.mxu0 %v7241_v46  ;;  %v7299_v45 = vcombine.high %v1261_v40, %v1265_v41  ;;  %v1268_v46 = vld [vmem:[%s9504_s16 + $0x3d0] sm:$0xff]  ;;  %v2505_v40 = vld [vmem:[%s9539_s0 + $0x8] sm:$0x1]  ;;  %v7380_v41 = vcombine.low %v7341_v21, %v7345_v22 }
 0x192   : > { %2379 = vmatprep.subr.bf16.mxu1 %v7243_v47  ;;  %v1272_v47 = vld [vmem:[%s9504_s16 + $0x3f0] sm:$0xff] }
 0x193   : > { %v7304_v61 = vcombine.low %v1268_v46, %v1272_v47 }
 0x194   : > { %2274 = vmatpush1.bf16.msra.mxu0 %v7240_v55  ;;  %v7305_v55 = vcombine.high %v1268_v46, %v1272_v47  ;;  %v7356_v46 = vld [vmem:[%s9497_s24 + $0x1e0] sm:$0xff] }
 0x195   : > { %2380 = vmatpush1.bf16.msra.mxu1 %v7242_v56  ;;  %2275 = vmatprep.subr.bf16.mxu0 %v7249_v57  ;;  %v7307_v56 = vcombine.high %v1269_v48, %v1273_v50  ;;  %v1276_v57 = vld [vmem:[%s9504_s16 + $0x410] sm:$0xff]  ;;  %v7360_v47 = vld [vmem:[%s9497_s24 + $0x200] sm:$0xff]  ;;  %v7386_v48 = vcombine.low %v7348_v30, %v7352_v31  ;;  %v7361_v50 = vld [vmem:[%s9497_s24 + $0x208] sm:$0xff] }
 0x196   : > { %2381 = vmatprep.subr.bf16.mxu1 %v7251_v58  ;;  %v1280_v58 = vld [vmem:[%s9504_s16 + $0x430] sm:$0xff] }
 0x197   : > { %v7312_v3 = vcombine.low %v1276_v57, %v1280_v58 }
 0x198   : > { %2276 = vmatpush1.bf16.msra.mxu0 %v7248_v63  ;;  %v7313_v63 = vcombine.high %v1276_v57, %v1280_v58 }
 0x199   : > { %2382 = vmatpush1.bf16.msra.mxu1 %v7250_v0  ;;  %2277 = vmatprep.subr.bf16.mxu0 %v7257_v1  ;;  %v7315_v0 = vcombine.high %v1277_v59, %v1281_v60  ;;  %v1284_v1 = vld [vmem:[%s9504_s16 + $0x450] sm:$0xff] }
 0x19a   : > { %2383 = vmatprep.subr.bf16.mxu1 %v7259_v2  ;;  %v1288_v2 = vld [vmem:[%s9504_s16 + $0x470] sm:$0xff] }
 0x19b   : > { %v7320_v13 = vcombine.low %v1284_v1, %v1288_v2 }
 0x19c   : > { %2278 = vmatpush1.bf16.msra.mxu0 %v7256_v7  ;;  %v7321_v7 = vcombine.high %v1284_v1, %v1288_v2  ;;  %v7365_v1 = vld [vmem:[%s9497_s24 + $0x228] sm:$0xff] }
 0x19d   : > { %2384 = vmatpush1.bf16.msra.mxu1 %v7258_v8  ;;  %2279 = vmatprep.subr.bf16.mxu0 %v7265_v11  ;;  %v7332_v8 = vld [vmem:[%s9497_s24 + $0x120] sm:$0xff] }
 0x19e   : > { %2385 = vmatprep.subr.bf16.mxu1 %v7267_v12  ;;  %v7336_v11 = vld [vmem:[%s9497_s24 + $0x140] sm:$0xff]  ;;  %v7323_v12 = vcombine.high %v1285_v4, %v1289_v5 }
 0x19f   : > { %v7371_v16 = vcombine.high %v7332_v8, %v7336_v11 }
 0x1a0   : > { %2280 = vmatpush1.bf16.msra.mxu0 %v7264_v17  ;;  %v7322_v17 = vcombine.low %v1285_v4, %v1289_v5 }
 0x1a1   : > { %2386 = vmatpush1.bf16.msra.mxu1 %v7266_v18  ;;  %2281 = vmatprep.subr.bf16.mxu0 %v7273_v19  ;;  %v2504_v18 = vld [vmem:[%s9539_s0 + $0x4] sm:$0xf]  ;;  %v7340_v19 = vld [vmem:[%s9497_s24 + $0x160] sm:$0xff] }
 0x1a2   : > { %2387 = vmatprep.subr.bf16.mxu1 %v7275_v20  ;;  %v7344_v20 = vld [vmem:[%s9497_s24 + $0x180] sm:$0xff] }
 0x1a3   : > { %v7378_v39 = vcombine.low %v7340_v19, %v7344_v20 }
 0x1a4   : > { %2282 = vmatpush1.bf16.msra.mxu0 %v7272_v25  ;;  %v2522_v25 = vshll.u32 %v2504_v18, 16 }
 0x1a5   : > { %2388 = vmatpush1.bf16.msra.mxu1 %v7274_v26  ;;  %2283 = vmatprep.subr.bf16.mxu0 %v7281_v27  ;;  %v2526_v26 = vshrl.u32 %v2504_v18, 16  ;;  %v7370_v27 = vcombine.low %v7332_v8, %v7336_v11  ;;  %v7339_v18 = vld [vmem:[%s9497_s24 + $0x158] sm:$0xff] }
 0x1a6   : > { %2389 = vmatprep.subr.bf16.mxu1 %v7283_v28  ;;  %v7379_v28 = vcombine.high %v7340_v19, %v7344_v20 }
 0x1a7   : > { %v2528_v37 = vrot.slane %v2526_v26, 4 }
 0x1a8   : > { %2284 = vmatpush1.bf16.msra.mxu0 %v7280_v34  ;;  %v7353_v34 = vld [vmem:[%s9497_s24 + $0x1c8] sm:$0xff] }
 0x1a9   : > { %2390 = vmatpush1.bf16.msra.mxu1 %v7282_v35  ;;  %2285 = vmatprep.subr.bf16.mxu0 %v7289_v36  ;;  %v7388_v60 = vcombine.low %v7349_v33, %v7353_v34 }
 0x1aa   : > { %2391 = vmatprep.subr.bf16.mxu1 %v7291_v54  ;;  %v9820_v54 = vrot.slane %v2522_v25, 5 }
 0x1ac   : > { %2286 = vmatpush1.bf16.msra.mxu0 %v7288_v42  ;;  %v7387_v42 = vcombine.high %v7348_v30, %v7352_v31  ;;  %v7343_v30 = vld [vmem:[%s9497_s24 + $0x178] sm:$0xff] }
 0x1ad   : > { %2392 = vmatpush1.bf16.msra.mxu1 %v7290_v43  ;;  %2287 = vmatprep.subr.bf16.mxu0 %v7297_v44  ;;  %v2506_v43 = vld [vmem:[%s9539_s0 + $0xc] sm:$0xf]  ;;  %v2507_v44 = vld [vmem:[%s9539_s0 + $0x10] sm:$0xf]  ;;  %v7347_v31 = vld [vmem:[%s9497_s24 + $0x198] sm:$0xff] }
 0x1ae   : > { %2393 = vmatprep.subr.bf16.mxu1 %v7299_v45  ;;  %v7389_v45 = vcombine.high %v7349_v33, %v7353_v34  ;;  %v2540_v57 = vshll.u32 %v2506_v43, 16  ;;  %v2546_v58 = vshll.u32 %v2507_v44, 16  ;;  %v2550_v59 = vshrl.u32 %v2507_v44, 16 }
 0x1b0   : > { %2288 = vmatpush1.bf16.msra.mxu0 %v7296_v51  ;;  %v9844_v8 = vrot.slane %v2546_v58, 5  ;;  %v2552_v11 = vrot.slane %v2550_v59, 4  ;;  %v2560_v58 = vld [vmem:[#allocation2] sm:$0xff]  ;;  %v2562_v59 = vld [vmem:[#allocation2 + $0xc] sm:$0xff] }
 0x1b1   : > { %2394 = vmatpush1.bf16.msra.mxu1 %v7298_v52  ;;  %2289 = vmatprep.subr.bf16.mxu0 %v7305_v55  ;;  %v2529_v52 = vor.u32 %v2528_v37, %v9820_v54  ;;  %v2532_v55 = vshll.u32 %v2505_v40, 16  ;;  %v7350_v40 = vld [vmem:[%s9497_s24 + $0x1b0] sm:$0xff] }
 0x1b2   : > { %2395 = vmatprep.subr.bf16.mxu1 %v7307_v56  ;;  %v2537_v56 = vshrl.u32 %v2506_v43, 16  ;;  %v2553_v22 = vor.u32 %v2552_v11, %v9844_v8  ;;  %v7355_v43 = vld [vmem:[%s9497_s24 + $0x1d8] sm:$0xff] }
 0x1b3   : > { %v2534_v4 = vrot.slane %v2532_v55, 5  ;;  %v7363_v55 = vld [vmem:[%s9497_s24 + $0x218] sm:$0xff] }
 0x1b4   : > { %2290 = vmatpush1.bf16.msra.mxu0 %v7304_v61  ;;  %v7395_v61 = vcombine.high %v7356_v46, %v7360_v47 }
 0x1b5   : > { %2396 = vmatpush1.bf16.msra.mxu1 %v7306_v62  ;;  %2312 = vmatprep.subr.bf16.mxu0 %v7313_v63  ;;  %v7364_v63 = vld [vmem:[%s9497_s24 + $0x220] sm:$0xff] }
 0x1b6   : > { %2418 = vmatprep.subr.bf16.mxu1 %v7315_v0  ;;  %v7394_v0 = vcombine.low %v7356_v46, %v7360_v47  ;;  %v7384_v47 = vcombine.low %v7343_v30, %v7347_v31 }
 0x1b7   : > { %2292 = vmatmul.mubr.bf16.vlgmr.msra.gmra.mrb[8].mxu0 %v9690_v32 }
 0x1b8   : > { %2398 = vmatmul.mubr.bf16.vlgmr.msra.gmra.mrb[8].mxu1 %v9690_v32  ;;  %2313 = vmatpush1.bf16.msra.mxu0 %v7312_v3  ;;  %v7373_v32 = vcombine.high %v7333_v14, %v7337_v15  ;;  %v2530_v3 = vrot.slane %v2529_v52, 4  ;;  %v7359_v52 = vld [vmem:[%s9497_s24 + $0x1f8] sm:$0xff] }
 0x1b9   : > { %2301 = vmatprep.mubr.bf16.mxu0 %v9696_v38  ;;  %2407 = vmatprep.mubr.bf16.mxu1 %v9696_v38  ;;  %v2503_v38 = vld [vmem:[%s9539_s0] sm:$0xf] }
 0x1ba   : > { %2314 = vmatprep.subr.bf16.mxu0 %v7321_v7  ;;  %2419 = vmatpush1.bf16.msra.mxu1 %v7314_v6  ;;  %v2513_v23 = vshrl.u32 %v2503_v38, 16  ;;  %v2516_v24 = vshll.u32 %v2503_v38, 16  ;;  %v2539_v6 = vrot.slane %v2537_v56, 4  ;;  %v2542_v7 = vrot.slane %v2540_v57, 5  ;;  %v7335_v38 = vld [vmem:[%s9497_s24 + $0x138] sm:$0xff] }
 0x1bb   : > { %2420 = vmatprep.subr.bf16.mxu1 %v7323_v12  ;;  %v2535_v20 = vsel %vm9840_vm7, %v2530_v3, %v2534_v4  ;;  %v2582_v3 = vshll.u32 %v2562_v59, 16  ;;  %v2600_v4 = vshrl.u32 %v2562_v59, 16  ;;  %v7454_v59 = vld [vmem:[%s9504_s16 + $0x580] sm:$0xff] }
 0x1bc   : > { %2315 = vmatpush1.bf16.msra.mxu0 %v7320_v13  ;;  %v2515_v35 = vrot.slane %v2513_v23, 4  ;;  %v2518_v36 = vrot.slane %v2516_v24, 5  ;;  %v7403_v13 = vcombine.high %v7364_v63, %v7364_v63  ;;  %v2543_v21 = vor.u32 %v2542_v7, %v2539_v6 }
 0x1bd   : > { %2921 = vmatprep.subr.bf16.mxu0 %v7371_v16  ;;  %v7404_v16 = vcombine.low %v7365_v1, %v7365_v1  ;;  %v7400_v7 = vcombine.low %v7359_v52, %v7363_v55 }
 0x1be   : > { %2421 = vmatpush1.bf16.msra.mxu1 %v7322_v17  ;;  %v2519_v51 = vor.u32 %v2518_v36, %v2515_v35  ;;  %v7334_v17 = vld [vmem:[%s9497_s24 + $0x130] sm:$0xff]  ;;  %v2544_v34 = vrot.slane %v2543_v21, 4  ;;  %v2554_v35 = vrot.slane %v2553_v22, 4 }
 0x1bf   : > { %2302 = vmatmul.mubr.bf16.gmra.mrb[12].mxu0 %v9706_v49  ;;  %2974 = vmatprep.subr.bf16.mxu1 %v7373_v32  ;;  %v7338_v32 = vld [vmem:[%s9497_s24 + $0x150] sm:$0xff]  ;;  %v2904_v26 = vsel %vm836_vm2, %v7404_v16, 0  ;;  %v7427_v16 = vld [vmem:[%s9504_s16 + $0x4a8] sm:$0xff] }
 0x1c0   : > { %2408 = vmatmul.mubr.bf16.gmra.mrb[12].mxu1 %v9706_v49  ;;  %2344 = vmatprep.mubr.bf16.mxu0 %v9098_v10  ;;  %v7372_v49 = vcombine.low %v7333_v14, %v7337_v15  ;;  %v2520_v2 = vrot.slane %v2519_v51, 4  ;;  %v7402_v14 = vcombine.low %v7364_v63, %v7364_v63  ;;  %v2508_v15 = vld [vmem:[%s9539_s0 + $0x14] sm:$0x1]  ;;  %v7375_v25 = vcombine.high %v7334_v17, %v7338_v32  ;;  %v7362_v51 = vld [vmem:[%s9497_s24 + $0x210] sm:$0xff] }
 0x1c1   : > { %2450 = vmatprep.mubr.bf16.mxu1 %v9098_v10  ;;  %v2556_v23 = vshll.u32 %v2508_v15, 16  ;;  %v7374_v33 = vcombine.low %v7334_v17, %v7338_v32  ;;  %v7366_v63 = vld [vmem:[%s9497_s24 + $0x230] sm:$0xff]  ;;  %v7426_v15 = vld [vmem:[%s9504_s16 + $0x4a0] sm:$0xff] }
 0x1c2   : > { %v2525_v19 = vsel %vm9840_vm7, %v2520_v2, %v9820_v54  ;;  %v2898_v24 = vsel %vm836_vm2, %v7402_v14, 0  ;;  %v7376_v54 = vcombine.low %v7335_v38, %v7339_v18  ;;  %v2576_v2 = vshll.u32 %v2560_v58, 16  ;;  %v7422_v14 = vld [vmem:[%s9504_s16 + $0x480] sm:$0xff] }
 0x1c3   : > { %v2558_v36 = vrot.slane %v2556_v23, 5  ;;  %v7406_v11 = vcombine.low %v7366_v63, %v7366_v63  ;;  %v7573_v21 = vcombine.high %v7422_v14, %v7426_v15 }
 0x1c4   : > { %v2578_v32 = vrot.slane %v2576_v2, 5 }
 0x1c5   : > { %v2559_v46 = vsel %vm9840_vm7, %v2554_v35, %v2558_v36  ;;  %v7438_v36 = vld [vmem:[%s9504_s16 + $0x500] sm:$0xff] }
 0x1c7   : > { %7328 = vmatmul.mubr.msk.bf16.vlgmr.msra.gmra.mrb[8].mxu0 %vm2040_vm4, %v9714_v53 }
 0x1c8   : > { %7330 = vmatmul.mubr.msk.bf16.vlgmr.msra.gmra.mrb[8].mxu1 %vm2040_vm4, %v9714_v53  ;;  %2922 = vmatpush1.bf16.msra.mxu0 %v7370_v27  ;;  %v7357_v53 = vld [vmem:[%s9497_s24 + $0x1e8] sm:$0xff]  ;;  %v7377_v27 = vcombine.high %v7335_v38, %v7339_v18  ;;  %v2584_v38 = vrot.slane %v2582_v3, 5  ;;  %v2602_v18 = vrot.slane %v2600_v4, 4  ;;  %v7462_v4 = vld [vmem:[%s9504_s16 + $0x5c0] sm:$0xff] }
 0x1c9   : > { %2975 = vmatpush1.bf16.msra.mxu1 %v7372_v49  ;;  %2923 = vmatprep.subr.bf16.mxu0 %v7379_v28  ;;  %v7397_v62 = vcombine.high %v7357_v53, %v7361_v50  ;;  %v7396_v12 = vcombine.low %v7357_v53, %v7361_v50  ;;  %v7342_v49 = vld [vmem:[%s9497_s24 + $0x170] sm:$0xff] }
 0x1ca   : > { %2976 = vmatprep.subr.bf16.mxu1 %v7381_v29  ;;  %2354 = vmatprep.mubr.bf16.mxu0 %v9098_v10  ;;  %v7346_v28 = vld [vmem:[%s9497_s24 + $0x190] sm:$0xff]  ;;  %v9865_v29 = vcombine.low %v2525_v19, %v2535_v20  ;;  %v2910_v20 = vsel %vm836_vm2, %v7406_v11, 0 }
 0x1cb   : > { %2460 = vmatprep.mubr.bf16.mxu1 %v9098_v10  ;;  %v7383_v37 = vcombine.high %v7342_v49, %v7346_v28  ;;  %v7382_v44 = vcombine.low %v7342_v49, %v7346_v28  ;;  %v7358_v50 = vld [vmem:[%s9497_s24 + $0x1f0] sm:$0xff]  ;;  %v2603_v28 = vor.u32 %v2602_v18, %v2584_v38 }
 0x1cc   : > { %2924 = vmatpush1.bf16.msra.mxu0 %v7378_v39  ;;  %v7385_v39 = vcombine.high %v7343_v30, %v7347_v31  ;;  %v7398_v6 = vcombine.low %v7358_v50, %v7362_v51  ;;  %v2564_v19 = vld [vmem:[#allocation2 + $0x18] sm:$0x11]  ;;  %v7572_v31 = vcombine.low %v7422_v14, %v7426_v15  ;;  %v7470_v14 = vld [vmem:[%s9504_s16 + $0x600] sm:$0xff] }
 0x1cd   : > { %2977 = vmatpush1.bf16.msra.mxu1 %v7380_v41  ;;  %2925 = vmatprep.subr.bf16.mxu0 %v7387_v42  ;;  %v7354_v41 = vld [vmem:[%s9497_s24 + $0x1d0] sm:$0xff]  ;;  %v7351_v42 = vld [vmem:[%s9497_s24 + $0x1b8] sm:$0xff]  ;;  %v2606_v30 = vshll.u32 %v2564_v19, 16  ;;  %v7474_v15 = vld [vmem:[%s9504_s16 + $0x620] sm:$0xff] }
 0x1ce   : > { %2978 = vmatprep.subr.bf16.mxu1 %v7389_v45  ;;  %v2549_v45 = vsel %vm9840_vm7, %v2544_v34, %v9844_v8  ;;  %v7393_v53 = vcombine.high %v7351_v42, %v7355_v43  ;;  %v7390_v57 = vcombine.low %v7350_v40, %v7354_v41  ;;  %v7407_v8 = vcombine.high %v7366_v63, %v7366_v63  ;;  %v7459_v63 = vld [vmem:[%s9504_s16 + $0x5a8] sm:$0xff]  ;;  %v7478_v19 = vld [vmem:[%s9504_s16 + $0x640] sm:$0xff] }
 0x1cf   : > { %7329 = vmatmul.mubr.msk.bf16.gmra.mrb[12].mxu0 %vm2040_vm4, %v9732_v9  ;;  %v9888_v56 = vcombine.low %v2549_v45, %v2559_v46 }
 0x1d0   : > { %2926 = vmatpush1.bf16.msra.mxu0 %v7386_v48  ;;  %7331 = vmatmul.mubr.msk.bf16.gmra.mrb[12].mxu1 %vm2040_vm4, %v9732_v9  ;;  %v7405_v9 = vcombine.high %v7365_v1, %v7365_v1  ;;  %v7391_v48 = vcombine.high %v7350_v40, %v7354_v41  ;;  %v2573_v1 = vshrl.u32 %v2560_v58, 16  ;;  %v2604_v41 = vrot.slane %v2603_v28, 4  ;;  %v7487_v28 = vld [vmem:[%s9504_s16 + $0x688] sm:$0xff] }
 0x1d1   : > { %2979 = vmatpush1.bf16.msra.mxu1 %v7388_v60  ;;  %2927 = vmatprep.subr.bf16.mxu0 %v7395_v61  ;;  %v7392_v60 = vcombine.low %v7351_v42, %v7355_v43  ;;  %v7399_v61 = vcombine.high %v7358_v50, %v7362_v51  ;;  %v2608_v42 = vrot.slane %v2606_v30, 5  ;;  %v7451_v50 = vld [vmem:[%s9504_s16 + $0x568] sm:$0xff] }
 0x1d2   : > { %2980 = vmatprep.subr.bf16.mxu1 %v7397_v62  ;;  %2953 = vmatprep.mubr.bf16.mxu0 %v9098_v10  ;;  %v7401_v62 = vcombine.high %v7359_v52, %v7363_v55  ;;  %v2575_v17 = vrot.slane %v2573_v1, 4  ;;  %v7491_v30 = vld [vmem:[%s9504_s16 + $0x6a8] sm:$0xff] }
 0x1d3   : > { %3006 = vmatprep.mubr.bf16.mxu1 %v9098_v10  ;;  %v9930_v51 = vsel %vm9840_vm7, %v2604_v41, %v2608_v42  ;;  %v7638_v41 = vcombine.low %v7487_v28, %v7491_v30 }
 0x1d4   : > { %2928 = vmatpush1.bf16.msra.mxu0 %v7394_v0  ;;  %v7367_v0 = vld [vmem:[%s9497_s24 + $0x238] sm:$0xff]  ;;  %v2579_v49 = vor.u32 %v2578_v32, %v2575_v17 }
 0x1d5   : > { %2981 = vmatpush1.bf16.msra.mxu1 %v7396_v12  ;;  %7410 = vmatprep.subr.msk.bf16.mxu0 %vm836_vm2, %v7403_v13  ;;  %v7409_v12 = vcombine.high %v7367_v0, %v7367_v0  ;;  %v7408_v13 = vcombine.low %v7367_v0, %v7367_v0 }
 0x1d6   : > { %7413 = vmatprep.subr.msk.bf16.mxu1 %vm836_vm2, %v7405_v9  ;;  %v7423_v9 = vld [vmem:[%s9504_s16 + $0x488] sm:$0xff]  ;;  %v2580_v40 = vrot.slane %v2579_v49, 4  ;;  %v7490_v49 = vld [vmem:[%s9504_s16 + $0x6a0] sm:$0xff] }
 0x1d7   : > { %v2916_v22 = vsel %vm836_vm2, %v7408_v13, 0  ;;  %v7575_v23 = vcombine.high %v7423_v9, %v7427_v16 }
 0x1d8   : > { %2930 = vmatpush1.bf16.msra.mxu0 %v2898_v24  ;;  %v7430_v24 = vld [vmem:[%s9504_s16 + $0x4c0] sm:$0xff] }
 0x1d9   : > { %2983 = vmatpush1.bf16.msra.mxu1 %v2904_v26  ;;  %3027 = vmatprep.subr.bf16.mxu0 %v7375_v25  ;;  %v7434_v25 = vld [vmem:[%s9504_s16 + $0x4e0] sm:$0xff]  ;;  %v7431_v26 = vld [vmem:[%s9504_s16 + $0x4c8] sm:$0xff] }
 0x1da   : > { %3080 = vmatprep.subr.bf16.mxu1 %v7377_v27  ;;  %v7435_v27 = vld [vmem:[%s9504_s16 + $0x4e8] sm:$0xff]  ;;  %v7581_v34 = vcombine.high %v7430_v24, %v7434_v25  ;;  %v7580_v43 = vcombine.low %v7430_v24, %v7434_v25 }
 0x1db   : > { %7411 = vmatmul.mubr.msk.bf16.vlgmr.msra.gmra.mrb[0].mxu0 %vm829_vm3, %v9865_v29  ;;  %v7583_v35 = vcombine.high %v7431_v26, %v7435_v27 }
 0x1dc   : > { %7414 = vmatmul.mubr.msk.bf16.vlgmr.msra.gmra.mrb[0].mxu1 %vm829_vm3, %v9865_v29  ;;  %3028 = vmatpush1.bf16.msra.mxu0 %v7374_v33  ;;  %v7574_v33 = vcombine.low %v7423_v9, %v7427_v16  ;;  %v7471_v9 = vld [vmem:[%s9504_s16 + $0x608] sm:$0xff] }
 0x1dd   : > { %3081 = vmatpush1.bf16.msra.mxu1 %v7376_v54  ;;  %3029 = vmatprep.subr.bf16.mxu0 %v7383_v37  ;;  %v7442_v54 = vld [vmem:[%s9504_s16 + $0x520] sm:$0xff]  ;;  %v7439_v37 = vld [vmem:[%s9504_s16 + $0x508] sm:$0xff] }
 0x1de   : > { %3082 = vmatprep.subr.bf16.mxu1 %v7385_v39  ;;  %2963 = vmatprep.mubr.bf16.mxu0 %v9098_v10  ;;  %v7443_v39 = vld [vmem:[%s9504_s16 + $0x528] sm:$0xff]  ;;  %v7589_v45 = vcombine.high %v7438_v36, %v7442_v54  ;;  %v7588_v52 = vcombine.low %v7438_v36, %v7442_v54  ;;  %v7494_v36 = vld [vmem:[%s9504_s16 + $0x6c0] sm:$0xff] }
 0x1df   : > { %3016 = vmatprep.mubr.bf16.mxu1 %v9098_v10  ;;  %v7591_v46 = vcombine.high %v7439_v37, %v7443_v39  ;;  %v7590_v55 = vcombine.low %v7439_v37, %v7443_v39  ;;  %v7475_v16 = vld [vmem:[%s9504_s16 + $0x628] sm:$0xff]  ;;  %v7498_v54 = vld [vmem:[%s9504_s16 + $0x6e0] sm:$0xff] }
 0x1e0   : > { %3030 = vmatpush1.bf16.msra.mxu0 %v7382_v44  ;;  %v7582_v44 = vcombine.low %v7431_v26, %v7435_v27  ;;  %v7623_v18 = vcombine.high %v7471_v9, %v7475_v16  ;;  %v7622_v24 = vcombine.low %v7471_v9, %v7475_v16  ;;  %v7486_v27 = vld [vmem:[%s9504_s16 + $0x680] sm:$0xff]  ;;  %v7495_v37 = vld [vmem:[%s9504_s16 + $0x6c8] sm:$0xff]  ;;  %v7645_v42 = vcombine.high %v7494_v36, %v7498_v54 }
 0x1e1   : > { %3083 = vmatpush1.bf16.msra.mxu1 %v7384_v47  ;;  %3031 = vmatprep.subr.bf16.mxu0 %v7391_v48  ;;  %v7446_v47 = vld [vmem:[%s9504_s16 + $0x540] sm:$0xff]  ;;  %v7499_v39 = vld [vmem:[%s9504_s16 + $0x6e8] sm:$0xff] }
 0x1e2   : > { %3084 = vmatprep.subr.bf16.mxu1 %v7393_v53  ;;  %v7450_v48 = vld [vmem:[%s9504_s16 + $0x560] sm:$0xff]  ;;  %v7447_v53 = vld [vmem:[%s9504_s16 + $0x548] sm:$0xff] }
 0x1e3   : > { %7412 = vmatmul.mubr.msk.bf16.gmra.mrb[4].mxu0 %vm829_vm3, %v9888_v56  ;;  %v7599_v58 = vcombine.high %v7447_v53, %v7451_v50  ;;  %v7596_v0 = vcombine.low %v7446_v47, %v7450_v48  ;;  %v7598_v1 = vcombine.low %v7447_v53, %v7451_v50  ;;  %v7646_v53 = vcombine.low %v7495_v37, %v7499_v39  ;;  %v7531_v9 = vld [vmem:[%s9504_s16 + $0x7e8] sm:$0xff] }
 0x1e4   : > { %3032 = vmatpush1.bf16.msra.mxu0 %v7390_v57  ;;  %7415 = vmatmul.mubr.msk.bf16.gmra.mrb[4].mxu1 %vm829_vm3, %v9888_v56  ;;  %v7597_v57 = vcombine.high %v7446_v47, %v7450_v48  ;;  %v7507_v47 = vld [vmem:[%s9504_s16 + $0x728] sm:$0xff]  ;;  %v7644_v48 = vcombine.low %v7494_v36, %v7498_v54  ;;  %v7542_v36 = vld [vmem:[%s9504_s16 + $0x840] sm:$0xff] }
 0x1e5   : > { %3085 = vmatpush1.bf16.msra.mxu1 %v7392_v60  ;;  %3033 = vmatprep.subr.bf16.mxu0 %v7399_v61  ;;  %v7458_v60 = vld [vmem:[%s9504_s16 + $0x5a0] sm:$0xff] }
 0x1e6   : > { %3086 = vmatprep.subr.bf16.mxu1 %v7401_v62  ;;  %3059 = vmatprep.mubr.bf16.mxu0 %v9098_v10  ;;  %v7455_v62 = vld [vmem:[%s9504_s16 + $0x588] sm:$0xff]  ;;  %v7605_v2 = vcombine.high %v7454_v59, %v7458_v60  ;;  %v7546_v54 = vld [vmem:[%s9504_s16 + $0x860] sm:$0xff] }
 0x1e7   : > { %3112 = vmatprep.mubr.bf16.mxu1 %v9098_v10  ;;  %v7607_v3 = vcombine.high %v7455_v62, %v7459_v63  ;;  %v7606_v11 = vcombine.low %v7455_v62, %v7459_v63 }
 0x1e8   : > { %3034 = vmatpush1.bf16.msra.mxu0 %v7398_v6  ;;  %v7466_v6 = vld [vmem:[%s9504_s16 + $0x5e0] sm:$0xff] }
 0x1e9   : > { %3087 = vmatpush1.bf16.msra.mxu1 %v7400_v7  ;;  %7416 = vmatprep.subr.msk.bf16.mxu0 %vm836_vm2, %v7407_v8  ;;  %v7463_v7 = vld [vmem:[%s9504_s16 + $0x5c8] sm:$0xff]  ;;  %v7612_v17 = vcombine.low %v7462_v4, %v7466_v6 }
 0x1ea   : > { %7419 = vmatprep.subr.msk.bf16.mxu1 %vm836_vm2, %v7409_v12  ;;  %v7467_v8 = vld [vmem:[%s9504_s16 + $0x5e8] sm:$0xff]  ;;  %v7613_v12 = vcombine.high %v7462_v4, %v7466_v6  ;;  %v2566_v6 = vld [vmem:[#allocation2 + $0x24] sm:$0xff] }
 0x1eb   : > { %v7615_v13 = vcombine.high %v7463_v7, %v7467_v8  ;;  %v7614_v32 = vcombine.low %v7463_v7, %v7467_v8  ;;  %v7523_v4 = vld [vmem:[%s9504_s16 + $0x7a8] sm:$0xff]  ;;  %v2621_v16 = vshrl.u32 %v2566_v6, 16 }
 0x1ec   : > { %3036 = vmatpush1.bf16.msra.mxu0 %v2910_v20  ;;  %v7482_v20 = vld [vmem:[%s9504_s16 + $0x660] sm:$0xff]  ;;  %v2568_v7 = vld [vmem:[#allocation2 + $0x30] sm:$0xff] }
 0x1ed   : > { %3089 = vmatpush1.bf16.msra.mxu1 %v2916_v22  ;;  %4058 = vmatprep.subr.bf16.mxu0 %v7573_v21  ;;  %v7479_v21 = vld [vmem:[%s9504_s16 + $0x648] sm:$0xff]  ;;  %v7629_v25 = vcombine.high %v7478_v19, %v7482_v20 }
 0x1ee   : > { %4164 = vmatprep.subr.bf16.mxu1 %v7575_v23  ;;  %v7483_v22 = vld [vmem:[%s9504_s16 + $0x668] sm:$0xff]  ;;  %v7620_v23 = vcombine.low %v7470_v14, %v7474_v15 }
 0x1ef   : > { %7417 = vmatmul.mubr.msk.bf16.vlgmr.msra.gmra.mrb[8].mxu0 %vm829_vm3, %v9865_v29  ;;  %v7631_v26 = vcombine.high %v7479_v21, %v7483_v22 }
 0x1f0   : > { %7420 = vmatmul.mubr.msk.bf16.vlgmr.msra.gmra.mrb[8].mxu1 %vm829_vm3, %v9865_v29  ;;  %4059 = vmatpush1.bf16.msra.mxu0 %v7572_v31  ;;  %v9926_v29 = vsel %vm9840_vm7, %v2580_v40, %v2584_v38  ;;  %v7621_v38 = vcombine.high %v7470_v14, %v7474_v15  ;;  %v7628_v31 = vcombine.low %v7478_v19, %v7482_v20  ;;  %v7530_v14 = vld [vmem:[%s9504_s16 + $0x7e0] sm:$0xff]  ;;  %v7527_v15 = vld [vmem:[%s9504_s16 + $0x7c8] sm:$0xff] }
 0x1f1   : > { %4165 = vmatpush1.bf16.msra.mxu1 %v7574_v33  ;;  %4060 = vmatprep.subr.bf16.mxu0 %v7581_v34  ;;  %v9936_v61 = vcombine.high %v9926_v29, %v9930_v51  ;;  %v7630_v33 = vcombine.low %v7479_v21, %v7483_v22  ;;  %v7637_v34 = vcombine.high %v7486_v27, %v7490_v49  ;;  %v7534_v22 = vld [vmem:[%s9504_s16 + $0x800] sm:$0xff] }
 0x1f2   : > { %4166 = vmatprep.subr.bf16.mxu1 %v7583_v35  ;;  %3069 = vmatprep.mubr.bf16.mxu0 %v9098_v10  ;;  %v7639_v35 = vcombine.high %v7487_v28, %v7491_v30  ;;  %v7636_v40 = vcombine.low %v7486_v27, %v7490_v49  ;;  %v7679_v21 = vcombine.high %v7527_v15, %v7531_v9  ;;  %v7535_v49 = vld [vmem:[%s9504_s16 + $0x808] sm:$0xff]  ;;  %v2570_v30 = vld [vmem:[#allocation2 + $0x3c] sm:$0x11] }
 0x1f3   : > { %3122 = vmatprep.mubr.bf16.mxu1 %v9098_v10  ;;  %v7539_v28 = vld [vmem:[%s9504_s16 + $0x828] sm:$0xff] }
 0x1f4   : > { %4061 = vmatpush1.bf16.msra.mxu0 %v7580_v43  ;;  %v7647_v43 = vcombine.high %v7495_v37, %v7499_v39 }
 0x1f5   : > { %4167 = vmatpush1.bf16.msra.mxu1 %v7582_v44  ;;  %4062 = vmatprep.subr.bf16.mxu0 %v7589_v45  ;;  %v7502_v44 = vld [vmem:[%s9504_s16 + $0x700] sm:$0xff] }
 0x1f6   : > { %4168 = vmatprep.subr.bf16.mxu1 %v7591_v46  ;;  %v7506_v45 = vld [vmem:[%s9504_s16 + $0x720] sm:$0xff]  ;;  %v7503_v46 = vld [vmem:[%s9504_s16 + $0x708] sm:$0xff] }
 0x1f7   : > { %7418 = vmatmul.mubr.msk.bf16.gmra.mrb[12].mxu0 %vm829_vm3, %v9888_v56  ;;  %v7653_v50 = vcombine.high %v7502_v44, %v7506_v45  ;;  %v7654_v62 = vcombine.low %v7503_v46, %v7507_v47 }
 0x1f8   : > { %4063 = vmatpush1.bf16.msra.mxu0 %v7588_v52  ;;  %7421 = vmatmul.mubr.msk.bf16.gmra.mrb[12].mxu1 %vm829_vm3, %v9888_v56  ;;  %v7604_v56 = vcombine.low %v7454_v59, %v7458_v60  ;;  %v7655_v52 = vcombine.high %v7503_v46, %v7507_v47  ;;  %v7515_v59 = vld [vmem:[%s9504_s16 + $0x768] sm:$0xff]  ;;  %v7652_v60 = vcombine.low %v7502_v44, %v7506_v45  ;;  %v2561_v44 = vld [vmem:[#allocation2 + $0x8] sm:$0xf] }
 0x1f9   : > { %4169 = vmatpush1.bf16.msra.mxu1 %v7590_v55  ;;  %4064 = vmatprep.subr.bf16.mxu0 %v7597_v57  ;;  %v7510_v55 = vld [vmem:[%s9504_s16 + $0x740] sm:$0xff]  ;;  %v2563_v45 = vld [vmem:[#allocation2 + $0x14] sm:$0xf]  ;;  %v7686_v46 = vcombine.low %v7535_v49, %v7539_v28  ;;  %v7693_v47 = vcombine.high %v7542_v36, %v7546_v54 }
 0x1fa   : > { %4170 = vmatprep.subr.bf16.mxu1 %v7599_v58  ;;  %4090 = vmatprep.mubr.bf16.mxu0 %v9936_v61  ;;  %v7514_v57 = vld [vmem:[%s9504_s16 + $0x760] sm:$0xff]  ;;  %v7511_v58 = vld [vmem:[%s9504_s16 + $0x748] sm:$0xff] }
 0x1fb   : > { %4196 = vmatprep.mubr.bf16.mxu1 %v9936_v61  ;;  %v7661_v63 = vcombine.high %v7510_v55, %v7514_v57  ;;  %v7660_v8 = vcombine.low %v7510_v55, %v7514_v57 }
 0x1fc   : > { %4065 = vmatpush1.bf16.msra.mxu0 %v7596_v0  ;;  %v7518_v0 = vld [vmem:[%s9504_s16 + $0x780] sm:$0xff] }
 0x1fd   : > { %4171 = vmatpush1.bf16.msra.mxu1 %v7598_v1  ;;  %4066 = vmatprep.subr.bf16.mxu0 %v7605_v2  ;;  %v7663_v1 = vcombine.high %v7511_v58, %v7515_v59  ;;  %v7522_v2 = vld [vmem:[%s9504_s16 + $0x7a0] sm:$0xff] }
 0x1fe   : > { %4172 = vmatprep.subr.bf16.mxu1 %v7607_v3  ;;  %v7519_v3 = vld [vmem:[%s9504_s16 + $0x788] sm:$0xff] }
 0x1ff   : > { %v7670_v19 = vcombine.low %v7519_v3, %v7523_v4 }
 0x200   : > { %4067 = vmatpush1.bf16.msra.mxu0 %v7604_v56  ;;  %v7662_v56 = vcombine.low %v7511_v58, %v7515_v59  ;;  %v7551_v58 = vld [vmem:[%s9504_s16 + $0x888] sm:$0xff] }
 0x201   : > { %4173 = vmatpush1.bf16.msra.mxu1 %v7606_v11  ;;  %4068 = vmatprep.subr.bf16.mxu0 %v7613_v12  ;;  %v7669_v11 = vcombine.high %v7518_v0, %v7522_v2  ;;  %v7671_v12 = vcombine.high %v7519_v3, %v7523_v4  ;;  %v7555_v59 = vld [vmem:[%s9504_s16 + $0x8a8] sm:$0xff]  ;;  %v9996_v4 = vcombine.low %v9926_v29, %v9930_v51 }
 0x202   : > { %4174 = vmatprep.subr.bf16.mxu1 %v7615_v13  ;;  %v7526_v13 = vld [vmem:[%s9504_s16 + $0x7c0] sm:$0xff]  ;;  %v7559_v29 = vld [vmem:[%s9504_s16 + $0x8c8] sm:$0xff] }
 0x203   : > { %v7677_v20 = vcombine.high %v7526_v13, %v7530_v14  ;;  %v7563_v51 = vld [vmem:[%s9504_s16 + $0x8e8] sm:$0xff] }
 0x204   : > { %4069 = vmatpush1.bf16.msra.mxu0 %v7612_v17  ;;  %v2624_v17 = vshll.u32 %v2566_v6, 16 }
 0x205   : > { %4175 = vmatpush1.bf16.msra.mxu1 %v7614_v32  ;;  %4070 = vmatprep.subr.bf16.mxu0 %v7621_v38  ;;  %v2630_v32 = vshll.u32 %v2568_v7, 16  ;;  %v2648_v38 = vshrl.u32 %v2568_v7, 16 }
 0x206   : > { %4176 = vmatprep.subr.bf16.mxu1 %v7623_v18  ;;  %v7668_v18 = vcombine.low %v7518_v0, %v7522_v2  ;;  %v2610_v0 = vshrl.u32 %v2563_v45, 16 }
 0x207   : > { %v2650_v27 = vrot.slane %v2648_v38, 4  ;;  %v2569_v38 = vld [vmem:[#allocation2 + $0x38] sm:$0xf] }
 0x208   : > { %4071 = vmatpush1.bf16.msra.mxu0 %v7620_v23  ;;  %v7538_v23 = vld [vmem:[%s9504_s16 + $0x820] sm:$0xff] }
 0x209   : > { %4177 = vmatpush1.bf16.msra.mxu1 %v7622_v24  ;;  %4072 = vmatprep.subr.bf16.mxu0 %v7629_v25  ;;  %v2623_v24 = vrot.slane %v2621_v16, 4  ;;  %v2626_v25 = vrot.slane %v2624_v17, 5  ;;  %v2565_v16 = vld [vmem:[#allocation2 + $0x20] sm:$0x1] }
 0x20a   : > { %4178 = vmatprep.subr.bf16.mxu1 %v7631_v26  ;;  %v2632_v26 = vrot.slane %v2630_v32, 5  ;;  %v2567_v32 = vld [vmem:[#allocation2 + $0x2c] sm:$0xf] }
 0x20b   : > { %v2627_v37 = vor.u32 %v2626_v25, %v2623_v24 }
 0x20c   : > { %4073 = vmatpush1.bf16.msra.mxu0 %v7628_v31  ;;  %v7676_v31 = vcombine.low %v7526_v13, %v7530_v14  ;;  %v2651_v39 = vor.u32 %v2650_v27, %v2632_v26  ;;  %v7425_v27 = vld [vmem:[%s9504_s16 + $0x498] sm:$0xff] }
 0x20d   : > { %4179 = vmatpush1.bf16.msra.mxu1 %v7630_v33  ;;  %4074 = vmatprep.subr.bf16.mxu0 %v7637_v34  ;;  %v7678_v33 = vcombine.low %v7527_v15, %v7531_v9  ;;  %v7685_v34 = vcombine.high %v7534_v22, %v7538_v23  ;;  %v2612_v15 = vrot.slane %v2610_v0, 4 }
 0x20e   : > { %4180 = vmatprep.subr.bf16.mxu1 %v7639_v35  ;;  %v7687_v35 = vcombine.high %v7535_v49, %v7539_v28  ;;  %v2652_v55 = vrot.slane %v2651_v39, 4  ;;  %v7429_v49 = vld [vmem:[%s9504_s16 + $0x4b8] sm:$0xff]  ;;  %v2635_v28 = vshrl.u32 %v2567_v32, 16 }
 0x210   : > { %4075 = vmatpush1.bf16.msra.mxu0 %v7636_v40  ;;  %v2654_v40 = vshll.u32 %v2570_v30, 16  ;;  %v2638_v30 = vshll.u32 %v2567_v32, 16  ;;  %v7453_v32 = vld [vmem:[%s9504_s16 + $0x578] sm:$0xff] }
 0x211   : > { %4181 = vmatpush1.bf16.msra.mxu1 %v7638_v41  ;;  %4076 = vmatprep.subr.bf16.mxu0 %v7645_v42  ;;  %v7543_v41 = vld [vmem:[%s9504_s16 + $0x848] sm:$0xff] }
 0x212   : > { %4182 = vmatprep.subr.bf16.mxu1 %v7647_v43  ;;  %v7547_v42 = vld [vmem:[%s9504_s16 + $0x868] sm:$0xff]  ;;  %v7684_v43 = vcombine.low %v7534_v22, %v7538_v23  ;;  %v2656_v57 = vrot.slane %v2654_v40, 5  ;;  %v7428_v22 = vld [vmem:[%s9504_s16 + $0x4b0] sm:$0xff]  ;;  %v7711_v23 = vcombine.high %v7559_v29, %v7563_v51 }
 0x213   : > { %v7694_v2 = vcombine.low %v7543_v41, %v7547_v42 }
 0x214   : > { %4077 = vmatpush1.bf16.msra.mxu0 %v7644_v48  ;;  %v7695_v48 = vcombine.high %v7543_v41, %v7547_v42  ;;  %v2657_v7 = vsel %vm9840_vm7, %v2652_v55, %v2656_v57  ;;  %v2637_v41 = vrot.slane %v2635_v28, 4  ;;  %v2640_v42 = vrot.slane %v2638_v30, 5  ;;  %v7436_v55 = vld [vmem:[%s9504_s16 + $0x4f0] sm:$0xff] }
 0x215   : > { %4183 = vmatpush1.bf16.msra.mxu1 %v7646_v53  ;;  %4078 = vmatprep.subr.bf16.mxu0 %v7653_v50  ;;  %v7550_v53 = vld [vmem:[%s9504_s16 + $0x880] sm:$0xff]  ;;  %v7464_v28 = vld [vmem:[%s9504_s16 + $0x5d0] sm:$0xff] }
 0x216   : > { %4184 = vmatprep.subr.bf16.mxu1 %v7655_v52  ;;  %v7554_v50 = vld [vmem:[%s9504_s16 + $0x8a0] sm:$0xff]  ;;  %v2628_v52 = vrot.slane %v2627_v37, 4  ;;  %v7468_v30 = vld [vmem:[%s9504_s16 + $0x5f0] sm:$0xff] }
 0x217   : > { %v7701_v3 = vcombine.high %v7550_v53, %v7554_v50  ;;  %v7700_v9 = vcombine.low %v7550_v53, %v7554_v50 }
 0x218   : > { %4079 = vmatpush1.bf16.msra.mxu0 %v7652_v60  ;;  %v2587_v60 = vshrl.u32 %v2561_v44, 16  ;;  %v2633_v6 = vsel %vm9840_vm7, %v2628_v52, %v2632_v26  ;;  %v2616_v26 = vshll.u32 %v2565_v16, 16  ;;  %v7432_v52 = vld [vmem:[%s9504_s16 + $0x4d0] sm:$0xff]  ;;  %v7449_v16 = vld [vmem:[%s9504_s16 + $0x558] sm:$0xff] }
 0x219   : > { %4185 = vmatpush1.bf16.msra.mxu1 %v7654_v62  ;;  %4080 = vmatprep.subr.bf16.mxu0 %v7661_v63  ;;  %v2590_v62 = vshll.u32 %v2561_v44, 16  ;;  %v2596_v63 = vshll.u32 %v2563_v45, 16  ;;  %v10008_v17 = vcombine.high %v2633_v6, %v2657_v7  ;;  %v2571_v45 = vld [vmem:[#allocation2 + $0x44] sm:$0x1] }
 0x21a   : > { %4186 = vmatprep.subr.bf16.mxu1 %v7663_v1  ;;  %v7692_v1 = vcombine.low %v7542_v36, %v7546_v54  ;;  %v7710_v36 = vcombine.low %v7559_v29, %v7563_v51  ;;  %v7579_v54 = vcombine.high %v7425_v27, %v7429_v49  ;;  %v2618_v40 = vrot.slane %v2616_v26, 5  ;;  %v7448_v29 = vld [vmem:[%s9504_s16 + $0x550] sm:$0xff] }
 0x21b   : > { %v2592_v13 = vrot.slane %v2590_v62, 5  ;;  %v10004_v14 = vrot.slane %v2596_v63, 5  ;;  %v2664_v50 = vshll.u32 %v2571_v45, 16  ;;  %v7452_v51 = vld [vmem:[%s9504_s16 + $0x570] sm:$0xff]  ;;  %v7602_v26 = vcombine.low %v7449_v16, %v7453_v32 }
 0x21c   : > { %4081 = vmatpush1.bf16.msra.mxu0 %v7660_v8  ;;  %v7703_v8 = vcombine.high %v7551_v58, %v7555_v59 }
 0x21d   : > { %4187 = vmatpush1.bf16.msra.mxu1 %v7662_v56  ;;  %4082 = vmatprep.subr.bf16.mxu0 %v7669_v11  ;;  %v7558_v56 = vld [vmem:[%s9504_s16 + $0x8c0] sm:$0xff]  ;;  %v2613_v25 = vor.u32 %v2612_v15, %v10004_v14  ;;  %v2666_v0 = vrot.slane %v2664_v50, 5 }
 0x21e   : > { %4188 = vmatprep.subr.bf16.mxu1 %v7671_v12  ;;  %v7562_v11 = vld [vmem:[%s9504_s16 + $0x8e0] sm:$0xff]  ;;  %v2589_v12 = vrot.slane %v2587_v60, 4 }
 0x21f   : > { %v2614_v39 = vrot.slane %v2613_v25, 4  ;;  %v7600_v25 = vcombine.low %v7448_v29, %v7452_v51 }
 0x220   : > { %4083 = vmatpush1.bf16.msra.mxu0 %v7668_v18  ;;  %v7702_v18 = vcombine.low %v7551_v58, %v7555_v59  ;;  %v2593_v24 = vor.u32 %v2592_v13, %v2589_v12  ;;  %v7433_v58 = vld [vmem:[%s9504_s16 + $0x4d8] sm:$0xff] }
 0x221   : > { %4189 = vmatpush1.bf16.msra.mxu1 %v7670_v19  ;;  %4084 = vmatprep.subr.bf16.mxu0 %v7677_v20  ;;  %v7708_v19 = vcombine.low %v7558_v56, %v7562_v11  ;;  %v7709_v20 = vcombine.high %v7558_v56, %v7562_v11  ;;  %v7437_v59 = vld [vmem:[%s9504_s16 + $0x4f8] sm:$0xff]  ;;  %v7584_v11 = vcombine.low %v7432_v52, %v7436_v55 }
 0x222   : > { %4190 = vmatprep.subr.bf16.mxu1 %v7679_v21  ;;  %v10011_v21 = vld [vmem:[%s9504_s16 + $0x490] sm:$0xff]  ;;  %v2594_v37 = vrot.slane %v2593_v24, 4  ;;  %v7445_v56 = vld [vmem:[%s9504_s16 + $0x538] sm:$0xff] }
 0x223   : > { %v7576_v60 = vcombine.low %v10011_v21, %v7428_v22  ;;  %v7461_v24 = vld [vmem:[%s9504_s16 + $0x5b8] sm:$0xff] }
 0x224   : > { %4085 = vmatpush1.bf16.msra.mxu0 %v7676_v31  ;;  %v2644_v31 = vshll.u32 %v2569_v38, 16 }
 0x225   : > { %4191 = vmatpush1.bf16.msra.mxu1 %v7678_v33  ;;  %4086 = vmatprep.subr.bf16.mxu0 %v7685_v34  ;;  %v2658_v33 = vshrl.u32 %v2569_v38, 16  ;;  %v7577_v34 = vcombine.high %v10011_v21, %v7428_v22  ;;  %v7456_v21 = vld [vmem:[%s9504_s16 + $0x590] sm:$0xff] }
 0x226   : > { %4192 = vmatprep.subr.bf16.mxu1 %v7687_v35  ;;  %v10022_v35 = vcombine.low %v2633_v6, %v2657_v7  ;;  %v7440_v6 = vld [vmem:[%s9504_s16 + $0x510] sm:$0xff] }
 0x227   : > { %v2660_v44 = vrot.slane %v2658_v33, 4  ;;  %v7444_v7 = vld [vmem:[%s9504_s16 + $0x530] sm:$0xff]  ;;  %v7469_v33 = vld [vmem:[%s9504_s16 + $0x5f8] sm:$0xff] }
 0x228   : > { %4087 = vmatpush1.bf16.msra.mxu0 %v7684_v43  ;;  %v2646_v43 = vrot.slane %v2644_v31, 5  ;;  %v7593_v15 = vcombine.high %v7440_v6, %v7444_v7  ;;  %v7592_v38 = vcombine.low %v7440_v6, %v7444_v7  ;;  %v7460_v22 = vld [vmem:[%s9504_s16 + $0x5b0] sm:$0xff]  ;;  %v7465_v31 = vld [vmem:[%s9504_s16 + $0x5d8] sm:$0xff] }
 0x229   : > { %4193 = vmatpush1.bf16.msra.mxu1 %v7686_v46  ;;  %4088 = vmatprep.subr.bf16.mxu0 %v7693_v47  ;;  %v2599_v46 = vsel %vm9840_vm7, %v2594_v37, %v10004_v14  ;;  %v2619_v47 = vsel %vm9840_vm7, %v2614_v39, %v2618_v40  ;;  %v7586_v14 = vcombine.low %v7433_v58, %v7437_v59  ;;  %v7472_v39 = vld [vmem:[%s9504_s16 + $0x610] sm:$0xff] }
 0x22a   : > { %4194 = vmatprep.subr.bf16.mxu1 %v7695_v48  ;;  %v2641_v48 = vor.u32 %v2640_v42, %v2637_v41  ;;  %v2661_v53 = vor.u32 %v2660_v44, %v2646_v43  ;;  %v10035_v57 = vcombine.low %v2599_v46, %v2619_v47  ;;  %v7619_v37 = vcombine.high %v7465_v31, %v7469_v33  ;;  %v7476_v40 = vld [vmem:[%s9504_s16 + $0x630] sm:$0xff]  ;;  %v7473_v41 = vld [vmem:[%s9504_s16 + $0x618] sm:$0xff] }
 0x22b   : > { %v7477_v42 = vld [vmem:[%s9504_s16 + $0x638] sm:$0xff]  ;;  %v7625_v44 = vcombine.high %v7472_v39, %v7476_v40  ;;  %v7480_v46 = vld [vmem:[%s9504_s16 + $0x650] sm:$0xff]  ;;  %v7624_v50 = vcombine.low %v7472_v39, %v7476_v40 }
 0x22c   : > { %4089 = vmatpush1.bf16.msra.mxu0 %v7692_v1  ;;  %v2642_v62 = vrot.slane %v2641_v48, 4  ;;  %v2662_v63 = vrot.slane %v2661_v53, 4  ;;  %v7578_v1 = vcombine.low %v7425_v27, %v7429_v49  ;;  %v7609_v27 = vcombine.high %v7456_v21, %v7460_v22  ;;  %v7484_v47 = vld [vmem:[%s9504_s16 + $0x670] sm:$0xff]  ;;  %v7481_v48 = vld [vmem:[%s9504_s16 + $0x658] sm:$0xff] }
 0x22d   : > { %4195 = vmatpush1.bf16.msra.mxu1 %v7694_v2  ;;  %4111 = vmatprep.subr.bf16.mxu0 %v7701_v3  ;;  %v7585_v2 = vcombine.high %v7432_v52, %v7436_v55  ;;  %v7587_v3 = vcombine.high %v7433_v58, %v7437_v59  ;;  %v7627_v45 = vcombine.high %v7473_v41, %v7477_v42  ;;  %v7485_v53 = vld [vmem:[%s9504_s16 + $0x678] sm:$0xff]  ;;  %v7488_v59 = vld [vmem:[%s9504_s16 + $0x690] sm:$0xff] }
 0x22e   : > { %4217 = vmatprep.subr.bf16.mxu1 %v7703_v8  ;;  %v7441_v8 = vld [vmem:[%s9504_s16 + $0x518] sm:$0xff]  ;;  %v2647_v12 = vsel %vm9840_vm7, %v2642_v62, %v2646_v43  ;;  %v2667_v13 = vsel %vm9840_vm7, %v2662_v63, %v2666_v0  ;;  %v7616_v43 = vcombine.low %v7464_v28, %v7468_v30  ;;  %v7626_v52 = vcombine.low %v7473_v41, %v7477_v42  ;;  %v7496_v6 = vld [vmem:[%s9504_s16 + $0x6d0] sm:$0xff] }
 0x22f   : > { %4091 = vmatmul.mubr.bf16.vlgmr.msra.gmra.mrb[0].mxu0 %v9996_v4  ;;  %v10058_v5 = vcombine.low %v2647_v12, %v2667_v13  ;;  %v7633_v55 = vcombine.high %v7480_v46, %v7484_v47  ;;  %v7635_v58 = vcombine.high %v7481_v48, %v7485_v53  ;;  %v7489_v62 = vld [vmem:[%s9504_s16 + $0x698] sm:$0xff]  ;;  %v7632_v0 = vcombine.low %v7480_v46, %v7484_v47  ;;  %v7500_v7 = vld [vmem:[%s9504_s16 + $0x6f0] sm:$0xff] }
 0x230   : > { %4197 = vmatmul.mubr.bf16.vlgmr.msra.gmra.mrb[0].mxu1 %v9996_v4  ;;  %4112 = vmatpush1.bf16.msra.mxu0 %v7700_v9  ;;  %v7595_v9 = vcombine.high %v7441_v8, %v7445_v56  ;;  %v7493_v63 = vld [vmem:[%s9504_s16 + $0x6b8] sm:$0xff]  ;;  %v7649_v13 = vcombine.high %v7496_v6, %v7500_v7 }
 0x231   : > { %4100 = vmatprep.mubr.bf16.mxu0 %v10008_v17  ;;  %4206 = vmatprep.mubr.bf16.mxu1 %v10008_v17  ;;  %v7642_v12 = vcombine.low %v7489_v62, %v7493_v63  ;;  %v7529_v39 = vld [vmem:[%s9504_s16 + $0x7d8] sm:$0xff] }
 0x232   : > { %4113 = vmatprep.subr.bf16.mxu0 %v7709_v20  ;;  %4218 = vmatpush1.bf16.msra.mxu1 %v7702_v18  ;;  %v7594_v18 = vcombine.low %v7441_v8, %v7445_v56  ;;  %v7603_v20 = vcombine.high %v7449_v16, %v7453_v32  ;;  %v7497_v8 = vld [vmem:[%s9504_s16 + $0x6d8] sm:$0xff]  ;;  %v7648_v16 = vcombine.low %v7496_v6, %v7500_v7 }
 0x233   : > { %4219 = vmatprep.subr.bf16.mxu1 %v7711_v23  ;;  %v7457_v23 = vld [vmem:[%s9504_s16 + $0x598] sm:$0xff] }
 0x234   : > { %4114 = vmatpush1.bf16.msra.mxu0 %v7708_v19  ;;  %v7601_v19 = vcombine.high %v7448_v29, %v7452_v51  ;;  %v7611_v49 = vcombine.high %v7457_v23, %v7461_v24  ;;  %v7501_v56 = vld [vmem:[%s9504_s16 + $0x6f8] sm:$0xff] }
 0x235   : > { %4270 = vmatprep.subr.bf16.mxu0 %v7577_v34  ;;  %v7608_v34 = vcombine.low %v7456_v21, %v7460_v22  ;;  %v7505_v29 = vld [vmem:[%s9504_s16 + $0x718] sm:$0xff]  ;;  %v7650_v32 = vcombine.low %v7497_v8, %v7501_v56 }
 0x236   : > { %4220 = vmatpush1.bf16.msra.mxu1 %v7710_v36  ;;  %v7610_v36 = vcombine.low %v7457_v23, %v7461_v24  ;;  %v7509_v51 = vld [vmem:[%s9504_s16 + $0x738] sm:$0xff] }
 0x237   : > { %4101 = vmatmul.mubr.bf16.gmra.mrb[4].mxu0 %v10022_v35  ;;  %4376 = vmatprep.subr.bf16.mxu1 %v7579_v54  ;;  %v7617_v54 = vcombine.high %v7464_v28, %v7468_v30  ;;  %v7513_v21 = vld [vmem:[%s9504_s16 + $0x758] sm:$0xff]  ;;  %v7658_v24 = vcombine.low %v7505_v29, %v7509_v51 }
 0x238   : > { %4207 = vmatmul.mubr.bf16.gmra.mrb[4].mxu1 %v10022_v35  ;;  %4143 = vmatprep.mubr.bf16.mxu0 %v9098_v10  ;;  %v7517_v22 = vld [vmem:[%s9504_s16 + $0x778] sm:$0xff] }
 0x239   : > { %4249 = vmatprep.mubr.bf16.mxu1 %v9098_v10  ;;  %v7521_v28 = vld [vmem:[%s9504_s16 + $0x798] sm:$0xff] }
 0x23a   : > { %v7525_v30 = vld [vmem:[%s9504_s16 + $0x7b8] sm:$0xff] }
 0x23b   : > { %v7533_v40 = vld [vmem:[%s9504_s16 + $0x7f8] sm:$0xff]  ;;  %v7674_v42 = vcombine.low %v7521_v28, %v7525_v30 }
 0x23c   : > { %v7537_v46 = vld [vmem:[%s9504_s16 + $0x818] sm:$0xff] }
 0x23d   : > { %v7541_v47 = vld [vmem:[%s9504_s16 + $0x838] sm:$0xff] }
 0x23e   : > { %v7553_v6 = vld [vmem:[%s9504_s16 + $0x898] sm:$0xff] }
 0x23f   : > { %7716 = vmatmul.mubr.msk.bf16.vlgmr.msra.gmra.mrb[0].mxu0 %vm2040_vm4, %v10035_v57  ;;  %v7557_v7 = vld [vmem:[%s9504_s16 + $0x8b8] sm:$0xff] }
 0x240   : > { %7718 = vmatmul.mubr.msk.bf16.vlgmr.msra.gmra.mrb[0].mxu1 %vm2040_vm4, %v10035_v57  ;;  %4271 = vmatpush1.bf16.msra.mxu0 %v7576_v60  ;;  %v7492_v60 = vld [vmem:[%s9504_s16 + $0x6b0] sm:$0xff] }
 0x241   : > { %4377 = vmatpush1.bf16.msra.mxu1 %v7578_v1  ;;  %4272 = vmatprep.subr.bf16.mxu0 %v7585_v2  ;;  %v7634_v1 = vcombine.low %v7481_v48, %v7485_v53  ;;  %v7641_v2 = vcombine.high %v7488_v59, %v7492_v60  ;;  %v7682_v53 = vcombine.low %v7529_v39, %v7533_v40 }
 0x242   : > { %4378 = vmatprep.subr.bf16.mxu1 %v7587_v3  ;;  %4153 = vmatprep.mubr.bf16.mxu0 %v9098_v10  ;;  %v7643_v3 = vcombine.high %v7489_v62, %v7493_v63  ;;  %v7690_v63 = vcombine.low %v7537_v46, %v7541_v47 }
 0x243   : > { %4259 = vmatprep.mubr.bf16.mxu1 %v9098_v10 }
 0x244   : > { %4273 = vmatpush1.bf16.msra.mxu0 %v7584_v11  ;;  %v7640_v11 = vcombine.low %v7488_v59, %v7492_v60  ;;  %v7545_v59 = vld [vmem:[%s9504_s16 + $0x858] sm:$0xff] }
 0x245   : > { %4379 = vmatpush1.bf16.msra.mxu1 %v7586_v14  ;;  %4274 = vmatprep.subr.bf16.mxu0 %v7593_v15  ;;  %v7651_v14 = vcombine.high %v7497_v8, %v7501_v56  ;;  %v7504_v15 = vld [vmem:[%s9504_s16 + $0x710] sm:$0xff]  ;;  %v7549_v60 = vld [vmem:[%s9504_s16 + $0x878] sm:$0xff] }
 0x246   : > { %4380 = vmatprep.subr.bf16.mxu1 %v7595_v9  ;;  %v7508_v9 = vld [vmem:[%s9504_s16 + $0x730] sm:$0xff]  ;;  %v7698_v56 = vcombine.low %v7545_v59, %v7549_v60 }
 0x247   : > { %7717 = vmatmul.mubr.msk.bf16.gmra.mrb[4].mxu0 %vm2040_vm4, %v10058_v5  ;;  %v7656_v23 = vcombine.low %v7504_v15, %v7508_v9 }
 0x248   : > { %4275 = vmatpush1.bf16.msra.mxu0 %v7592_v38  ;;  %7719 = vmatmul.mubr.msk.bf16.gmra.mrb[4].mxu1 %vm2040_vm4, %v10058_v5  ;;  %v7657_v38 = vcombine.high %v7504_v15, %v7508_v9  ;;  %v7561_v9 = vld [vmem:[%s9504_s16 + $0x8d8] sm:$0xff] }
 0x249   : > { %4381 = vmatpush1.bf16.msra.mxu1 %v7594_v18  ;;  %4276 = vmatprep.subr.bf16.mxu0 %v7601_v19  ;;  %v7659_v18 = vcombine.high %v7505_v29, %v7509_v51  ;;  %v7512_v19 = vld [vmem:[%s9504_s16 + $0x750] sm:$0xff]  ;;  %v7565_v29 = vld [vmem:[%s9504_s16 + $0x8f8] sm:$0xff]  ;;  %v7706_v51 = vcombine.low %v7553_v6, %v7557_v7 }
 0x24a   : > { %4382 = vmatprep.subr.bf16.mxu1 %v7603_v20  ;;  %4302 = vmatprep.mubr.bf16.mxu0 %v9936_v61  ;;  %v7516_v20 = vld [vmem:[%s9504_s16 + $0x770] sm:$0xff] }
 0x24b   : > { %4408 = vmatprep.mubr.bf16.mxu1 %v9936_v61  ;;  %v7618_v61 = vcombine.low %v7465_v31, %v7469_v33  ;;  %v7664_v31 = vcombine.low %v7512_v19, %v7516_v20  ;;  %v7666_v33 = vcombine.low %v7513_v21, %v7517_v22 }
 0x24c   : > { %4277 = vmatpush1.bf16.msra.mxu0 %v7600_v25  ;;  %v7665_v25 = vcombine.high %v7512_v19, %v7516_v20  ;;  %v7731_v20 = vld [vmem:[%s9497_s24 + $0x248] sm:$0xff] }
 0x24d   : > { %4383 = vmatpush1.bf16.msra.mxu1 %v7602_v26  ;;  %4278 = vmatprep.subr.bf16.mxu0 %v7609_v27  ;;  %v7667_v26 = vcombine.high %v7513_v21, %v7517_v22  ;;  %v7520_v27 = vld [vmem:[%s9504_s16 + $0x790] sm:$0xff]  ;;  %v7735_v21 = vld [vmem:[%s9497_s24 + $0x268] sm:$0xff] }
 0x24e   : > { %4384 = vmatprep.subr.bf16.mxu1 %v7611_v49  ;;  %v7524_v49 = vld [vmem:[%s9504_s16 + $0x7b0] sm:$0xff] }
 0x24f   : > { %v7672_v41 = vcombine.low %v7520_v27, %v7524_v49 }
 0x250   : > { %4279 = vmatpush1.bf16.msra.mxu0 %v7608_v34  ;;  %v7673_v34 = vcombine.high %v7520_v27, %v7524_v49  ;;  %v7770_v49 = vcombine.low %v7731_v20, %v7735_v21 }
 0x251   : > { %4385 = vmatpush1.bf16.msra.mxu1 %v7610_v36  ;;  %4280 = vmatprep.subr.bf16.mxu0 %v7617_v54  ;;  %v7675_v36 = vcombine.high %v7521_v28, %v7525_v30  ;;  %v7528_v54 = vld [vmem:[%s9504_s16 + $0x7d0] sm:$0xff] }
 0x252   : > { %4386 = vmatprep.subr.bf16.mxu1 %v7619_v37  ;;  %v7532_v37 = vld [vmem:[%s9504_s16 + $0x7f0] sm:$0xff] }
 0x253   : > { %v7680_v48 = vcombine.low %v7528_v54, %v7532_v37 }
 0x254   : > { %4281 = vmatpush1.bf16.msra.mxu0 %v7616_v43  ;;  %v7681_v43 = vcombine.high %v7528_v54, %v7532_v37 }
 0x255   : > { %4387 = vmatpush1.bf16.msra.mxu1 %v7618_v61  ;;  %4282 = vmatprep.subr.bf16.mxu0 %v7625_v44  ;;  %v7683_v61 = vcombine.high %v7529_v39, %v7533_v40  ;;  %v7536_v44 = vld [vmem:[%s9504_s16 + $0x810] sm:$0xff]  ;;  %v7754_v40 = vld [vmem:[%s9497_s24 + $0x300] sm:$0xff] }
 0x256   : > { %4388 = vmatprep.subr.bf16.mxu1 %v7627_v45  ;;  %v7540_v45 = vld [vmem:[%s9504_s16 + $0x830] sm:$0xff] }
 0x257   : > { %v7688_v62 = vcombine.low %v7536_v44, %v7540_v45 }
 0x258   : > { %4283 = vmatpush1.bf16.msra.mxu0 %v7624_v50  ;;  %v7689_v50 = vcombine.high %v7536_v44, %v7540_v45 }
 0x259   : > { %4389 = vmatpush1.bf16.msra.mxu1 %v7626_v52  ;;  %4284 = vmatprep.subr.bf16.mxu0 %v7633_v55  ;;  %v7691_v52 = vcombine.high %v7537_v46, %v7541_v47  ;;  %v7544_v55 = vld [vmem:[%s9504_s16 + $0x850] sm:$0xff]  ;;  %v4514_v47 = vld [vmem:[%s9539_s0] sm:$0xe] }
 0x25a   : > { %4390 = vmatprep.subr.bf16.mxu1 %v7635_v58  ;;  %v7548_v58 = vld [vmem:[%s9504_s16 + $0x870] sm:$0xff] }
 0x25b   : > { %v7696_v8 = vcombine.low %v7544_v55, %v7548_v58 }
 0x25c   : > { %4285 = vmatpush1.bf16.msra.mxu0 %v7632_v0  ;;  %v7697_v0 = vcombine.high %v7544_v55, %v7548_v58  ;;  %v7724_v55 = vrot.slane %v4514_v47, 9 }
 0x25d   : > { %4391 = vmatpush1.bf16.msra.mxu1 %v7634_v1  ;;  %4286 = vmatprep.subr.bf16.mxu0 %v7641_v2  ;;  %v7699_v1 = vcombine.high %v7545_v59, %v7549_v60  ;;  %v7552_v2 = vld [vmem:[%s9504_s16 + $0x890] sm:$0xff]  ;;  %v8759_v59 = vld [vmem:[%s9539_s0 + $0x8] sm:$0x1] }
 0x25e   : > { %4392 = vmatprep.subr.bf16.mxu1 %v7643_v3  ;;  %v7556_v3 = vld [vmem:[%s9504_s16 + $0x8b0] sm:$0xff]  ;;  %v4530_v60 = vrot.slane %v8759_v59, 5  ;;  %v7821_v59 = vld [vmem:[%s9504_s16 + $0x908] sm:$0xff] }
 0x25f   : > { %v7704_v15 = vcombine.low %v7552_v2, %v7556_v3 }
 0x260   : > { %4287 = vmatpush1.bf16.msra.mxu0 %v7640_v11  ;;  %v7705_v11 = vcombine.high %v7552_v2, %v7556_v3  ;;  %v7732_v3 = vld [vmem:[%s9497_s24 + $0x250] sm:$0xff] }
 0x261   : > { %4393 = vmatpush1.bf16.msra.mxu1 %v7642_v12  ;;  %4288 = vmatprep.subr.bf16.mxu0 %v7649_v13  ;;  %v7707_v12 = vcombine.high %v7553_v6, %v7557_v7  ;;  %v7560_v13 = vld [vmem:[%s9504_s16 + $0x8d0] sm:$0xff]  ;;  %v7733_v7 = vld [vmem:[%s9497_s24 + $0x258] sm:$0xff] }
 0x262   : > { %4394 = vmatprep.subr.bf16.mxu1 %v7651_v14  ;;  %v7564_v14 = vld [vmem:[%s9504_s16 + $0x8f0] sm:$0xff] }
 0x263   : > { %v7712_v19 = vcombine.low %v7560_v13, %v7564_v14  ;;  %v7736_v6 = vld [vmem:[%s9497_s24 + $0x270] sm:$0xff] }
 0x264   : > { %4289 = vmatpush1.bf16.msra.mxu0 %v7648_v16  ;;  %v7713_v16 = vcombine.high %v7560_v13, %v7564_v14 }
 0x265   : > { %4395 = vmatpush1.bf16.msra.mxu1 %v7650_v32  ;;  %4290 = vmatprep.subr.bf16.mxu0 %v7657_v38  ;;  %v7730_v32 = vld [vmem:[%s9497_s24 + $0x240] sm:$0xff] }
 0x266   : > { %4396 = vmatprep.subr.bf16.mxu1 %v7659_v18  ;;  %v7734_v38 = vld [vmem:[%s9497_s24 + $0x260] sm:$0xff]  ;;  %v7715_v18 = vcombine.high %v7561_v9, %v7565_v29 }
 0x267   : > { %v7769_v22 = vcombine.high %v7730_v32, %v7734_v38  ;;  %v7768_v27 = vcombine.low %v7730_v32, %v7734_v38  ;;  %v7744_v32 = vld [vmem:[%s9497_s24 + $0x2b0] sm:$0xff] }
 0x268   : > { %4291 = vmatpush1.bf16.msra.mxu0 %v7656_v23  ;;  %v7714_v23 = vcombine.low %v7561_v9, %v7565_v29  ;;  %v4515_v9 = vld [vmem:[%s9539_s0 + $0xc] sm:$0xe] }
 0x269   : > { %4397 = vmatpush1.bf16.msra.mxu1 %v7658_v24  ;;  %4292 = vmatprep.subr.bf16.mxu0 %v7665_v25  ;;  %v7771_v24 = vcombine.high %v7731_v20, %v7735_v21  ;;  %v7739_v25 = vld [vmem:[%s9497_s24 + $0x288] sm:$0xff]  ;;  %v7772_v20 = vcombine.low %v7732_v3, %v7736_v6  ;;  %v7725_v21 = vrot.slane %v4515_v9, 9  ;;  %v7836_v9 = vld [vmem:[%s9504_s16 + $0x980] sm:$0xff] }
 0x26a   : > { %4398 = vmatprep.subr.bf16.mxu1 %v7667_v26  ;;  %v7743_v26 = vld [vmem:[%s9497_s24 + $0x2a8] sm:$0xff] }
 0x26b   : > { %v7779_v30 = vcombine.high %v7739_v25, %v7743_v26  ;;  %v7778_v54 = vcombine.low %v7739_v25, %v7743_v26  ;;  %v7748_v26 = vld [vmem:[%s9497_s24 + $0x2d0] sm:$0xff] }
 0x26c   : > { %4293 = vmatpush1.bf16.msra.mxu0 %v7664_v31  ;;  %v7746_v31 = vld [vmem:[%s9497_s24 + $0x2c0] sm:$0xff] }
 0x26d   : > { %4399 = vmatpush1.bf16.msra.mxu1 %v7666_v33  ;;  %4294 = vmatprep.subr.bf16.mxu0 %v7673_v34  ;;  %v7750_v33 = vld [vmem:[%s9497_s24 + $0x2e0] sm:$0xff]  ;;  %v7751_v34 = vld [vmem:[%s9497_s24 + $0x2e8] sm:$0xff] }
 0x26e   : > { %4400 = vmatprep.subr.bf16.mxu1 %v7675_v36  ;;  %v7785_v37 = vcombine.high %v7746_v31, %v7750_v33 }
 0x270   : > { %4295 = vmatpush1.bf16.msra.mxu0 %v7672_v41  ;;  %v7758_v41 = vld [vmem:[%s9497_s24 + $0x320] sm:$0xff] }
 0x271   : > { %4401 = vmatpush1.bf16.msra.mxu1 %v7674_v42  ;;  %4296 = vmatprep.subr.bf16.mxu0 %v7681_v43  ;;  %v7755_v42 = vld [vmem:[%s9497_s24 + $0x308] sm:$0xff]  ;;  %v7793_v46 = vcombine.high %v7754_v40, %v7758_v41 }
 0x272   : > { %4402 = vmatprep.subr.bf16.mxu1 %v7683_v61  ;;  %v7759_v43 = vld [vmem:[%s9497_s24 + $0x328] sm:$0xff]  ;;  %v8758_v61 = vld [vmem:[%s9539_s0 + $0x4] sm:$0xf] }
 0x273   : > { %v4527_v44 = vrot.slane %v8758_v61, 5 }
 0x274   : > { %4297 = vmatpush1.bf16.msra.mxu0 %v7680_v48  ;;  %v7795_v48 = vcombine.high %v7755_v42, %v7759_v43 }
 0x275   : > { %4403 = vmatpush1.bf16.msra.mxu1 %v7682_v53  ;;  %4298 = vmatprep.subr.bf16.mxu0 %v7689_v50  ;;  %v7762_v53 = vld [vmem:[%s9497_s24 + $0x340] sm:$0xff]  ;;  %v7763_v50 = vld [vmem:[%s9497_s24 + $0x348] sm:$0xff]  ;;  %v4529_v58 = vrot.slane %v4527_v44, 4 }
 0x276   : > { %4404 = vmatprep.subr.bf16.mxu1 %v7691_v52  ;;  %v7792_v52 = vcombine.low %v7754_v40, %v7758_v41  ;;  %v7802_v2 = vcombine.low %v7763_v50, %v7763_v50  ;;  %v7761_v40 = vld [vmem:[%s9497_s24 + $0x338] sm:$0xff] }
 0x278   : > { %4299 = vmatpush1.bf16.msra.mxu0 %v7688_v62  ;;  %v7794_v62 = vcombine.low %v7755_v42, %v7759_v43  ;;  %v4819_v29 = vsel %vm836_vm2, %v7802_v2, 0  ;;  %v7828_v2 = vld [vmem:[%s9504_s16 + $0x940] sm:$0xff] }
 0x279   : > { %4405 = vmatpush1.bf16.msra.mxu1 %v7690_v63  ;;  %4300 = vmatprep.subr.bf16.mxu0 %v7697_v0  ;;  %v7801_v63 = vcombine.high %v7762_v53, %v7762_v53  ;;  %v7800_v0 = vcombine.low %v7762_v53, %v7762_v53 }
 0x27a   : > { %4406 = vmatprep.subr.bf16.mxu1 %v7699_v1  ;;  %v7847_v1 = vld [vmem:[%s9504_s16 + $0x9d8] sm:$0xff] }
 0x27b   : > { %v4813_v14 = vsel %vm836_vm2, %v7800_v0, 0 }
 0x27c   : > { %4301 = vmatpush1.bf16.msra.mxu0 %v7696_v8  ;;  %v7737_v8 = vld [vmem:[%s9497_s24 + $0x278] sm:$0xff] }
 0x27d   : > { %4407 = vmatpush1.bf16.msra.mxu1 %v7698_v56  ;;  %4323 = vmatprep.subr.bf16.mxu0 %v7705_v11  ;;  %v4528_v56 = vsel %vm10163_vm10, %v7724_v55, %v4527_v44  ;;  %v4531_v11 = vsel %vm10163_vm10, %v4529_v58, %v4530_v60  ;;  %v7764_v44 = vld [vmem:[%s9497_s24 + $0x350] sm:$0xff]  ;;  %v7820_v55 = vld [vmem:[%s9504_s16 + $0x900] sm:$0xff]  ;;  %v7825_v60 = vld [vmem:[%s9504_s16 + $0x928] sm:$0xff] }
 0x27e   : > { %4429 = vmatprep.subr.bf16.mxu1 %v7707_v12  ;;  %v8760_v12 = vld [vmem:[%s9539_s0 + $0x10] sm:$0xf]  ;;  %v10185_v38 = vcombine.low %v4528_v56, %v4531_v11  ;;  %v7804_v53 = vcombine.low %v7764_v44, %v7764_v44  ;;  %v7824_v58 = vld [vmem:[%s9504_s16 + $0x920] sm:$0xff] }
 0x27f   : > { %4303 = vmatmul.mubr.bf16.vlgmr.msra.gmra.mrb[8].mxu0 %v9996_v4  ;;  %v4534_v13 = vrot.slane %v8760_v12, 5  ;;  %v7970_v11 = vcombine.low %v7820_v55, %v7824_v58  ;;  %v4539_v12 = vld [vmem:[#allocation2] sm:$0xee] }
 0x280   : > { %4409 = vmatmul.mubr.bf16.vlgmr.msra.gmra.mrb[8].mxu1 %v9996_v4  ;;  %4324 = vmatpush1.bf16.msra.mxu0 %v7704_v15  ;;  %v7738_v4 = vld [vmem:[%s9497_s24 + $0x280] sm:$0xff]  ;;  %v7773_v15 = vcombine.high %v7732_v3, %v7736_v6  ;;  %v7829_v6 = vld [vmem:[%s9504_s16 + $0x948] sm:$0xff] }
 0x281   : > { %4312 = vmatprep.mubr.bf16.mxu0 %v10008_v17  ;;  %4418 = vmatprep.mubr.bf16.mxu1 %v10008_v17  ;;  %v7742_v17 = vld [vmem:[%s9497_s24 + $0x2a0] sm:$0xff] }
 0x282   : > { %4325 = vmatprep.subr.bf16.mxu0 %v7713_v16  ;;  %4430 = vmatpush1.bf16.msra.mxu1 %v7706_v51  ;;  %v7777_v28 = vcombine.high %v7738_v4, %v7742_v17  ;;  %v7776_v36 = vcombine.low %v7738_v4, %v7742_v17  ;;  %v7775_v51 = vcombine.high %v7733_v7, %v7737_v8  ;;  %v7740_v16 = vld [vmem:[%s9497_s24 + $0x290] sm:$0xff]  ;;  %v7832_v3 = vld [vmem:[%s9504_s16 + $0x960] sm:$0xff] }
 0x283   : > { %4431 = vmatprep.subr.bf16.mxu1 %v7715_v18  ;;  %v7741_v18 = vld [vmem:[%s9497_s24 + $0x298] sm:$0xff]  ;;  %v7774_v4 = vcombine.low %v7733_v7, %v7737_v8  ;;  %v7781_v17 = vcombine.high %v7740_v16, %v7744_v32  ;;  %v7833_v7 = vld [vmem:[%s9504_s16 + $0x968] sm:$0xff] }
 0x284   : > { %4326 = vmatpush1.bf16.msra.mxu0 %v7712_v19  ;;  %v7745_v19 = vld [vmem:[%s9497_s24 + $0x2b8] sm:$0xff]  ;;  %v8762_v8 = vld [vmem:[#allocation2 + $0xc] sm:$0xff] }
 0x285   : > { %4836 = vmatprep.subr.bf16.mxu0 %v7769_v22  ;;  %v4536_v22 = vrot.slane %v4534_v13, 4  ;;  %v7783_v25 = vcombine.high %v7741_v18, %v7745_v19  ;;  %v4557_v56 = vrot.slane %v8762_v8, 5  ;;  %v7884_v8 = vld [vmem:[%s9504_s16 + $0xb00] sm:$0xff] }
 0x286   : > { %4432 = vmatpush1.bf16.msra.mxu1 %v7714_v23  ;;  %v8761_v23 = vld [vmem:[%s9539_s0 + $0x14] sm:$0x1] }
 0x287   : > { %4313 = vmatmul.mubr.bf16.gmra.mrb[12].mxu0 %v10022_v35  ;;  %4889 = vmatprep.subr.bf16.mxu1 %v7771_v24  ;;  %v4537_v24 = vrot.slane %v8761_v23, 5 }
 0x288   : > { %4419 = vmatmul.mubr.bf16.gmra.mrb[12].mxu1 %v10022_v35  ;;  %4355 = vmatprep.mubr.bf16.mxu0 %v9098_v10  ;;  %v7747_v35 = vld [vmem:[%s9497_s24 + $0x2c8] sm:$0xff] }
 0x289   : > { %4461 = vmatprep.mubr.bf16.mxu1 %v9098_v10  ;;  %v7787_v39 = vcombine.high %v7747_v35, %v7751_v34  ;;  %v7786_v45 = vcombine.low %v7747_v35, %v7751_v34  ;;  %v7782_v35 = vcombine.low %v7741_v18, %v7745_v19  ;;  %v4563_v18 = vrot.slane %v4557_v56, 4  ;;  %v8763_v19 = vld [vmem:[#allocation2 + $0x18] sm:$0x11] }
 0x28f   : > { %7720 = vmatmul.mubr.msk.bf16.vlgmr.msra.gmra.mrb[8].mxu0 %vm2040_vm4, %v10035_v57 }
 0x290   : > { %7722 = vmatmul.mubr.msk.bf16.vlgmr.msra.gmra.mrb[8].mxu1 %vm2040_vm4, %v10035_v57  ;;  %4837 = vmatpush1.bf16.msra.mxu0 %v7768_v27  ;;  %v7784_v57 = vcombine.low %v7746_v31, %v7750_v33  ;;  %v7752_v27 = vld [vmem:[%s9497_s24 + $0x2f0] sm:$0xff]  ;;  %v4535_v31 = vsel %vm10163_vm10, %v7725_v21, %v4534_v13  ;;  %v4538_v33 = vsel %vm10163_vm10, %v4536_v22, %v4537_v24 }
 0x291   : > { %4890 = vmatpush1.bf16.msra.mxu1 %v7770_v49  ;;  %4838 = vmatprep.subr.bf16.mxu0 %v7777_v28  ;;  %v7749_v49 = vld [vmem:[%s9497_s24 + $0x2d8] sm:$0xff]  ;;  %v7789_v34 = vcombine.high %v7748_v26, %v7752_v27  ;;  %v10208_v41 = vcombine.low %v4535_v31, %v4538_v33  ;;  %v7788_v42 = vcombine.low %v7748_v26, %v7752_v27  ;;  %v7849_v26 = vld [vmem:[%s9504_s16 + $0x9e8] sm:$0xff]  ;;  %v7852_v33 = vld [vmem:[%s9504_s16 + $0xa00] sm:$0xff] }
 0x292   : > { %4891 = vmatprep.subr.bf16.mxu1 %v7779_v30  ;;  %4365 = vmatprep.mubr.bf16.mxu0 %v9098_v10  ;;  %v7753_v28 = vld [vmem:[%s9497_s24 + $0x2f8] sm:$0xff]  ;;  %v7780_v30 = vcombine.low %v7740_v16, %v7744_v32  ;;  %v7972_v13 = vcombine.low %v7821_v59, %v7825_v60  ;;  %v7841_v16 = vld [vmem:[%s9504_s16 + $0x9a8] sm:$0xff]  ;;  %v7726_v32 = vrot.slane %v4539_v12, 9  ;;  %v7978_v21 = vcombine.low %v7828_v2, %v7832_v3 }
 0x293   : > { %4471 = vmatprep.mubr.bf16.mxu1 %v9098_v10  ;;  %v7790_v43 = vcombine.low %v7749_v49, %v7753_v28  ;;  %v7980_v22 = vcombine.low %v7829_v6, %v7833_v7  ;;  %v7889_v12 = vld [vmem:[%s9504_s16 + $0xb28] sm:$0xff] }
 0x294   : > { %4839 = vmatpush1.bf16.msra.mxu0 %v7776_v36  ;;  %v7791_v36 = vcombine.high %v7749_v49, %v7753_v28 }
 0x295   : > { %4892 = vmatpush1.bf16.msra.mxu1 %v7778_v54  ;;  %4840 = vmatprep.subr.bf16.mxu0 %v7785_v37  ;;  %v7756_v54 = vld [vmem:[%s9497_s24 + $0x310] sm:$0xff] }
 0x296   : > { %4893 = vmatprep.subr.bf16.mxu1 %v7787_v39  ;;  %v7760_v37 = vld [vmem:[%s9497_s24 + $0x330] sm:$0xff]  ;;  %v7757_v39 = vld [vmem:[%s9497_s24 + $0x318] sm:$0xff] }
 0x297   : > { %7721 = vmatmul.mubr.msk.bf16.gmra.mrb[12].mxu0 %vm2040_vm4, %v10058_v5  ;;  %v7799_v61 = vcombine.high %v7757_v39, %v7761_v40  ;;  %v7798_v47 = vcombine.low %v7757_v39, %v7761_v40 }
 0x298   : > { %4841 = vmatpush1.bf16.msra.mxu0 %v7784_v57  ;;  %7723 = vmatmul.mubr.msk.bf16.gmra.mrb[12].mxu1 %vm2040_vm4, %v10058_v5  ;;  %v7803_v5 = vcombine.high %v7763_v50, %v7763_v50  ;;  %v7797_v57 = vcombine.high %v7756_v54, %v7760_v37 }
 0x299   : > { %4894 = vmatpush1.bf16.msra.mxu1 %v7786_v45  ;;  %4842 = vmatprep.subr.bf16.mxu0 %v7793_v46  ;;  %v7765_v45 = vld [vmem:[%s9497_s24 + $0x358] sm:$0xff]  ;;  %v7796_v46 = vcombine.low %v7756_v54, %v7760_v37  ;;  %v7857_v54 = vld [vmem:[%s9504_s16 + $0xa28] sm:$0xff]  ;;  %s9099_s24 = smov 16  }
 0x29a   : > { %4895 = vmatprep.subr.bf16.mxu1 %v7795_v48  ;;  %4868 = vmatprep.mubr.bf16.mxu0 %v9098_v10  ;;  %v7805_v48 = vcombine.high %v7764_v44, %v7764_v44  ;;  %v7807_v50 = vcombine.high %v7765_v45, %v7765_v45  ;;  %v7865_v44 = vld [vmem:[%s9504_s16 + $0xa68] sm:$0xff] }
 0x29b   : > { %4921 = vmatprep.mubr.bf16.mxu1 %v9098_v10 }
 0x29c   : > { %4843 = vmatpush1.bf16.msra.mxu0 %v7792_v52  ;;  %v7806_v52 = vcombine.low %v7765_v45, %v7765_v45 }
 0x29d   : > { %4896 = vmatpush1.bf16.msra.mxu1 %v7794_v62  ;;  %7808 = vmatprep.subr.msk.bf16.mxu0 %vm836_vm2, %v7801_v63  ;;  %v4825_v62 = vsel %vm836_vm2, %v7804_v53, 0  ;;  %v7971_v63 = vcombine.high %v7820_v55, %v7824_v58  ;;  %v7872_v53 = vld [vmem:[%s9504_s16 + $0xaa0] sm:$0xff] }
 0x29e   : > { %7811 = vmatprep.subr.msk.bf16.mxu1 %vm836_vm2, %v7803_v5  ;;  %v4831_v0 = vsel %vm836_vm2, %v7806_v52, 0  ;;  %v7973_v5 = vcombine.high %v7821_v59, %v7825_v60  ;;  %v7873_v52 = vld [vmem:[%s9504_s16 + $0xaa8] sm:$0xff] }
 0x2a0   : > { %4845 = vmatpush1.bf16.msra.mxu0 %v4813_v14  ;;  %v7979_v14 = vcombine.high %v7828_v2, %v7832_v3 }
 0x2a1   : > { %4898 = vmatpush1.bf16.msra.mxu1 %v4819_v29  ;;  %4942 = vmatprep.subr.bf16.mxu0 %v7773_v15  ;;  %v7981_v15 = vcombine.high %v7829_v6, %v7833_v7  ;;  %v7840_v29 = vld [vmem:[%s9504_s16 + $0x9a0] sm:$0xff] }
 0x2a2   : > { %4995 = vmatprep.subr.bf16.mxu1 %v7775_v51  ;;  %v7837_v51 = vld [vmem:[%s9504_s16 + $0x988] sm:$0xff]  ;;  %v7987_v23 = vcombine.high %v7836_v9, %v7840_v29  ;;  %v7986_v49 = vcombine.low %v7836_v9, %v7840_v29  ;;  %v7892_v29 = vld [vmem:[%s9504_s16 + $0xb40] sm:$0xff] }
 0x2a3   : > { %7809 = vmatmul.mubr.msk.bf16.vlgmr.msra.gmra.mrb[0].mxu0 %vm829_vm3, %v10185_v38  ;;  %v7989_v24 = vcombine.high %v7837_v51, %v7841_v16  ;;  %v7988_v28 = vcombine.low %v7837_v51, %v7841_v16  ;;  %v7896_v51 = vld [vmem:[%s9504_s16 + $0xb60] sm:$0xff]  ;;  %v7893_v16 = vld [vmem:[%s9504_s16 + $0xb48] sm:$0xff] }
 0x2a4   : > { %7812 = vmatmul.mubr.msk.bf16.vlgmr.msra.gmra.mrb[0].mxu1 %vm829_vm3, %v10185_v38  ;;  %4943 = vmatpush1.bf16.msra.mxu0 %v7772_v20  ;;  %v4564_v20 = vrot.slane %v8763_v19, 5 }
 0x2a5   : > { %4996 = vmatpush1.bf16.msra.mxu1 %v7774_v4  ;;  %4944 = vmatprep.subr.bf16.mxu0 %v7781_v17  ;;  %v7844_v4 = vld [vmem:[%s9504_s16 + $0x9c0] sm:$0xff] }
 0x2a6   : > { %4997 = vmatprep.subr.bf16.mxu1 %v7783_v25  ;;  %4878 = vmatprep.mubr.bf16.mxu0 %v9098_v10  ;;  %v7848_v17 = vld [vmem:[%s9504_s16 + $0x9e0] sm:$0xff]  ;;  %v7845_v25 = vld [vmem:[%s9504_s16 + $0x9c8] sm:$0xff]  ;;  %v10250_v27 = vsel %vm10163_vm10, %v4563_v18, %v4564_v20  ;;  %v8043_v20 = vcombine.high %v7892_v29, %v7896_v51 }
 0x2a7   : > { %4931 = vmatprep.mubr.bf16.mxu1 %v9098_v10  ;;  %v7997_v31 = vcombine.high %v7845_v25, %v7849_v26  ;;  %v7994_v37 = vcombine.low %v7844_v4, %v7848_v17  ;;  %v7996_v39 = vcombine.low %v7845_v25, %v7849_v26 }
 0x2a8   : > { %4945 = vmatpush1.bf16.msra.mxu0 %v7780_v30  ;;  %v7995_v30 = vcombine.high %v7844_v4, %v7848_v17  ;;  %v7905_v4 = vld [vmem:[%s9504_s16 + $0xba8] sm:$0xff]  ;;  %v8042_v17 = vcombine.low %v7892_v29, %v7896_v51  ;;  %v7948_v29 = vld [vmem:[%s9504_s16 + $0xd00] sm:$0xff] }
 0x2a9   : > { %4998 = vmatpush1.bf16.msra.mxu1 %v7782_v35  ;;  %4946 = vmatprep.subr.bf16.mxu0 %v7789_v34  ;;  %v7856_v35 = vld [vmem:[%s9504_s16 + $0xa20] sm:$0xff] }
 0x2aa   : > { %4999 = vmatprep.subr.bf16.mxu1 %v7791_v36  ;;  %v7853_v36 = vld [vmem:[%s9504_s16 + $0xa08] sm:$0xff]  ;;  %v8003_v40 = vcombine.high %v7852_v33, %v7856_v35  ;;  %v7952_v51 = vld [vmem:[%s9504_s16 + $0xd20] sm:$0xff] }
 0x2ab   : > { %7810 = vmatmul.mubr.msk.bf16.gmra.mrb[4].mxu0 %vm829_vm3, %v10208_v41  ;;  %v8004_v45 = vcombine.low %v7853_v36, %v7857_v54 }
 0x2ac   : > { %4947 = vmatpush1.bf16.msra.mxu0 %v7788_v42  ;;  %7813 = vmatmul.mubr.msk.bf16.gmra.mrb[4].mxu1 %vm829_vm3, %v10208_v41  ;;  %v8005_v42 = vcombine.high %v7853_v36, %v7857_v54 }
 0x2ad   : > { %5000 = vmatpush1.bf16.msra.mxu1 %v7790_v43  ;;  %4948 = vmatprep.subr.bf16.mxu0 %v7797_v57  ;;  %v7860_v43 = vld [vmem:[%s9504_s16 + $0xa40] sm:$0xff] }
 0x2ae   : > { %5001 = vmatprep.subr.bf16.mxu1 %v7799_v61  ;;  %4974 = vmatprep.mubr.bf16.mxu0 %v9098_v10  ;;  %v7864_v57 = vld [vmem:[%s9504_s16 + $0xa60] sm:$0xff]  ;;  %v7861_v61 = vld [vmem:[%s9504_s16 + $0xa48] sm:$0xff] }
 0x2af   : > { %5027 = vmatprep.mubr.bf16.mxu1 %v9098_v10  ;;  %v8010_v55 = vcombine.low %v7860_v43, %v7864_v57  ;;  %v8012_v58 = vcombine.low %v7861_v61, %v7865_v44 }
 0x2b0   : > { %4949 = vmatpush1.bf16.msra.mxu0 %v7796_v46  ;;  %v8011_v46 = vcombine.high %v7860_v43, %v7864_v57  ;;  %v7921_v43 = vld [vmem:[%s9504_s16 + $0xc28] sm:$0xff] }
 0x2b1   : > { %5002 = vmatpush1.bf16.msra.mxu1 %v7798_v47  ;;  %7814 = vmatprep.subr.msk.bf16.mxu0 %vm836_vm2, %v7805_v48  ;;  %v8013_v47 = vcombine.high %v7861_v61, %v7865_v44  ;;  %v7868_v48 = vld [vmem:[%s9504_s16 + $0xa80] sm:$0xff] }
 0x2b2   : > { %7817 = vmatprep.subr.msk.bf16.mxu1 %vm836_vm2, %v7807_v50  ;;  %v7869_v50 = vld [vmem:[%s9504_s16 + $0xa88] sm:$0xff]  ;;  %v8019_v59 = vcombine.high %v7868_v48, %v7872_v53  ;;  %v8018_v2 = vcombine.low %v7868_v48, %v7872_v53 }
 0x2b3   : > { %v8021_v60 = vcombine.high %v7869_v50, %v7873_v52  ;;  %v8020_v3 = vcombine.low %v7869_v50, %v7873_v52  ;;  %v7929_v48 = vld [vmem:[%s9504_s16 + $0xc68] sm:$0xff] }
 0x2b4   : > { %4951 = vmatpush1.bf16.msra.mxu0 %v4825_v62  ;;  %v7876_v62 = vld [vmem:[%s9504_s16 + $0xac0] sm:$0xff] }
 0x2b5   : > { %5004 = vmatpush1.bf16.msra.mxu1 %v4831_v0  ;;  %5973 = vmatprep.subr.bf16.mxu0 %v7971_v63  ;;  %v7880_v63 = vld [vmem:[%s9504_s16 + $0xae0] sm:$0xff]  ;;  %v7877_v0 = vld [vmem:[%s9504_s16 + $0xac8] sm:$0xff] }
 0x2b6   : > { %6079 = vmatprep.subr.bf16.mxu1 %v7973_v5  ;;  %v7881_v5 = vld [vmem:[%s9504_s16 + $0xae8] sm:$0xff]  ;;  %v8027_v6 = vcombine.high %v7876_v62, %v7880_v63 }
 0x2b7   : > { %7815 = vmatmul.mubr.msk.bf16.vlgmr.msra.gmra.mrb[8].mxu0 %vm829_vm3, %v10185_v38  ;;  %v8029_v7 = vcombine.high %v7877_v0, %v7881_v5 }
 0x2b8   : > { %7818 = vmatmul.mubr.msk.bf16.vlgmr.msra.gmra.mrb[8].mxu1 %vm829_vm3, %v10185_v38  ;;  %5974 = vmatpush1.bf16.msra.mxu0 %v7970_v11  ;;  %v10246_v38 = vsel %vm10163_vm10, %v7726_v32, %v4557_v56  ;;  %v7888_v56 = vld [vmem:[%s9504_s16 + $0xb20] sm:$0xff]  ;;  %v7885_v11 = vld [vmem:[%s9504_s16 + $0xb08] sm:$0xff] }
 0x2b9   : > { %6080 = vmatpush1.bf16.msra.mxu1 %v7972_v13  ;;  %5975 = vmatprep.subr.bf16.mxu0 %v7979_v14  ;;  %v10256_v34 = vcombine.high %v10246_v38, %v10250_v27  ;;  %v8026_v13 = vcombine.low %v7876_v62, %v7880_v63  ;;  %v8028_v14 = vcombine.low %v7877_v0, %v7881_v5  ;;  %v7897_v32 = vld [vmem:[%s9504_s16 + $0xb68] sm:$0xff] }
 0x2ba   : > { %6081 = vmatprep.subr.bf16.mxu1 %v7981_v15  ;;  %4984 = vmatprep.mubr.bf16.mxu0 %v9098_v10  ;;  %v8035_v15 = vcombine.high %v7884_v8, %v7888_v56  ;;  %v8037_v9 = vcombine.high %v7885_v11, %v7889_v12  ;;  %v8034_v18 = vcombine.low %v7884_v8, %v7888_v56  ;;  %v7937_v62 = vld [vmem:[%s9504_s16 + $0xca8] sm:$0xff] }
 0x2bb   : > { %5037 = vmatprep.mubr.bf16.mxu1 %v9098_v10  ;;  %v8036_v19 = vcombine.low %v7885_v11, %v7889_v12  ;;  %v8044_v25 = vcombine.low %v7893_v16, %v7897_v32  ;;  %v7941_v56 = vld [vmem:[%s9504_s16 + $0xcc8] sm:$0xff]  ;;  %v4541_v12 = vld [vmem:[#allocation2 + $0x24] sm:$0xee] }
 0x2bc   : > { %5976 = vmatpush1.bf16.msra.mxu0 %v7978_v21  ;;  %v8045_v21 = vcombine.high %v7893_v16, %v7897_v32  ;;  %v7945_v11 = vld [vmem:[%s9504_s16 + $0xce8] sm:$0xff]  ;;  %v7728_v16 = vrot.slane %v4541_v12, 9 }
 0x2bd   : > { %6082 = vmatpush1.bf16.msra.mxu1 %v7980_v22  ;;  %5977 = vmatprep.subr.bf16.mxu0 %v7987_v23  ;;  %v7900_v22 = vld [vmem:[%s9504_s16 + $0xb80] sm:$0xff] }
 0x2be   : > { %6083 = vmatprep.subr.bf16.mxu1 %v7989_v24  ;;  %v7904_v23 = vld [vmem:[%s9504_s16 + $0xba0] sm:$0xff]  ;;  %v7901_v24 = vld [vmem:[%s9504_s16 + $0xb88] sm:$0xff] }
 0x2bf   : > { %7816 = vmatmul.mubr.msk.bf16.gmra.mrb[12].mxu0 %vm829_vm3, %v10208_v41  ;;  %v8051_v26 = vcombine.high %v7900_v22, %v7904_v23  ;;  %v8052_v36 = vcombine.low %v7901_v24, %v7905_v4 }
 0x2c0   : > { %5978 = vmatpush1.bf16.msra.mxu0 %v7986_v49  ;;  %7819 = vmatmul.mubr.msk.bf16.gmra.mrb[12].mxu1 %vm829_vm3, %v10208_v41  ;;  %v8002_v41 = vcombine.low %v7852_v33, %v7856_v35  ;;  %v8053_v49 = vcombine.high %v7901_v24, %v7905_v4  ;;  %v7913_v33 = vld [vmem:[%s9504_s16 + $0xbe8] sm:$0xff]  ;;  %v8050_v35 = vcombine.low %v7900_v22, %v7904_v23 }
 0x2c1   : > { %6084 = vmatpush1.bf16.msra.mxu1 %v7988_v28  ;;  %5979 = vmatprep.subr.bf16.mxu0 %v7995_v30  ;;  %v7908_v28 = vld [vmem:[%s9504_s16 + $0xbc0] sm:$0xff]  ;;  %v8092_v23 = vcombine.low %v7941_v56, %v7945_v11  ;;  %v8099_v24 = vcombine.high %v7948_v29, %v7952_v51 }
 0x2c2   : > { %6085 = vmatprep.subr.bf16.mxu1 %v7997_v31  ;;  %6005 = vmatprep.mubr.bf16.mxu0 %v10256_v34  ;;  %v7912_v30 = vld [vmem:[%s9504_s16 + $0xbe0] sm:$0xff]  ;;  %v7909_v31 = vld [vmem:[%s9504_s16 + $0xbc8] sm:$0xff] }
 0x2c3   : > { %6111 = vmatprep.mubr.bf16.mxu1 %v10256_v34  ;;  %v8059_v54 = vcombine.high %v7908_v28, %v7912_v30  ;;  %v8058_v57 = vcombine.low %v7908_v28, %v7912_v30  ;;  %v8060_v61 = vcombine.low %v7909_v31, %v7913_v33  ;;  %v7960_v28 = vld [vmem:[%s9504_s16 + $0xd60] sm:$0xff]  ;;  %v8098_v30 = vcombine.low %v7948_v29, %v7952_v51  ;;  %v7843_v29 = vld [vmem:[%s9504_s16 + $0x9b8] sm:$0xff] }
 0x2c4   : > { %5980 = vmatpush1.bf16.msra.mxu0 %v7994_v37  ;;  %v8061_v37 = vcombine.high %v7909_v31, %v7913_v33  ;;  %v7957_v31 = vld [vmem:[%s9504_s16 + $0xd48] sm:$0xff] }
 0x2c5   : > { %6086 = vmatpush1.bf16.msra.mxu1 %v7996_v39  ;;  %5981 = vmatprep.subr.bf16.mxu0 %v8003_v40  ;;  %v7916_v39 = vld [vmem:[%s9504_s16 + $0xc00] sm:$0xff]  ;;  %v7961_v33 = vld [vmem:[%s9504_s16 + $0xd68] sm:$0xff] }
 0x2c6   : > { %6087 = vmatprep.subr.bf16.mxu1 %v8005_v42  ;;  %v7920_v40 = vld [vmem:[%s9504_s16 + $0xc20] sm:$0xff]  ;;  %v7917_v42 = vld [vmem:[%s9504_s16 + $0xc08] sm:$0xff] }
 0x2c7   : > { %v8067_v44 = vcombine.high %v7916_v39, %v7920_v40  ;;  %v8066_v53 = vcombine.low %v7916_v39, %v7920_v40  ;;  %v8068_v50 = vcombine.low %v7917_v42, %v7921_v43  ;;  %v7826_v39 = vld [vmem:[%s9504_s16 + $0x930] sm:$0xff]  ;;  %v7823_v40 = vld [vmem:[%s9504_s16 + $0x918] sm:$0xff] }
 0x2c8   : > { %5982 = vmatpush1.bf16.msra.mxu0 %v8002_v41  ;;  %v8069_v41 = vcombine.high %v7917_v42, %v7921_v43  ;;  %v7827_v42 = vld [vmem:[%s9504_s16 + $0x938] sm:$0xff]  ;;  %v8766_v43 = vld [vmem:[#allocation2 + $0x14] sm:$0xf] }
 0x2c9   : > { %6088 = vmatpush1.bf16.msra.mxu1 %v8004_v45  ;;  %5983 = vmatprep.subr.bf16.mxu0 %v8011_v46  ;;  %v7924_v45 = vld [vmem:[%s9504_s16 + $0xc40] sm:$0xff] }
 0x2ca   : > { %6089 = vmatprep.subr.bf16.mxu1 %v8013_v47  ;;  %v7928_v46 = vld [vmem:[%s9504_s16 + $0xc60] sm:$0xff]  ;;  %v7925_v47 = vld [vmem:[%s9504_s16 + $0xc48] sm:$0xff] }
 0x2cb   : > { %v8075_v52 = vcombine.high %v7924_v45, %v7928_v46  ;;  %v8074_v63 = vcombine.low %v7924_v45, %v7928_v46  ;;  %v8076_v0 = vcombine.low %v7925_v47, %v7929_v48  ;;  %v7977_v46 = vcombine.high %v7823_v40, %v7827_v42 }
 0x2cc   : > { %5984 = vmatpush1.bf16.msra.mxu0 %v8010_v55  ;;  %v8077_v55 = vcombine.high %v7925_v47, %v7929_v48 }
 0x2cd   : > { %6090 = vmatpush1.bf16.msra.mxu1 %v8012_v58  ;;  %5985 = vmatprep.subr.bf16.mxu0 %v8019_v59  ;;  %v7932_v58 = vld [vmem:[%s9504_s16 + $0xc80] sm:$0xff] }
 0x2ce   : > { %6091 = vmatprep.subr.bf16.mxu1 %v8021_v60  ;;  %v7936_v59 = vld [vmem:[%s9504_s16 + $0xca0] sm:$0xff]  ;;  %v7933_v60 = vld [vmem:[%s9504_s16 + $0xc88] sm:$0xff] }
 0x2cf   : > { %v8083_v5 = vcombine.high %v7932_v58, %v7936_v59 }
 0x2d0   : > { %5986 = vmatpush1.bf16.msra.mxu0 %v8018_v2  ;;  %v8085_v2 = vcombine.high %v7933_v60, %v7937_v62 }
 0x2d1   : > { %6092 = vmatpush1.bf16.msra.mxu1 %v8020_v3  ;;  %5987 = vmatprep.subr.bf16.mxu0 %v8027_v6  ;;  %v7940_v3 = vld [vmem:[%s9504_s16 + $0xcc0] sm:$0xff] }
 0x2d2   : > { %6093 = vmatprep.subr.bf16.mxu1 %v8029_v7  ;;  %v7944_v6 = vld [vmem:[%s9504_s16 + $0xce0] sm:$0xff]  ;;  %v8764_v7 = vld [vmem:[#allocation2 + $0x30] sm:$0xff] }
 0x2d3   : > { %v4571_v8 = vrot.slane %v8764_v7, 5  ;;  %v8090_v22 = vcombine.low %v7940_v3, %v7944_v6 }
 0x2d4   : > { %5988 = vmatpush1.bf16.msra.mxu0 %v8026_v13  ;;  %v8082_v13 = vcombine.low %v7932_v58, %v7936_v59  ;;  %v8768_v58 = vld [vmem:[#allocation2 + $0x38] sm:$0xf] }
 0x2d5   : > { %6094 = vmatpush1.bf16.msra.mxu1 %v8028_v14  ;;  %5989 = vmatprep.subr.bf16.mxu0 %v8035_v15  ;;  %v8084_v14 = vcombine.low %v7933_v60, %v7937_v62  ;;  %v8091_v15 = vcombine.high %v7940_v3, %v7944_v6  ;;  %v4577_v32 = vrot.slane %v4571_v8, 4  ;;  %v4572_v4 = vsel %vm10163_vm10, %v7728_v16, %v4571_v8  ;;  %v4542_v60 = vld [vmem:[#allocation2 + $0x2c] sm:$0xe]  ;;  %v7830_v62 = vld [vmem:[%s9504_s16 + $0x950] sm:$0xff]  ;;  %v8769_v8 = vld [vmem:[#allocation2 + $0x44] sm:$0x1] }
 0x2d6   : > { %6095 = vmatprep.subr.bf16.mxu1 %v8037_v9  ;;  %v8093_v9 = vcombine.high %v7941_v56, %v7945_v11  ;;  %v4575_v59 = vrot.slane %v8768_v58, 5  ;;  %v7729_v6 = vrot.slane %v4542_v60, 9  ;;  %v4581_v56 = vrot.slane %v8769_v8, 5  ;;  %v7882_v58 = vld [vmem:[%s9504_s16 + $0xaf0] sm:$0xff]  ;;  %v7883_v60 = vld [vmem:[%s9504_s16 + $0xaf8] sm:$0xff] }
 0x2d7   : > { %v7976_v11 = vcombine.low %v7823_v40, %v7827_v42  ;;  %v7863_v40 = vld [vmem:[%s9504_s16 + $0xa58] sm:$0xff] }
 0x2d8   : > { %5990 = vmatpush1.bf16.msra.mxu0 %v8034_v18  ;;  %v8765_v18 = vld [vmem:[#allocation2 + $0x3c] sm:$0x11]  ;;  %v4580_v7 = vrot.slane %v4575_v59, 4  ;;  %v4576_v16 = vsel %vm10163_vm10, %v7729_v6, %v4575_v59 }
 0x2d9   : > { %6096 = vmatpush1.bf16.msra.mxu1 %v8036_v19  ;;  %5991 = vmatprep.subr.bf16.mxu0 %v8043_v20  ;;  %v4578_v19 = vrot.slane %v8765_v18, 5  ;;  %v7949_v20 = vld [vmem:[%s9504_s16 + $0xd08] sm:$0xff]  ;;  %v7867_v42 = vld [vmem:[%s9504_s16 + $0xa78] sm:$0xff]  ;;  %v7890_v6 = vld [vmem:[%s9504_s16 + $0xb30] sm:$0xff] }
 0x2da   : > { %6097 = vmatprep.subr.bf16.mxu1 %v8045_v21  ;;  %v7953_v21 = vld [vmem:[%s9504_s16 + $0xd28] sm:$0xff]  ;;  %v7879_v59 = vld [vmem:[%s9504_s16 + $0xad8] sm:$0xff] }
 0x2db   : > { %v7891_v8 = vld [vmem:[%s9504_s16 + $0xb38] sm:$0xff] }
 0x2dc   : > { %5992 = vmatpush1.bf16.msra.mxu0 %v8042_v17  ;;  %v4579_v17 = vsel %vm10163_vm10, %v4577_v32, %v4578_v19  ;;  %v4582_v32 = vsel %vm10163_vm10, %v4580_v7, %v4581_v56  ;;  %v7887_v7 = vld [vmem:[%s9504_s16 + $0xb18] sm:$0xff] }
 0x2dd   : > { %6098 = vmatpush1.bf16.msra.mxu1 %v8044_v25  ;;  %5993 = vmatprep.subr.bf16.mxu0 %v8051_v26  ;;  %v8101_v25 = vcombine.high %v7949_v20, %v7953_v21  ;;  %v10320_v26 = vcombine.low %v10246_v38, %v10250_v27  ;;  %v8109_v38 = vcombine.high %v7957_v31, %v7961_v33 }
 0x2de   : > { %6099 = vmatprep.subr.bf16.mxu1 %v8053_v49  ;;  %v7956_v49 = vld [vmem:[%s9504_s16 + $0xd40] sm:$0xff]  ;;  %v10336_v45 = vcombine.low %v4572_v4, %v4579_v17 }
 0x2df   : > { %v8106_v27 = vcombine.low %v7956_v49, %v7960_v28 }
 0x2e0   : > { %5994 = vmatpush1.bf16.msra.mxu0 %v8050_v35  ;;  %v10326_v35 = vcombine.high %v4572_v4, %v4579_v17 }
 0x2e1   : > { %6100 = vmatpush1.bf16.msra.mxu1 %v8052_v36  ;;  %5995 = vmatprep.subr.bf16.mxu0 %v8059_v54  ;;  %v8100_v36 = vcombine.low %v7949_v20, %v7953_v21  ;;  %v8107_v54 = vcombine.high %v7956_v49, %v7960_v28  ;;  %v7846_v21 = vld [vmem:[%s9504_s16 + $0x9d0] sm:$0xff] }
 0x2e2   : > { %6101 = vmatprep.subr.bf16.mxu1 %v8061_v37  ;;  %v7822_v37 = vld [vmem:[%s9504_s16 + $0x910] sm:$0xff] }
 0x2e3   : > { %v7974_v3 = vcombine.low %v7822_v37, %v7826_v39  ;;  %v7854_v28 = vld [vmem:[%s9504_s16 + $0xa10] sm:$0xff] }
 0x2e4   : > { %5996 = vmatpush1.bf16.msra.mxu0 %v8058_v57  ;;  %v4561_v57 = vrot.slane %v8766_v43, 5 }
 0x2e5   : > { %6102 = vmatpush1.bf16.msra.mxu1 %v8060_v61  ;;  %5997 = vmatprep.subr.bf16.mxu0 %v8067_v44  ;;  %v7975_v61 = vcombine.high %v7822_v37, %v7826_v39  ;;  %v4540_v44 = vld [vmem:[#allocation2 + $0x8] sm:$0xe] }
 0x2e6   : > { %6103 = vmatprep.subr.bf16.mxu1 %v8069_v41  ;;  %v8108_v41 = vcombine.low %v7957_v31, %v7961_v33  ;;  %v7727_v47 = vrot.slane %v4540_v44, 9  ;;  %v4566_v48 = vrot.slane %v4561_v57, 4  ;;  %v7855_v31 = vld [vmem:[%s9504_s16 + $0xa18] sm:$0xff]  ;;  %v8017_v44 = vcombine.high %v7863_v40, %v7867_v42 }
 0x2e7   : > { %v7859_v33 = vld [vmem:[%s9504_s16 + $0xa38] sm:$0xff] }
 0x2e8   : > { %5998 = vmatpush1.bf16.msra.mxu0 %v8066_v53  ;;  %v8767_v53 = vld [vmem:[#allocation2 + $0x20] sm:$0x1]  ;;  %v8009_v39 = vcombine.high %v7855_v31, %v7859_v33 }
 0x2e9   : > { %6104 = vmatpush1.bf16.msra.mxu1 %v8068_v50  ;;  %5999 = vmatprep.subr.bf16.mxu0 %v8075_v52  ;;  %v4567_v50 = vrot.slane %v8767_v53, 5  ;;  %v4562_v52 = vsel %vm10163_vm10, %v7727_v47, %v4561_v57  ;;  %v8008_v57 = vcombine.low %v7855_v31, %v7859_v33  ;;  %v7871_v47 = vld [vmem:[%s9504_s16 + $0xa98] sm:$0xff] }
 0x2ea   : > { %6105 = vmatprep.subr.bf16.mxu1 %v8077_v55 }
 0x2eb   : > { %v4568_v55 = vsel %vm10163_vm10, %v4566_v48, %v4567_v50  ;;  %v7875_v48 = vld [vmem:[%s9504_s16 + $0xab8] sm:$0xff] }
 0x2ec   : > { %6000 = vmatpush1.bf16.msra.mxu0 %v8074_v63  ;;  %v7834_v63 = vld [vmem:[%s9504_s16 + $0x970] sm:$0xff] }
 0x2ed   : > { %6106 = vmatpush1.bf16.msra.mxu1 %v8076_v0  ;;  %6001 = vmatprep.subr.bf16.mxu0 %v8083_v5  ;;  %v10348_v0 = vcombine.low %v4562_v52, %v4568_v55  ;;  %v7831_v5 = vld [vmem:[%s9504_s16 + $0x958] sm:$0xff]  ;;  %v7983_v12 = vcombine.high %v7830_v62, %v7834_v63  ;;  %v7982_v51 = vcombine.low %v7830_v62, %v7834_v63  ;;  %v7878_v55 = vld [vmem:[%s9504_s16 + $0xad0] sm:$0xff] }
 0x2ee   : > { %6107 = vmatprep.subr.bf16.mxu1 %v8085_v2  ;;  %v7835_v2 = vld [vmem:[%s9504_s16 + $0x978] sm:$0xff]  ;;  %v8025_v52 = vcombine.high %v7871_v47, %v7875_v48  ;;  %v8024_v63 = vcombine.low %v7871_v47, %v7875_v48  ;;  %v8030_v56 = vcombine.low %v7878_v55, %v7882_v58 }
 0x2ef   : > { %v7984_v18 = vcombine.low %v7831_v5, %v7835_v2 }
 0x2f0   : > { %6002 = vmatpush1.bf16.msra.mxu0 %v8082_v13  ;;  %v7985_v13 = vcombine.high %v7831_v5, %v7835_v2  ;;  %v8031_v5 = vcombine.high %v7878_v55, %v7882_v58  ;;  %v8033_v2 = vcombine.high %v7879_v59, %v7883_v60  ;;  %v7935_v55 = vld [vmem:[%s9504_s16 + $0xc98] sm:$0xff] }
 0x2f1   : > { %6108 = vmatpush1.bf16.msra.mxu1 %v8084_v14  ;;  %6003 = vmatprep.subr.bf16.mxu0 %v8091_v15  ;;  %v7838_v14 = vld [vmem:[%s9504_s16 + $0x990] sm:$0xff]  ;;  %v7939_v58 = vld [vmem:[%s9504_s16 + $0xcb8] sm:$0xff] }
 0x2f2   : > { %6109 = vmatprep.subr.bf16.mxu1 %v8093_v9  ;;  %v7842_v15 = vld [vmem:[%s9504_s16 + $0x9b0] sm:$0xff]  ;;  %v7839_v9 = vld [vmem:[%s9504_s16 + $0x998] sm:$0xff] }
 0x2f3   : > { %v7991_v19 = vcombine.high %v7838_v14, %v7842_v15  ;;  %v7993_v20 = vcombine.high %v7839_v9, %v7843_v29  ;;  %v7990_v4 = vcombine.low %v7838_v14, %v7842_v15  ;;  %v7992_v17 = vcombine.low %v7839_v9, %v7843_v29  ;;  %v7894_v14 = vld [vmem:[%s9504_s16 + $0xb50] sm:$0xff]  ;;  %v7895_v9 = vld [vmem:[%s9504_s16 + $0xb58] sm:$0xff] }
 0x2f4   : > { %6004 = vmatpush1.bf16.msra.mxu0 %v8090_v22  ;;  %v7850_v22 = vld [vmem:[%s9504_s16 + $0x9f0] sm:$0xff]  ;;  %v7899_v29 = vld [vmem:[%s9504_s16 + $0xb78] sm:$0xff] }
 0x2f5   : > { %6110 = vmatpush1.bf16.msra.mxu1 %v8092_v23  ;;  %6026 = vmatprep.subr.bf16.mxu0 %v8099_v24  ;;  %v10368_v23 = vcombine.low %v4576_v16, %v4582_v32  ;;  %v7851_v24 = vld [vmem:[%s9504_s16 + $0x9f8] sm:$0xff]  ;;  %v7898_v15 = vld [vmem:[%s9504_s16 + $0xb70] sm:$0xff]  ;;  %v8040_v16 = vcombine.low %v7887_v7, %v7891_v8 }
 0x2f6   : > { %6132 = vmatprep.subr.bf16.mxu1 %v8101_v25  ;;  %v7999_v25 = vcombine.high %v7846_v21, %v7850_v22  ;;  %v8001_v49 = vcombine.high %v7847_v1, %v7851_v24  ;;  %v8047_v32 = vcombine.high %v7894_v14, %v7898_v15 }
 0x2f7   : > { %6006 = vmatmul.mubr.bf16.vlgmr.msra.gmra.mrb[0].mxu0 %v10320_v26 }
 0x2f8   : > { %6112 = vmatmul.mubr.bf16.vlgmr.msra.gmra.mrb[0].mxu1 %v10320_v26  ;;  %6027 = vmatpush1.bf16.msra.mxu0 %v8098_v30  ;;  %v7858_v30 = vld [vmem:[%s9504_s16 + $0xa30] sm:$0xff] }
 0x2f9   : > { %6015 = vmatprep.mubr.bf16.mxu0 %v10326_v35  ;;  %6121 = vmatprep.mubr.bf16.mxu1 %v10326_v35  ;;  %v8007_v37 = vcombine.high %v7854_v28, %v7858_v30  ;;  %v8006_v43 = vcombine.low %v7854_v28, %v7858_v30  ;;  %v7911_v28 = vld [vmem:[%s9504_s16 + $0xbd8] sm:$0xff] }
 0x2fa   : > { %6028 = vmatprep.subr.bf16.mxu0 %v8107_v54  ;;  %6133 = vmatpush1.bf16.msra.mxu1 %v8100_v36  ;;  %v7998_v36 = vcombine.low %v7846_v21, %v7850_v22  ;;  %v8000_v54 = vcombine.low %v7847_v1, %v7851_v24  ;;  %v7903_v21 = vld [vmem:[%s9504_s16 + $0xb98] sm:$0xff]  ;;  %v8046_v1 = vcombine.low %v7894_v14, %v7898_v15 }
 0x2fb   : > { %6134 = vmatprep.subr.bf16.mxu1 %v8109_v38  ;;  %v7862_v38 = vld [vmem:[%s9504_s16 + $0xa50] sm:$0xff]  ;;  %v7907_v22 = vld [vmem:[%s9504_s16 + $0xbb8] sm:$0xff]  ;;  %v8048_v24 = vcombine.low %v7895_v9, %v7899_v29 }
 0x2fc   : > { %6029 = vmatpush1.bf16.msra.mxu0 %v8106_v27  ;;  %v7866_v27 = vld [vmem:[%s9504_s16 + $0xa70] sm:$0xff]  ;;  %v7915_v30 = vld [vmem:[%s9504_s16 + $0xbf8] sm:$0xff]  ;;  %v8056_v33 = vcombine.low %v7903_v21, %v7907_v22 }
 0x2fd   : > { %6185 = vmatprep.subr.bf16.mxu0 %v7975_v61  ;;  %v8015_v61 = vcombine.high %v7862_v38, %v7866_v27  ;;  %v8014_v53 = vcombine.low %v7862_v38, %v7866_v27  ;;  %v7919_v38 = vld [vmem:[%s9504_s16 + $0xc18] sm:$0xff] }
 0x2fe   : > { %6135 = vmatpush1.bf16.msra.mxu1 %v8108_v41  ;;  %v7870_v41 = vld [vmem:[%s9504_s16 + $0xa90] sm:$0xff]  ;;  %v7923_v27 = vld [vmem:[%s9504_s16 + $0xc38] sm:$0xff] }
 0x2ff   : > { %6016 = vmatmul.mubr.bf16.gmra.mrb[4].mxu0 %v10336_v45  ;;  %6291 = vmatprep.subr.bf16.mxu1 %v7977_v46  ;;  %v7874_v46 = vld [vmem:[%s9504_s16 + $0xab0] sm:$0xff]  ;;  %v8072_v48 = vcombine.low %v7919_v38, %v7923_v27  ;;  %v7951_v14 = vld [vmem:[%s9504_s16 + $0xd18] sm:$0xff] }
 0x300   : > { %6122 = vmatmul.mubr.bf16.gmra.mrb[4].mxu1 %v10336_v45  ;;  %6058 = vmatprep.mubr.bf16.mxu0 %v9098_v10  ;;  %v8023_v50 = vcombine.high %v7870_v41, %v7874_v46  ;;  %v8022_v62 = vcombine.low %v7870_v41, %v7874_v46  ;;  %v7927_v41 = vld [vmem:[%s9504_s16 + $0xc58] sm:$0xff] }
 0x301   : > { %6164 = vmatprep.mubr.bf16.mxu1 %v9098_v10  ;;  %v7931_v46 = vld [vmem:[%s9504_s16 + $0xc78] sm:$0xff] }
 0x302   : > { %v7955_v15 = vld [vmem:[%s9504_s16 + $0xd38] sm:$0xff] }
 0x307   : > { %8114 = vmatmul.mubr.msk.bf16.vlgmr.msra.gmra.mrb[0].mxu0 %vm2040_vm4, %v10348_v0 }
 0x308   : > { %8116 = vmatmul.mubr.msk.bf16.vlgmr.msra.gmra.mrb[0].mxu1 %vm2040_vm4, %v10348_v0  ;;  %6186 = vmatpush1.bf16.msra.mxu0 %v7974_v3  ;;  %v7886_v3 = vld [vmem:[%s9504_s16 + $0xb10] sm:$0xff] }
 0x309   : > { %6292 = vmatpush1.bf16.msra.mxu1 %v7976_v11  ;;  %6187 = vmatprep.subr.bf16.mxu0 %v7983_v12  ;;  %v8032_v11 = vcombine.low %v7879_v59, %v7883_v60  ;;  %v8039_v12 = vcombine.high %v7886_v3, %v7890_v6  ;;  %v8080_v60 = vcombine.low %v7927_v41, %v7931_v46 }
 0x30a   : > { %6293 = vmatprep.subr.bf16.mxu1 %v7985_v13  ;;  %6068 = vmatprep.mubr.bf16.mxu0 %v9098_v10  ;;  %v8041_v13 = vcombine.high %v7887_v7, %v7891_v8  ;;  %v8088_v8 = vcombine.low %v7935_v55, %v7939_v58 }
 0x30b   : > { %6174 = vmatprep.mubr.bf16.mxu1 %v9098_v10 }
 0x30c   : > { %6188 = vmatpush1.bf16.msra.mxu0 %v7982_v51  ;;  %v8038_v51 = vcombine.low %v7886_v3, %v7890_v6  ;;  %v7943_v3 = vld [vmem:[%s9504_s16 + $0xcd8] sm:$0xff] }
 0x30d   : > { %6294 = vmatpush1.bf16.msra.mxu1 %v7984_v18  ;;  %6189 = vmatprep.subr.bf16.mxu0 %v7991_v19  ;;  %v8049_v18 = vcombine.high %v7895_v9, %v7899_v29  ;;  %v7902_v19 = vld [vmem:[%s9504_s16 + $0xb90] sm:$0xff]  ;;  %v7947_v6 = vld [vmem:[%s9504_s16 + $0xcf8] sm:$0xff] }
 0x30e   : > { %6295 = vmatprep.subr.bf16.mxu1 %v7993_v20  ;;  %v7906_v20 = vld [vmem:[%s9504_s16 + $0xbb0] sm:$0xff]  ;;  %v8096_v29 = vcombine.low %v7943_v3, %v7947_v6 }
 0x30f   : > { %8115 = vmatmul.mubr.msk.bf16.gmra.mrb[4].mxu0 %vm2040_vm4, %v10368_v23  ;;  %v8054_v31 = vcombine.low %v7902_v19, %v7906_v20 }
 0x310   : > { %8117 = vmatmul.mubr.msk.bf16.gmra.mrb[4].mxu1 %vm2040_vm4, %v10368_v23  ;;  %6190 = vmatpush1.bf16.msra.mxu0 %v7990_v4  ;;  %v8055_v4 = vcombine.high %v7902_v19, %v7906_v20  ;;  %v7959_v20 = vld [vmem:[%s9504_s16 + $0xd58] sm:$0xff] }
 0x311   : > { %6296 = vmatpush1.bf16.msra.mxu1 %v7992_v17  ;;  %6191 = vmatprep.subr.bf16.mxu0 %v7999_v25  ;;  %v8057_v17 = vcombine.high %v7903_v21, %v7907_v22  ;;  %v7910_v25 = vld [vmem:[%s9504_s16 + $0xbd0] sm:$0xff]  ;;  %v7963_v21 = vld [vmem:[%s9504_s16 + $0xd78] sm:$0xff] }
 0x312   : > { %6297 = vmatprep.subr.bf16.mxu1 %v8001_v49  ;;  %6217 = vmatprep.mubr.bf16.mxu0 %v10256_v34  ;;  %v7914_v49 = vld [vmem:[%s9504_s16 + $0xbf0] sm:$0xff] }
 0x313   : > { %6323 = vmatprep.mubr.bf16.mxu1 %v10256_v34  ;;  %v8016_v34 = vcombine.low %v7863_v40, %v7867_v42  ;;  %v8062_v40 = vcombine.low %v7910_v25, %v7914_v49  ;;  %v8064_v42 = vcombine.low %v7911_v28, %v7915_v30 }
 0x314   : > { %6192 = vmatpush1.bf16.msra.mxu0 %v7998_v36  ;;  %v8063_v36 = vcombine.high %v7910_v25, %v7914_v49 }
 0x315   : > { %6298 = vmatpush1.bf16.msra.mxu1 %v8000_v54  ;;  %6193 = vmatprep.subr.bf16.mxu0 %v8007_v37  ;;  %v8065_v54 = vcombine.high %v7911_v28, %v7915_v30  ;;  %v7918_v37 = vld [vmem:[%s9504_s16 + $0xc10] sm:$0xff] }
 0x316   : > { %6299 = vmatprep.subr.bf16.mxu1 %v8009_v39  ;;  %v7922_v39 = vld [vmem:[%s9504_s16 + $0xc30] sm:$0xff] }
 0x317   : > { %v8070_v47 = vcombine.low %v7918_v37, %v7922_v39 }
 0x318   : > { %6194 = vmatpush1.bf16.msra.mxu0 %v8006_v43  ;;  %v8071_v43 = vcombine.high %v7918_v37, %v7922_v39 }
 0x319   : > { %6300 = vmatpush1.bf16.msra.mxu1 %v8008_v57  ;;  %6195 = vmatprep.subr.bf16.mxu0 %v8015_v61  ;;  %v8073_v57 = vcombine.high %v7919_v38, %v7923_v27  ;;  %v7926_v61 = vld [vmem:[%s9504_s16 + $0xc50] sm:$0xff]  ;;  %v1074_v38 = vlaneseq }
 0x31a   : > { %6301 = vmatprep.subr.bf16.mxu1 %v8017_v44  ;;  %v7930_v44 = vld [vmem:[%s9504_s16 + $0xc70] sm:$0xff] }
 0x31b   : > { %v8078_v59 = vcombine.low %v7926_v61, %v7930_v44  ;;  %v10466_v27 = vshrl.u32 %v1074_v38, 7 }
 0x31c   : > { %6196 = vmatpush1.bf16.msra.mxu0 %v8014_v53  ;;  %v8079_v53 = vcombine.high %v7926_v61, %v7930_v44  ;;  %v10477_v44 = vld [vmem:[#allocation3] sm:$0xff] }
 0x31d   : > { %6302 = vmatpush1.bf16.msra.mxu1 %v8016_v34  ;;  %6197 = vmatprep.subr.bf16.mxu0 %v8023_v50  ;;  %v8081_v34 = vcombine.high %v7927_v41, %v7931_v46  ;;  %v7934_v50 = vld [vmem:[%s9504_s16 + $0xc90] sm:$0xff] }
 0x31e   : > { %6303 = vmatprep.subr.bf16.mxu1 %v8025_v52  ;;  %v7938_v52 = vld [vmem:[%s9504_s16 + $0xcb0] sm:$0xff] }
 0x31f   : > { %v8086_v7 = vcombine.low %v7934_v50, %v7938_v52  ;;  %v6437_v41 = vld [vmem:[%s9512_s2] sm:$0xff] }
 0x320   : > { %6198 = vmatpush1.bf16.msra.mxu0 %v8022_v62  ;;  %v8087_v62 = vcombine.high %v7934_v50, %v7938_v52  ;;  %v6438_v50 = vld [vmem:[%s9512_s2 + $0x8] sm:$0xff] }
 0x321   : > { %6304 = vmatpush1.bf16.msra.mxu1 %v8024_v63  ;;  %6199 = vmatprep.subr.bf16.mxu0 %v8031_v5  ;;  %v8089_v63 = vcombine.high %v7935_v55, %v7939_v58  ;;  %v7942_v5 = vld [vmem:[%s9504_s16 + $0xcd0] sm:$0xff]  ;;  %v6445_v55 = vmul.f32 %v6437_v41, %v10477_v44 }
 0x322   : > { %6305 = vmatprep.subr.bf16.mxu1 %v8033_v2  ;;  %v7946_v2 = vld [vmem:[%s9504_s16 + $0xcf0] sm:$0xff] }
 0x323   : > { %v8094_v9 = vcombine.low %v7942_v5, %v7946_v2 }
 0x324   : > { %6200 = vmatpush1.bf16.msra.mxu0 %v8030_v56  ;;  %v8095_v56 = vcombine.high %v7942_v5, %v7946_v2  ;;  %v6510_v5 = vld [vmem:[%s9518_s12 + $0x8] sm:$0xff] }
 0x325   : > { %6306 = vmatpush1.bf16.msra.mxu1 %v8032_v11  ;;  %6201 = vmatprep.subr.bf16.mxu0 %v8039_v12  ;;  %v8097_v11 = vcombine.high %v7943_v3, %v7947_v6  ;;  %v7950_v12 = vld [vmem:[%s9504_s16 + $0xd10] sm:$0xff]  ;;  %v6439_v6 = vld [vmem:[%s9512_s2 + $0x10] sm:$0xff] }
 0x326   : > { %6307 = vmatprep.subr.bf16.mxu1 %v8041_v13  ;;  %v7954_v13 = vld [vmem:[%s9504_s16 + $0xd30] sm:$0xff] }
 0x327   : > { %v8102_v19 = vcombine.low %v7950_v12, %v7954_v13  ;;  %v10501_v3 = vld [vmem:[#allocation3 + $0x10] sm:$0xff] }
 0x328   : > { %6202 = vmatpush1.bf16.msra.mxu0 %v8038_v51  ;;  %v8103_v51 = vcombine.high %v7950_v12, %v7954_v13  ;;  %v10507_v13 = vld [vmem:[#allocation3 + $0x18] sm:$0xff] }
 0x329   : > { %6308 = vmatpush1.bf16.msra.mxu1 %v8040_v16  ;;  %6203 = vmatprep.subr.bf16.mxu0 %v8047_v32  ;;  %v8105_v16 = vcombine.high %v7951_v14, %v7955_v15  ;;  %v7958_v32 = vld [vmem:[%s9504_s16 + $0xd50] sm:$0xff] }
 0x32a   : > { %6309 = vmatprep.subr.bf16.mxu1 %v8049_v18  ;;  %v7962_v18 = vld [vmem:[%s9504_s16 + $0xd70] sm:$0xff]  ;;  %s10906_s16 = sld [smem:[#allocation25_spill]] }
 0x32b   : > { %v8111_v22 = vcombine.high %v7958_v32, %v7962_v18 }
 0x32c   : > { %6204 = vmatpush1.bf16.msra.mxu0 %v8046_v1  ;;  %v8104_v1 = vcombine.low %v7951_v14, %v7955_v15  ;;  %v6440_v14 = vld [vmem:[%s9512_s2 + $0x18] sm:$0xff] }
 0x32d   : > { %6310 = vmatpush1.bf16.msra.mxu1 %v8048_v24  ;;  %6205 = vmatprep.subr.bf16.mxu0 %v8055_v4  ;;  %v8113_v24 = vcombine.high %v7959_v20, %v7963_v21  ;;  %v8110_v4 = vcombine.low %v7958_v32, %v7962_v18  ;;  %v10515_v18 = vld [vmem:[#allocation3 + $0x20] sm:$0xff] }
 0x32e   : > { %6311 = vmatprep.subr.bf16.mxu1 %v8057_v17  ;;  %v8112_v17 = vcombine.low %v7959_v20, %v7963_v21  ;;  %v6513_v20 = vld [vmem:[%s9518_s12 + $0x20] sm:$0xff] }
 0x330   : > { %6206 = vmatpush1.bf16.msra.mxu0 %v8054_v31  ;;  %s8153_s4 = sshll.u32 %s10906_s16, 6 }
 0x331   : > { %6312 = vmatpush1.bf16.msra.mxu1 %v8056_v33  ;;  %6207 = vmatprep.subr.bf16.mxu0 %v8063_v36 }
 0x332   : > { %6313 = vmatprep.subr.bf16.mxu1 %v8065_v54 }
 0x334   : > { %6208 = vmatpush1.bf16.msra.mxu0 %v8062_v40  ;;  %v1076_v40 = vsub.s32 0, %v10466_v27 }
 0x335   : > { %6314 = vmatpush1.bf16.msra.mxu1 %v8064_v42  ;;  %6209 = vmatprep.subr.bf16.mxu0 %v8071_v43  ;;  %v10470_v42 = vld [vmem:[%s9510_s15] sm:$0xff]  ;;  %v1084_v43 = vsub.s32 2, %v10466_v27  ;;  %s10907_s15 = sld [smem:[#allocation32_spill]] }
 0x336   : > { %6315 = vmatprep.subr.bf16.mxu1 %v8073_v57  ;;  %v1080_v57 = vsub.s32 1, %v10466_v27  ;;  %v10475_v61 = vrot.slane %v10470_v42, %v1076_v40 }
 0x337   : > { %v10481_v46 = vrot.slane %v10470_v42, %v1084_v43 }
 0x338   : > { %6210 = vmatpush1.bf16.msra.mxu0 %v8070_v47  ;;  %v6509_v47 = vld [vmem:[%s9518_s12] sm:$0xff] }
 0x339   : > { %6316 = vmatpush1.bf16.msra.mxu1 %v8072_v48  ;;  %6211 = vmatprep.subr.bf16.mxu0 %v8079_v53  ;;  %v10485_v48 = vrot.slane %v10470_v42, %v1080_v57  ;;  %v1088_v53 = vsub.s32 3, %v10466_v27 }
 0x33a   : > { %6317 = vmatprep.subr.bf16.mxu1 %v8081_v34  ;;  %v10488_v34 = vld [vmem:[#allocation3 + $0x8] sm:$0xff] }
 0x33b   : > { %v6518_v12 = vmul.f32 %v6510_v5, %v10488_v34  ;;  %v6515_v5 = vld [vmem:[%s9518_s12 + $0x30] sm:$0xff]  ;;  %p10909_p5 = scmp.ne.s32.totalorder %s10907_s15, 0 }
 0x33c   : > { %6212 = vmatpush1.bf16.msra.mxu0 %v8078_v59  ;;  %v6517_v59 = vmul.f32 %v6509_v47, %v10477_v44 }
 0x33d   : > { %6318 = vmatpush1.bf16.msra.mxu1 %v8080_v60  ;;  %6213 = vmatprep.subr.bf16.mxu0 %v8087_v62  ;;  %v6446_v62 = vmul.f32 %v6438_v50, %v10488_v34 }
 0x33e   : > { %6319 = vmatprep.subr.bf16.mxu1 %v8089_v63  ;;  %v10498_v63 = vrot.slane %v10470_v42, %v1088_v53  ;;  %v6443_v53 = vld [vmem:[%s9512_s2 + $0x30] sm:$0xff] }
 0x340   : > { %6214 = vmatpush1.bf16.msra.mxu0 %v8086_v7 }
 0x341   : > { %6320 = vmatpush1.bf16.msra.mxu1 %v8088_v8  ;;  %6215 = vmatprep.subr.bf16.mxu0 %v8095_v56  ;;  %v6511_v8 = vld [vmem:[%s9518_s12 + $0x10] sm:$0xff] }
 0x342   : > { %6321 = vmatprep.subr.bf16.mxu1 %v8097_v11  ;;  %v6519_v32 = vmul.f32 %v6511_v8, %v10501_v3 }
 0x344   : > { %6216 = vmatpush1.bf16.msra.mxu0 %v8094_v9  ;;  %v6447_v9 = vmul.f32 %v6439_v6, %v10501_v3 }
 0x345   : > { %6322 = vmatpush1.bf16.msra.mxu1 %v8096_v29  ;;  %6238 = vmatprep.subr.bf16.mxu0 %v8103_v51  ;;  %v6512_v29 = vld [vmem:[%s9518_s12 + $0x18] sm:$0xff] }
 0x346   : > { %6344 = vmatprep.subr.bf16.mxu1 %v8105_v16 }
 0x347   : > { %6218 = vmatmul.mubr.bf16.vlgmr.msra.gmra.mrb[8].mxu0 %v10320_v26 }
 0x348   : > { %6324 = vmatmul.mubr.bf16.vlgmr.msra.gmra.mrb[8].mxu1 %v10320_v26  ;;  %6239 = vmatpush1.bf16.msra.mxu0 %v8102_v19  ;;  %v6441_v19 = vld [vmem:[%s9512_s2 + $0x20] sm:$0xff] }
 0x349   : > { %6227 = vmatprep.mubr.bf16.mxu0 %v10326_v35  ;;  %6333 = vmatprep.mubr.bf16.mxu1 %v10326_v35  ;;  %v6449_v38 = vmul.f32 %v6441_v19, %v10515_v18 }
 0x34a   : > { %6240 = vmatprep.subr.bf16.mxu0 %v8111_v22  ;;  %6345 = vmatpush1.bf16.msra.mxu1 %v8104_v1  ;;  %v6448_v1 = vmul.f32 %v6440_v14, %v10507_v13  ;;  %v6516_v14 = vld [vmem:[%s9518_s12 + $0x38] sm:$0xff] }
 0x34b   : > { %6346 = vmatprep.subr.bf16.mxu1 %v8113_v24  ;;  %v10521_v24 = vld [vmem:[#allocation3 + $0x28] sm:$0xff] }
 0x34c   : > { %6241 = vmatpush1.bf16.msra.mxu0 %v8110_v4  ;;  %v6442_v4 = vld [vmem:[%s9512_s2 + $0x28] sm:$0xff] }
 0x34d   : > { %v6450_v57 = vmul.f32 %v6442_v4, %v10521_v24 }
 0x34e   : > { %6347 = vmatpush1.bf16.msra.mxu1 %v8112_v17 }
 0x34f   : > { %6228 = vmatmul.mubr.bf16.gmra.mrb[12].mxu0 %v10336_v45 }
 0x350   : > { %6334 = vmatmul.mubr.bf16.gmra.mrb[12].mxu1 %v10336_v45  ;;  %6270 = vmatprep.mubr.bf16.mxu0 %v9098_v10 }
 0x351   : > { %6376 = vmatprep.mubr.bf16.mxu1 %v9098_v10 }
 0x357   : > { %8118 = vmatmul.mubr.msk.bf16.vlgmr.msra.gmra.mrb[8].mxu0 %vm2040_vm4, %v10348_v0 }
 0x358   : > { %8120 = vmatmul.mubr.msk.bf16.vlgmr.msra.gmra.mrb[8].mxu1 %vm2040_vm4, %v10348_v0  ;;  %6280 = vmatprep.mubr.bf16.mxu0 %v9098_v10 }
 0x359   : > { %6386 = vmatprep.mubr.bf16.mxu1 %v9098_v10 }
 0x35f   : > { %8119 = vmatmul.mubr.msk.bf16.gmra.mrb[12].mxu0 %vm2040_vm4, %v10368_v23 }
 0x360   : > { %8121 = vmatmul.mubr.msk.bf16.gmra.mrb[12].mxu1 %vm2040_vm4, %v10368_v23 }
 0x3da   : > { %v6060_v26 = vpop.f32.mrb[0].mxu0 }
 0x3db   : > { %v6166_v35 = vpop.f32.mrb[0].mxu1  ;;  %v6062_v45 = vpop.f32.mrb[1].mxu0  ;;  %v8165_v52 = vadd.f32 %v6060_v26, %v10475_v61 }
 0x3dc   : > { %v6168_v25 = vpop.f32.mrb[1].mxu1  ;;  %v6064_v49 = vpop.f32.mrb[2].mxu0  ;;  %v8173_v58 = vadd.f32 %v6166_v35, %v10481_v46  ;;  %v8166_v60 = vadd.f32 %v6062_v45, %v10485_v48  ;;  %v6520_v45 = vmul.f32 %v6512_v29, %v10507_v13 }
 0x3dd   : > { %v6170_v28 = vpop.f32.mrb[2].mxu1  ;;  %v6066_v30 = vpop.f32.mrb[3].mxu0  ;;  %v6453_v2 = vadd.f32 %v8165_v52, %v6445_v55  ;;  %v8174_v11 = vadd.f32 %v6168_v25, %v10498_v63  ;;  %v8167_v15 = vadd.f32 %v6064_v49, %v10475_v61  ;;  %v6514_v25 = vld [vmem:[%s9518_s12 + $0x28] sm:$0xff]  ;;  %s6877_s12 = sadd.s32 %s8153_s4, %s8152_s19 }
 0x3de   : > { %v6172_v31 = vpop.f32.mrb[3].mxu1  ;;  %v6525_v7 = vadd.f32 %v8173_v58, %v6517_v59  ;;  %v6454_v56 = vadd.f32 %v8166_v60, %v6446_v62  ;;  %v8175_v16 = vadd.f32 %v6170_v28, %v10481_v46  ;;  %v8168_v22 = vadd.f32 %v6066_v30, %v10485_v48  ;;  %s8154_s30 = sshll.u32 %s6877_s12, 7 }
 0x3df   : > { %v8122_v51 = vmul.f32 -1.442695, %v6453_v2  ;;  %v6526_v26 = vadd.f32 %v8174_v11, %v6518_v12  ;;  %v8176_v35 = vadd.f32 %v6172_v31, %v10498_v63  ;;  %v6455_v49 = vadd.f32 %v8167_v15, %v6447_v9  ;;  %v6444_v11 = vld [vmem:[%s9512_s2 + $0x38] sm:$0xff]  ;;  %s6880_s2 = sshll.u32 %s9541_s20, 4  ;;  %s10679_s17 = scalar_lea.hbm %s10908_s23, %s8154_s30  ;;  %s10672_s2 = int_to_ptr.vmem [resolvable:$true] %s6880_s2 }
 0x3e0   : > { %v8130_v21 = vmul.f32 -1.442695, %v6525_v7  ;;  %v8123_v17 = vmul.f32 -1.442695, %v6454_v56  ;;  %v6521_v30 = vmul.f32 %v6513_v20, %v10515_v18  ;;  %v6527_v40 = vadd.f32 %v8175_v16, %v6519_v32  ;;  %v10545_v56 = vld [vmem:[#allocation3 + $0x38] sm:$0xff]  ;;  %s8950_s29 = scalar_lea.vmem %s10672_s2, 1024  ;;  %p8957_p0 = scmp.lt.s32.totalorder %s10672_s2, %s8955_s21 }
 0x3e1   : > { %8630 = vpow2.f32 %v8122_v51  ;;  %v6456_v31 = vadd.f32 %v8168_v22, %v6448_v1  ;;  %v6522_v47 = vmul.f32 %v6514_v25, %v10521_v24  ;;  %v8131_v50 = vmul.f32 -1.442695, %v6526_v26  ;;  %p8951_p12 = scmp.ne.s32.totalorder %s10672_s2, %s8950_s29  ;;  %p8958_p2 = scmp.lt.s32.totalorder %s8956_s22, %s8950_s29 }
 0x3e2   : > { %v6070_v0 = vpop.f32.mrb[4].mxu0  ;;  %8632 = vpow2.f32 %v8130_v21  ;;  %v6528_v52 = vadd.f32 %v8176_v35, %v6520_v45  ;;  %v8124_v55 = vmul.f32 -1.442695, %v6455_v49  ;;  %v8132_v59 = vmul.f32 -1.442695, %v6527_v40 }
 0x3e3   : > { %v10452_v33 = vpop.f32.mrb[4].mxu1  ;;  %v10454_v10 = vpop.f32.mrb[5].mxu0  ;;  %v8169_v28 = vadd.f32 %v6070_v0, %v10475_v61  ;;  %v10536_v0 = vld [vmem:[#allocation3 + $0x30] sm:$0xff]  ;;  %8634 = vpow2.f32 %v8123_v17  ;;  %v8125_v2 = vmul.f32 -1.442695, %v6456_v31  ;;  %v6452_v51 = vmul.f32 %v6444_v11, %v10545_v56  ;;  %p8952_p4 = pnand %p8951_p12, %p10909_p5  ;;  %p8959_p3 = por %p8958_p2, %p8957_p0 }
 0x3e4   : > { %v10456_v36 = vpop.f32.mrb[5].mxu1  ;;  %v10458_v54 = vpop.f32.mrb[6].mxu0  ;;  %v8177_v43 = vadd.f32 %v10452_v33, %v10481_v46  ;;  %v8170_v41 = vadd.f32 %v10454_v10, %v10485_v48  ;;  %v6451_v62 = vmul.f32 %v6443_v53, %v10536_v0  ;;  %8636 = vpow2.f32 %v8131_v50 }
 0x3e5   : > { %v10460_v23 = vpop.f32.mrb[6].mxu1  ;;  %v10462_v37 = vpop.f32.mrb[7].mxu0  ;;  %v8178_v33 = vadd.f32 %v10456_v36, %v10498_v63  ;;  %v6457_v58 = vadd.f32 %v8169_v28, %v6449_v38  ;;  %v8171_v10 = vadd.f32 %v10458_v54, %v10475_v61  ;;  %v8133_v7 = vmul.f32 -1.442695, %v6528_v52  ;;  %p8953_p7 = pneg %p8952_p4 }
 0x3e6   : > { %v10464_v39 = vpop.f32.mrb[7].mxu1  ;;  %v6529_v60 = vadd.f32 %v8177_v43, %v6521_v30  ;;  %v6458_v6 = vadd.f32 %v8170_v41, %v6450_v57  ;;  %8638 = vpow2.f32 %v8124_v55  ;;  %v6523_v12 = vmul.f32 %v6515_v5, %v10536_v0 }
 0x3e7   : > { %v6530_v8 = vadd.f32 %v8178_v33, %v6522_v47  ;;  %v8126_v36 = vmul.f32 -1.442695, %v6457_v58  ;;  %8640 = vpow2.f32 %v8132_v59  ;;  %v6459_v9 = vadd.f32 %v8171_v10, %v6451_v62  ;;  %p8960_p1 = pnand %p8959_p3, %p8953_p7 }
 0x3e8   : > { %v8134_v15 = vmul.f32 -1.442695, %v6529_v60  ;;  %v8179_v54 = vadd.f32 %v10460_v23, %v10481_v46  ;;  %8642 = vpow2.f32 %v8125_v2  ;;  %v8127_v61 = vmul.f32 -1.442695, %v6458_v6 }
 0x3e9   : > { %v8172_v29 = vadd.f32 %v10462_v37, %v10485_v48  ;;  %8644 = vpow2.f32 %v8133_v7  ;;  %v8135_v32 = vmul.f32 -1.442695, %v6530_v8  ;;  %v8180_v19 = vadd.f32 %v10464_v39, %v10498_v63 }
 0x3ea   : > { %v6524_v20 = vmul.f32 %v6516_v14, %v10545_v56  ;;  %8646 = vpow2.f32 %v8126_v36  ;;  %v8128_v23 = vmul.f32 -1.442695, %v6459_v9  ;;  %v6531_v46 = vadd.f32 %v8179_v54, %v6523_v12 }
 0x3eb   : > { %v8631_v16 = vpop.eup %8630  ;;  %8648 = vpow2.f32 %v8134_v15  ;;  %v6460_v4 = vadd.f32 %v8172_v29, %v6452_v51  ;;  %v1092_v41 = vsub.s32 4, %v10466_v27  ;;  %v1096_v50 = vsub.s32 5, %v10466_v27 }
 0x3ec   : > { %v8633_v21 = vpop.eup %8632  ;;  %v6485_v1 = vadd.f32 1.0, %v8631_v16  ;;  %8650 = vpow2.f32 %v8127_v61  ;;  %v6532_v48 = vadd.f32 %v8180_v19, %v6524_v20  ;;  %v8136_v35 = vmul.f32 -1.442695, %v6531_v46 }
 0x3ed   : > { %v8635_v22 = vpop.eup %8634  ;;  %v6557_v37 = vadd.f32 1.0, %v8633_v21  ;;  %8652 = vpow2.f32 %v8135_v32  ;;  %v8129_v39 = vmul.f32 -1.442695, %v6460_v4  ;;  %v1093_v60 = vrot.slane %v10470_v42, %v1092_v41 }
 0x3ee   : > { %v6486_v17 = vadd.f32 1.0, %v8635_v22  ;;  %v8637_v26 = vpop.eup %8636  ;;  %8654 = vpow2.f32 %v8128_v23  ;;  %v8137_v25 = vmul.f32 -1.442695, %v6532_v48  ;;  %v1097_v5 = vrot.slane %v10470_v42, %v1096_v50 }
 0x3ef   : > { %8656 = vrcp.f32 %v6485_v1  ;;  %v6558_v28 = vadd.f32 1.0, %v8637_v26 }
 0x3f0   : > { %v8639_v45 = vpop.eup %8638  ;;  %8658 = vrcp.f32 %v6557_v37 }
 0x3f1   : > { %v8641_v63 = vpop.eup %8640  ;;  %8660 = vrcp.f32 %v6486_v17  ;;  %v6487_v30 = vadd.f32 1.0, %v8639_v45 }
 0x3f2   : > { %v8643_v49 = vpop.eup %8642  ;;  %8662 = vpow2.f32 %v8136_v35  ;;  %v6559_v43 = vadd.f32 1.0, %v8641_v63 }
 0x3f3   : > { %v8645_v38 = vpop.eup %8644  ;;  %8664 = vpow2.f32 %v8129_v39  ;;  %v6488_v31 = vadd.f32 1.0, %v8643_v49 }
 0x3f4   : > { %v8647_v40 = vpop.eup %8646  ;;  %8666 = vpow2.f32 %v8137_v25  ;;  %v6560_v53 = vadd.f32 1.0, %v8645_v38  ;;  %v1100_v25 = vsub.s32 6, %v10466_v27 }
 0x3f5   : > { %v8649_v57 = vpop.eup %8648  ;;  %8668 = vrcp.f32 %v6558_v28  ;;  %v6489_v33 = vadd.f32 1.0, %v8647_v40  ;;  %v1104_v40 = vsub.s32 7, %v10466_v27 }
 0x3f6   : > { %v8651_v47 = vpop.eup %8650  ;;  %8670 = vrcp.f32 %v6487_v30  ;;  %v6561_v55 = vadd.f32 1.0, %v8649_v57 }
 0x3f7   : > { %v8653_v52 = vpop.eup %8652  ;;  %8672 = vrcp.f32 %v6559_v43  ;;  %v6490_v59 = vadd.f32 1.0, %v8651_v47 }
 0x3f8   : > { %v8655_v58 = vpop.eup %8654  ;;  %8674 = vrcp.f32 %v6488_v31  ;;  %v6562_v62 = vadd.f32 1.0, %v8653_v52 }
 0x3f9   : > { %v10561_v10 = vpop.eup %8656  ;;  %8676 = vrcp.f32 %v6560_v53  ;;  %v6491_v29 = vadd.f32 1.0, %v8655_v58 }
 0x3fa   : > { %v8659_v2 = vpop.eup %8658  ;;  %8678 = vrcp.f32 %v6489_v33  ;;  %v10589_v33 = vrot.slane %v10470_v42, %v1100_v25 }
 0x3fb   : > { %v10564_v6 = vpop.eup %8660  ;;  %8680 = vrcp.f32 %v6561_v55  ;;  %v6581_v27 = vmul.f32 %v8659_v2, %v10477_v44 }
 0x3fc   : > { %v8663_v8 = vpop.eup %8662  ;;  %8682 = vrcp.f32 %v6490_v59  ;;  %v6613_v59 = vld [vmem:[%s9520_s11] sm:$0xff] }
 0x3fd   : > { %v8665_v14 = vpop.eup %8664  ;;  %8684 = vrcp.f32 %v6562_v62  ;;  %v6563_v20 = vadd.f32 1.0, %v8663_v8 }
 0x3fe   : > { %v8667_v61 = vpop.eup %8666  ;;  %v6492_v46 = vadd.f32 1.0, %v8665_v14  ;;  %v6615_v14 = vld [vmem:[%s9520_s11 + $0x10] sm:$0xff] }
 0x3ff   : > { %v8669_v19 = vpop.eup %8668  ;;  %v6564_v4 = vadd.f32 1.0, %v8667_v61 }
 0x400   : > { %v8671_v23 = vpop.eup %8670  ;;  %v6582_v62 = vmul.f32 %v8669_v19, %v10488_v34 }
 0x401   : > { %v8673_v1 = vpop.eup %8672 }
 0x402   : > { %v8675_v37 = vpop.eup %8674 }
 0x403   : > { %v8677_v48 = vpop.eup %8676 }
 0x404   : > { %v10574_v26 = vpop.eup %8678 }
 0x405   : > { %v8681_v63 = vpop.eup %8680 }
 0x406   : > { %v10581_v30 = vpop.eup %8682 }
 0x407   : > { %v8685_v41 = vpop.eup %8684 }
 0x42a   : > { %v6272_v7 = vpop.f32.mrb[8].mxu0 }
 0x42b   : > { %v8181_v11 = vadd.f32 %v6272_v7, %v1093_v60  ;;  %v10566_v36 = vpop.f32.mrb[8].mxu1  ;;  %v6274_v12 = vpop.f32.mrb[9].mxu0 }
 0x42c   : > { %v8182_v15 = vadd.f32 %v6274_v12, %v1097_v5  ;;  %v10568_v9 = vpop.f32.mrb[9].mxu1  ;;  %v6276_v54 = vpop.f32.mrb[10].mxu0  ;;  %v6583_v12 = vmul.f32 %v8673_v1, %v10501_v3  ;;  %v8189_v34 = vadd.f32 %v10566_v36, %v10589_v33 }
 0x42d   : > { %8686 = vtanh.f32 %v8181_v11  ;;  %v8183_v51 = vadd.f32 %v6276_v54, %v1093_v60  ;;  %v10570_v16 = vpop.f32.mrb[10].mxu1  ;;  %v6278_v32 = vpop.f32.mrb[11].mxu0  ;;  %v6614_v11 = vld [vmem:[%s9520_s11 + $0x8] sm:$0xff] }
 0x42e   : > { %8688 = vtanh.f32 %v8182_v15  ;;  %v8184_v21 = vadd.f32 %v6278_v32, %v1097_v5  ;;  %v10572_v22 = vpop.f32.mrb[11].mxu1  ;;  %v6584_v15 = vmul.f32 %v8677_v48, %v10507_v13  ;;  %v8191_v36 = vadd.f32 %v10570_v16, %v10589_v33 }
 0x42f   : > { %8690 = vtanh.f32 %v8183_v51 }
 0x430   : > { %8692 = vtanh.f32 %v8184_v21 }
 0x431   : > { %8694 = vrcp.f32 %v6491_v29  ;;  %v6616_v29 = vld [vmem:[%s9520_s11 + $0x18] sm:$0xff] }
 0x432   : > { %8696 = vrcp.f32 %v6563_v20  ;;  %v6282_v17 = vpop.f32.mrb[12].mxu0 }
 0x433   : > { %8698 = vrcp.f32 %v6492_v46  ;;  %v8185_v35 = vadd.f32 %v6282_v17, %v1093_v60  ;;  %v10576_v45 = vpop.f32.mrb[12].mxu1  ;;  %v6284_v39 = vpop.f32.mrb[13].mxu0 }
 0x434   : > { %8700 = vrcp.f32 %v6564_v4  ;;  %v8186_v49 = vadd.f32 %v6284_v39, %v1097_v5  ;;  %v10579_v28 = vpop.f32.mrb[13].mxu1  ;;  %v6286_v38 = vpop.f32.mrb[14].mxu0 }
 0x435   : > { %8702 = vtanh.f32 %v8185_v35  ;;  %v8187_v43 = vadd.f32 %v6286_v38, %v1093_v60  ;;  %v10584_v57 = vpop.f32.mrb[14].mxu1  ;;  %v6288_v31 = vpop.f32.mrb[15].mxu0  ;;  %v10595_v60 = vrot.slane %v10470_v42, %v1104_v40 }
 0x436   : > { %8704 = vtanh.f32 %v8186_v49  ;;  %v8188_v47 = vadd.f32 %v6288_v31, %v1097_v5  ;;  %v10586_v53 = vpop.f32.mrb[15].mxu1  ;;  %v6617_v49 = vld [vmem:[%s9520_s11 + $0x20] sm:$0xff]  ;;  %v6618_v31 = vld [vmem:[%s9520_s11 + $0x28] sm:$0xff] }
 0x437   : > { %v8687_v50 = vpop.eup %8686  ;;  %8706 = vtanh.f32 %v8187_v43  ;;  %v8190_v51 = vadd.f32 %v10568_v9, %v10595_v60  ;;  %v8192_v1 = vadd.f32 %v10572_v22, %v10595_v60 }
 0x438   : > { %v8689_v52 = vpop.eup %8688  ;;  %v6597_v55 = vmul.f32 %v8687_v50, %v10561_v10  ;;  %8708 = vtanh.f32 %v8188_v47 }
 0x439   : > { %v8691_v58 = vpop.eup %8690  ;;  %v6598_v5 = vmul.f32 %v8689_v52, %v10564_v6  ;;  %v8193_v52 = vadd.f32 %v10576_v45, %v10589_v33 }
 0x43a   : > { %v8693_v7 = vpop.eup %8692  ;;  %v10599_v8 = vadd.f32 %v6597_v55, %v6581_v27  ;;  %v6599_v44 = vmul.f32 %v8691_v58, %v8671_v23  ;;  %v6585_v23 = vmul.f32 %v8681_v63, %v10515_v18  ;;  %v8194_v55 = vadd.f32 %v10579_v28, %v10595_v60 }
 0x43b   : > { %v8695_v2 = vpop.eup %8694  ;;  %v10603_v10 = vadd.f32 %v6598_v5, %v6582_v62  ;;  %v6600_v42 = vmul.f32 %v8693_v7, %v8675_v37  ;;  %v6586_v37 = vmul.f32 %v8685_v41, %v10521_v24  ;;  %v8195_v5 = vadd.f32 %v10584_v57, %v10589_v33 }
 0x43c   : > { %v8697_v54 = vpop.eup %8696  ;;  %v6621_v6 = vmul.f32 %v6613_v59, %v10599_v8  ;;  %6701 = vst [vmem:[#allocation3] sm:$0xff] %v10599_v8  ;;  %v10611_v61 = vadd.f32 %v6599_v44, %v6583_v12 }
 0x43d   : > { %v8699_v3 = vpop.eup %8698  ;;  %v6622_v32 = vmul.f32 %v6614_v11, %v10603_v10  ;;  %6702 = vst [vmem:[#allocation3 + $0x8] sm:$0xff] %v10603_v10  ;;  %v10618_v13 = vadd.f32 %v6600_v42, %v6584_v15  ;;  %v6587_v39 = vmul.f32 %v8697_v54, %v10536_v0  ;;  %v6619_v0 = vld [vmem:[%s9520_s11 + $0x30] sm:$0xff]  ;;  %v8196_v11 = vadd.f32 %v10586_v53, %v10595_v60 }
 0x43e   : > { %v8701_v19 = vpop.eup %8700  ;;  %v6629_v20 = vadd.f32 %v8189_v34, %v6621_v6  ;;  %v6623_v21 = vmul.f32 %v6615_v14, %v10611_v61  ;;  %6703 = vst [vmem:[#allocation3 + $0x10] sm:$0xff] %v10611_v61 }
 0x43f   : > { %v8703_v46 = vpop.eup %8702  ;;  %v6630_v9 = vadd.f32 %v8190_v51, %v6622_v32  ;;  %v6624_v4 = vmul.f32 %v6616_v29, %v10618_v13  ;;  %6704 = vst [vmem:[#allocation3 + $0x18] sm:$0xff] %v10618_v13  ;;  %v6588_v38 = vmul.f32 %v8701_v19, %v10545_v56  ;;  %v6620_v56 = vld [vmem:[%s9520_s11 + $0x38] sm:$0xff] }
 0x440   : > { %v8705_v16 = vpop.eup %8704  ;;  %v8138_v48 = vmul.f32 -1.442695, %v6629_v20  ;;  %v6631_v17 = vadd.f32 %v8191_v36, %v6623_v21  ;;  %v6601_v35 = vmul.f32 %v8703_v46, %v10574_v26 }
 0x441   : > { %v8707_v18 = vpop.eup %8706  ;;  %v8139_v63 = vmul.f32 -1.442695, %v6630_v9  ;;  %v6632_v25 = vadd.f32 %v8192_v1, %v6624_v4  ;;  %v6602_v22 = vmul.f32 %v8705_v16, %v10581_v30 }
 0x442   : > { %v8709_v40 = vpop.eup %8708  ;;  %8710 = vpow2.f32 %v8138_v48  ;;  %v8140_v24 = vmul.f32 -1.442695, %v6631_v17  ;;  %v6609_v43 = vadd.f32 %v6601_v35, %v6585_v23  ;;  %v6603_v41 = vmul.f32 %v8707_v18, %v8695_v2 }
 0x443   : > { %8712 = vpow2.f32 %v8139_v63  ;;  %v8141_v26 = vmul.f32 -1.442695, %v6632_v25  ;;  %v6610_v47 = vadd.f32 %v6602_v22, %v6586_v37  ;;  %v6604_v50 = vmul.f32 %v8709_v40, %v8699_v3 }
 0x444   : > { %8714 = vpow2.f32 %v8140_v24  ;;  %v6625_v27 = vmul.f32 %v6617_v49, %v6609_v43  ;;  %6705 = vst [vmem:[#allocation3 + $0x20] sm:$0xff] %v6609_v43  ;;  %v6611_v30 = vadd.f32 %v6603_v41, %v6587_v39 }
 0x445   : > { %8716 = vpow2.f32 %v8141_v26  ;;  %v6626_v58 = vmul.f32 %v6618_v31, %v6610_v47  ;;  %6706 = vst [vmem:[#allocation3 + $0x28] sm:$0xff] %v6610_v47  ;;  %v6612_v59 = vadd.f32 %v6604_v50, %v6588_v38 }
 0x446   : > { %v6633_v62 = vadd.f32 %v8193_v52, %v6625_v27  ;;  %v6627_v7 = vmul.f32 %v6619_v0, %v6611_v30  ;;  %6707 = vst [vmem:[#allocation3 + $0x30] sm:$0xff] %v6611_v30  ;;  %8718 = vtanh.f32 %v10599_v8 }
 0x447   : > { %v6634_v45 = vadd.f32 %v8194_v55, %v6626_v58  ;;  %v6628_v12 = vmul.f32 %v6620_v56, %v6612_v59  ;;  %6708 = vst [vmem:[#allocation3 + $0x38] sm:$0xff] %v6612_v59  ;;  %8720 = vtanh.f32 %v10603_v10 }
 0x448   : > { %v8142_v28 = vmul.f32 -1.442695, %v6633_v62  ;;  %v6635_v44 = vadd.f32 %v8195_v5, %v6627_v7  ;;  %8722 = vtanh.f32 %v10611_v61 }
 0x449   : > { %v8143_v2 = vmul.f32 -1.442695, %v6634_v45  ;;  %v6636_v14 = vadd.f32 %v8196_v11, %v6628_v12 }
 0x44a   : > { %8724 = vpow2.f32 %v8142_v28  ;;  %v8144_v57 = vmul.f32 -1.442695, %v6635_v44 }
 0x44b   : > { %8726 = vpow2.f32 %v8143_v2  ;;  %v8145_v33 = vmul.f32 -1.442695, %v6636_v14 }
 0x44c   : > { %v8711_v15 = vpop.eup %8710  ;;  %8728 = vpow2.f32 %v8144_v57 }
 0x44d   : > { %v8713_v8 = vpop.eup %8712  ;;  %v6661_v42 = vadd.f32 1.0, %v8711_v15  ;;  %8730 = vpow2.f32 %v8145_v33 }
 0x44e   : > { %v8715_v53 = vpop.eup %8714  ;;  %v6662_v60 = vadd.f32 1.0, %v8713_v8  ;;  %8732 = vtanh.f32 %v10618_v13 }
 0x44f   : > { %v8717_v10 = vpop.eup %8716  ;;  %8734 = vrcp.f32 %v6661_v42  ;;  %v6663_v54 = vadd.f32 1.0, %v8715_v53 }
 0x450   : > { %8736 = vrcp.f32 %v6662_v60  ;;  %v6664_v34 = vadd.f32 1.0, %v8717_v10  ;;  %v8719_v6 = vpop.eup %8718 }
 0x451   : > { %8738 = vrcp.f32 %v6663_v54  ;;  %v8721_v61 = vpop.eup %8720 }
 0x452   : > { %8740 = vrcp.f32 %v6664_v34  ;;  %v8723_v29 = vpop.eup %8722 }
 0x453   : > { %8742 = vtanh.f32 %v6609_v43 }
 0x454   : > { %v8725_v3 = vpop.eup %8724  ;;  %8744 = vtanh.f32 %v6610_v47 }
 0x455   : > { %v8727_v51 = vpop.eup %8726  ;;  %v6665_v32 = vadd.f32 1.0, %v8725_v3  ;;  %8746 = vtanh.f32 %v6611_v30 }
 0x456   : > { %v8729_v19 = vpop.eup %8728  ;;  %v6666_v20 = vadd.f32 1.0, %v8727_v51  ;;  %8748 = vtanh.f32 %v6612_v59 }
 0x457   : > { %v8731_v13 = vpop.eup %8730  ;;  %8750 = vrcp.f32 %v6665_v32  ;;  %v6667_v36 = vadd.f32 1.0, %v8729_v19 }
 0x458   : > { %v8733_v21 = vpop.eup %8732  ;;  %8752 = vrcp.f32 %v6666_v20  ;;  %v6668_v23 = vadd.f32 1.0, %v8731_v13 }
 0x459   : > { %v8735_v46 = vpop.eup %8734  ;;  %8754 = vrcp.f32 %v6667_v36 }
 0x45a   : > { %v8737_v9 = vpop.eup %8736  ;;  %8756 = vrcp.f32 %v6668_v23  ;;  %v6693_v1 = vmul.f32 %v8735_v46, %v8719_v6 }
 0x45b   : > { %v8739_v4 = vpop.eup %8738  ;;  %v6694_v37 = vmul.f32 %v8737_v9, %v8721_v61 }
 0x45c   : > { %v8741_v16 = vpop.eup %8740  ;;  %6709 = vst [vmem:[%s9541_s20] sm:$0xff] %v6693_v1  ;;  %v6695_v48 = vmul.f32 %v8739_v4, %v8723_v29 }
 0x45d   : > { %v8743_v17 = vpop.eup %8742  ;;  %6710 = vst [vmem:[%s9541_s20 + $0x8] sm:$0xff] %v6694_v37  ;;  %v8161_v35 = vpack.c.bf16 %v6694_v37, %v6693_v1  ;;  %v6696_v39 = vmul.f32 %v8741_v16, %v8733_v21 }
 0x45e   : > { %v8745_v18 = vpop.eup %8744  ;;  %6711 = vst [vmem:[%s9541_s20 + $0x10] sm:$0xff] %v6695_v48 }
 0x45f   : > { %v8747_v63 = vpop.eup %8746  ;;  %v6741_v25 = vshrl.u32 %v8161_v35, 16  ;;  %6712 = vst [vmem:[%s9541_s20 + $0x18] sm:$0xff] %v6696_v39  ;;  %v8162_v49 = vpack.c.bf16 %v6696_v39, %v6695_v48  ;;  %v6744_v24 = vshll.u32 %v8161_v35, 16 }
 0x460   : > { %v8749_v22 = vpop.eup %8748 }
 0x461   : > { %v8751_v38 = vpop.eup %8750  ;;  %v6743_v40 = vrot.slane %v6741_v25, 7  ;;  %v6749_v43 = vshrl.u32 %v8162_v49, 16  ;;  %v6752_v52 = vshll.u32 %v8162_v49, 16 }
 0x462   : > { %v8753_v31 = vpop.eup %8752  ;;  %v6697_v41 = vmul.f32 %v8751_v38, %v8743_v17 }
 0x463   : > { %v8755_v26 = vpop.eup %8754  ;;  %v6746_v47 = vor.u32 %v6744_v24, %v6743_v40  ;;  %v6751_v0 = vrot.slane %v6749_v43, 7  ;;  %v6698_v50 = vmul.f32 %v8753_v31, %v8745_v18  ;;  %v6747_v55 = vrot.slane %v6743_v40, 4 }
 0x464   : > { %v8757_v27 = vpop.eup %8756  ;;  %6713 = vst [vmem:[%s9541_s20 + $0x20] sm:$0xff] %v6697_v41  ;;  %v6699_v56 = vmul.f32 %v8755_v26, %v8747_v63 }
 0x465   : > { %6774 = vrot.lane.b32.xlu0 %v6746_v47, %s9099_s24  ;;  %6714 = vst [vmem:[%s9541_s20 + $0x28] sm:$0xff] %v6698_v50  ;;  %v8163_v58 = vpack.c.bf16 %v6698_v50, %v6697_v41  ;;  %v6754_v59 = vor.u32 %v6752_v52, %v6751_v0  ;;  %v6700_v62 = vmul.f32 %v8757_v27, %v8749_v22  ;;  %v6756_v5 = vrot.slane %v6751_v0, 4 }
 0x466   : > { %6715 = vst [vmem:[%s9541_s20 + $0x30] sm:$0xff] %v6699_v56 }
 0x467   : > { %v6758_v7 = vshrl.u32 %v8163_v58, 16  ;;  %v6755_v45 = vsel %vm10656_vm13, %v6747_v55, %v6754_v59  ;;  %6716 = vst [vmem:[%s9541_s20 + $0x38] sm:$0xff] %v6700_v62  ;;  %v8164_v11 = vpack.c.bf16 %v6700_v62, %v6699_v56  ;;  %v6761_v28 = vshll.u32 %v8163_v58, 16 }
 0x469   : > { %6778 = vrot.lane.b32.xlu0 %v6756_v5, %s9099_s24  ;;  %v6760_v12 = vrot.slane %v6758_v7, 7  ;;  %v6766_v44 = vshrl.u32 %v8164_v11, 16  ;;  %v6769_v57 = vshll.u32 %v8164_v11, 16 }
 0x46b   : > { %v6763_v2 = vor.u32 %v6761_v28, %v6760_v12  ;;  %v6768_v14 = vrot.slane %v6766_v44, 7  ;;  %v6764_v33 = vrot.slane %v6760_v12, 4 }
 0x46d   : > { %6780 = vrot.lane.b32.xlu1 %v6763_v2, %s9099_s24  ;;  %6776 = vrot.lane.b32.xlu0 %v6755_v45, %s9099_s24  ;;  %v6771_v15 = vor.u32 %v6769_v57, %v6768_v14  ;;  %v6773_v8 = vrot.slane %v6768_v14, 4 }
 0x46f   : > { %v6772_v42 = vsel %vm10656_vm13, %v6764_v33, %v6771_v15 }
 0x470   : > { %8963 = shalt.err (!%p8960_p1)
}
 0x471   : > { %s8964_s14 = scalar_lea.hbm %s10679_s17, 1024  ;;  %s8968_s8 = scalar_lea.hbm %s10908_s23, 16384 }
 0x472   : > { %p8965_p9 = scmp.ne.s32.totalorder %s10679_s17, %s8964_s14  ;;  %p8969_p10 = scmp.lt.u32.totalorder %s10679_s17, %s10908_s23 }
 0x473   : > { %p8970_p13 = scmp.lt.u32.totalorder %s8968_s8, %s8964_s14  ;;  %p8972_p12 = scmp.lt.u32.totalorder %s8964_s14, %s10679_s17 }
 0x474   : > { %p8966_p11 = pnand %p8965_p9, %p10909_p5 }
 0x475   : > { %p8971_p6 = por %p8970_p13, %p8969_p10 }
 0x476   : > { %p8967_p8 = pneg %p8966_p11 }
 0x477   : > { %p8973_p4 = por %p8972_p12, %p8971_p6 }
 0x479   : > { %p8974_p7 = pnand %p8973_p4, %p8967_p8 }
 0x47b   : > { %8977 = shalt.err (!%p8974_p7)
}
 0x47c   : > { %s9101_s20 = smov 256   ;;  %6784 = vrot.lane.b32.xlu1 %v6773_v8, %s9099_s24  ;;  %vm6811_vm14 = vcmask 1043584   ;;  %vm6812_vm15 = vsmask.f32 7938  ;;  %vm6814_vm0 = vcmask 1047556   ;;  %vm6821_vm4 = vcmask 125952  }
 0x47d   : > { %8472 = dma.vmem_to_hbm [thread:$0]  (%p10909_p5), %s10672_s2, 1024, %s10679_s17, %s10683_s27, %s9101_s20, %s9101_s20, %s9099_s24   ;;  %vm6815_vm1 = vsmask.f32 7954  ;;  %vm10711_vm2 = vmand %vm6811_vm14, %vm6812_vm15  ;;  %vm6832_vm5 = vcmask 1040512   ;;  %vm6834_vm7 = vcmask 1044484   ;;  %vm6792_vm9 = vcmask 130048  }
 0x47e   : > { %vm10716_vm3 = vmand %vm6814_vm0, %vm6815_vm1  ;;  %vm6835_vm8 = vsmask.f32 4352  ;;  %v6823_v54 = vld [vmem:[#allocation2 + $0x8] sm:$0xf]  ;;  %v6818_v6 = vld [vmem:[#allocation2] sm:$0xff]  ;;  %vm6841_vm13 = vcmask 122880  }
 0x47f   : > { %vm6817_vm6 = vmor %vm10716_vm3, %vm10711_vm2  ;;  %v6843_v13 = vld [vmem:[#allocation2 + $0x20] sm:$0x1]  ;;  %v6838_v21 = vld [vmem:[#allocation2 + $0x18] sm:$0x11] }
 0x480   : > { %6782 = vrot.lane.b32.xlu1 %v6772_v42, %s9099_s24  ;;  %vm10725_vm10 = vmand %vm6821_vm4, %vm6812_vm15  ;;  %v6849_v4 = vld [vmem:[#allocation2 + $0x2c] sm:$0xf]  ;;  %v6846_v17 = vld [vmem:[#allocation2 + $0x24] sm:$0xff] }
 0x481   : > { %vm10730_vm12 = vmand %vm6832_vm5, %vm6737_vm11  ;;  %v6857_v22 = vld [vmem:[#allocation2 + $0x44] sm:$0x1]  ;;  %v6854_v40 = vld [vmem:[#allocation2 + $0x3c] sm:$0x11] }
 0x482   : > { %vm10734_vm1 = vmand %vm6834_vm7, %vm6835_vm8 }
 0x483   : > { %vm10747_vm15 = vmand %vm6841_vm13, %vm6737_vm11 }
 0x484   : > { %vm6837_vm5 = vmor %vm10734_vm1, %vm10730_vm12 }
 0x485   : > { %vm10765_vm11 = vmor %vm6814_vm0, %vm6811_vm14 }
 0x4d7   : > { %v6775_v34 = vpop.permute.xlu0 %6774 }
 0x4d8   : > { %v6786_v61 = vrot.slane %v6775_v34, 4 }
 0x4da   : > { %v6793_v51 = vsel %vm6792_vm9, %v6786_v61, %v6775_v34  ;;  %v6824_v32 = vsel %vm10725_vm10, %v6786_v61, %v6823_v54 }
 0x4db   : > { %v6819_v19 = vsel %vm6817_vm6, %v6793_v51, %v6818_v6  ;;  %6825 = vst [vmem:[#allocation2 + $0x8] sm:$0xf] %v6824_v32  ;;  %v6779_v36 = vpop.permute.xlu0 %6778 }
 0x4dc   : > { %6820 = vst [vmem:[#allocation2] sm:$0xff] %v6819_v19  ;;  %v6788_v23 = vrot.slane %v6779_v36, 4 }
 0x4de   : > { %v6795_v46 = vsel %vm6792_vm9, %v6788_v23, %v6779_v36  ;;  %v6844_v9 = vsel %vm10747_vm15, %v6788_v23, %v6843_v13 }
 0x4df   : > { %v6839_v1 = vsel %vm6837_vm5, %v6795_v46, %v6838_v21  ;;  %6845 = vst [vmem:[#allocation2 + $0x20] sm:$0x1] %v6844_v9  ;;  %v6781_v37 = vpop.permute.xlu1 %6780  ;;  %v6777_v16 = vpop.permute.xlu0 %6776 }
 0x4e0   : > { %6840 = vst [vmem:[#allocation2 + $0x18] sm:$0x11] %v6839_v1  ;;  %v6789_v35 = vrot.slane %v6781_v37, 4  ;;  %v6787_v39 = vrot.slane %v6777_v16, 4 }
 0x4e2   : > { %v6796_v18 = vsel %vm6792_vm9, %v6789_v35, %v6781_v37  ;;  %v6850_v63 = vsel %vm10725_vm10, %v6789_v35, %v6849_v4  ;;  %v6794_v25 = vsel %vm6792_vm9, %v6787_v39, %v6777_v16  ;;  %6831 = vst.msk [vmem:[#allocation2 + $0x14] sm:$0xf] %vm6821_vm4, %v6787_v39 }
 0x4e3   : > { %v6847_v49 = vsel %vm6817_vm6, %v6796_v18, %v6846_v17  ;;  %6851 = vst [vmem:[#allocation2 + $0x2c] sm:$0xf] %v6850_v63  ;;  %6829 = vst.msk [vmem:[#allocation2 + $0xc] sm:$0xff] %vm10765_vm11, %v6794_v25 }
 0x4e4   : > { %6848 = vst [vmem:[#allocation2 + $0x24] sm:$0xff] %v6847_v49 }
 0x4ee   : > { %v6785_v38 = vpop.permute.xlu1 %6784 }
 0x4ef   : > { %v6791_v24 = vrot.slane %v6785_v38, 4 }
 0x4f1   : > { %v6798_v43 = vsel %vm6792_vm9, %v6791_v24, %v6785_v38  ;;  %v6858_v31 = vsel %vm10747_vm15, %v6791_v24, %v6857_v22 }
 0x4f2   : > { %v6855_v41 = vsel %vm6837_vm5, %v6798_v43, %v6854_v40  ;;  %6859 = vst [vmem:[#allocation2 + $0x44] sm:$0x1] %v6858_v31  ;;  %v6783_v26 = vpop.permute.xlu1 %6782 }
 0x4f3   : > { %6856 = vst [vmem:[#allocation2 + $0x3c] sm:$0x11] %v6855_v41  ;;  %v6790_v47 = vrot.slane %v6783_v26, 4 }
 0x4f5   : > { %v6797_v0 = vsel %vm6792_vm9, %v6790_v47, %v6783_v26  ;;  %6853 = vst.msk [vmem:[#allocation2 + $0x38] sm:$0xf] %vm6821_vm4, %v6790_v47 }
 0x4f6   : > { %6852 = vst.msk [vmem:[#allocation2 + $0x30] sm:$0xff] %vm10765_vm11, %v6797_v0 }
 0x4f7 PF: > { %s10924_s24 = sld [smem:[#allocation27_spill]]  ;;  %s10925_s16 = sld [smem:[#allocation21_spill]] }
 0x4f8   : > { %s10926_s19 = sld [smem:[#allocation34_spill]] }
 0x4fd   : > { %p8498_p5 = scmp.ge.s32.totalorder %s10924_s24, 2  ;;  %s6895_s15 = sand.u32 1, %s10925_s16  }
 0x4fe   : > { %p10927_p0 = scmp.ne.s32.totalorder %s10926_s19, 0  ;;  %s6896_s4 = scalar_lea.sflag [#allocation6], %s6895_s15 }
 0x500   : > { %p8494_p2 = pnand %p8498_p5, %p10927_p0 }
 0x502   : > { %9039 = dma.done.wait (!%p8494_p2), %s6896_s4, 1024  }
 0x503   : > { %9041 = vsyncadd (!%p8494_p2), %s6896_s4, 4294966272  ;;  %s32_s11 = sadd.s32 1, %s10924_s24   ;;  %s10928_s2 = sld [smem:[#allocation22_spill]] }
 0x504   : > { %p29_p3 = scmp.ge.s32.totalorder %s32_s11, 18   ;;  %s10929_s26 = sld [smem:[#allocation33_spill]] }
 0x505   : > { %s10930_s12 = sld [smem:[#allocation23_spill]]  ;;  %s10931_s29 = sld [smem:[#allocation31_spill]] }
 0x506   : > { %s10932_s30 = sld [smem:[#allocation26_spill]]  ;;  %s10933_s9 = sld [smem:[#allocation28_spill]] }
 0x507   : > { %s10934_s17 = sld [smem:[#allocation29_spill]]  ;;  %s10935_s24 = smov %s9048_s25 }
 0x508   : > { %s10937_s27 = smov %s9060_s28  ;;  %s10939_s8 = smov %s9080_s10 }
 0x509   : > { %s10936_s25 = smov %s10928_s2  ;;  %31 = sbr.rel (!%p29_p3) target bundleno = 20 (0x14), region = 165 }
 0x50b   : > { %s10938_s28 = smov %s10930_s12 }
 0x50d   : > { %s10940_s10 = smov %s10934_s17 }
 0x510   :  { %6901 = vsyncpa [#allocation5], 1 }
 0x511   :  { %6903 = vsyncpa [#allocation5 + $0x1], 1 }
 0x512   :  { %6904 = vsyncpa [#allocation8], 1 }
 0x513   :  { %6906 = vsyncpa [#allocation8 + $0x1], 1 }
 0x514   :  { %6907 = vsyncpa [#allocation11], 1 }
 0x515   :  { %6909 = vsyncpa [#allocation11 + $0x1], 1 }
 0x516   :  { %6910 = vsyncpa [#allocation14], 1 }
 0x517   :  { %6912 = vsyncpa [#allocation14 + $0x1], 1 }
 0x518   :  { %6913 = vsyncpa [#allocation6], 1 }
 0x519   :  { %6915 = vsyncpa [#allocation6 + $0x1], 1 }

</bundles_post_ra>
